<compile_context>
chip_gen: v7x
topology: tpu7x:2x2x1
jax: 0.10.0
libtpu: 0.0.40
codegen_flags: <defaults>
</compile_context>

<pallas_src>
import numpy as np
import jax
import jax.numpy as jnp
from jax import lax
from jax.experimental import pallas as pl
from jax.experimental.pallas import tpu as pltpu

NUM_CONTEXT = 2          # num_context_images
C_IN = 512               # res5 channels
C_MID = 256
C_OUT = 6 * NUM_CONTEXT  # 12
BATCH_TILE = 8           # max images per grid step


def posecnn_kernel(x_ref, w1_ref, b1_ref, w2_ref, b2_ref, w3_ref, b3_ref,
                   out_ref, pad_ref):
    """conv1(1x1)+relu -> conv2(3x3)+relu -> conv3(3x3)+relu -> spatial mean
    for one batch tile.  bf16 MXU operands, f32 accumulation.  The 12-wide
    conv4 + bias + 0.01 scale is done in the jitted wrapper."""
    f32 = jnp.float32
    bf16 = jnp.bfloat16
    bb, H, W, Cin = x_ref.shape
    C = w1_ref.shape[-1]
    Wp = pad_ref.shape[2]
    M = bb * H * W

    # Zero only the 1-pixel halo ring, every grid step.  (A program_id==0
    # one-time init is NOT safe under "parallel" semantics on multi-TC chips:
    # each core has its own scratch.)  Interior writes never touch the ring,
    # and columns beyond W+1 are never read, so this is sufficient.
    pad_ref[:, 0:1, :, :] = jnp.zeros((bb, 1, Wp, C), bf16)
    pad_ref[:, H + 1:H + 2, :, :] = jnp.zeros((bb, 1, Wp, C), bf16)
    pad_ref[:, 1:H + 1, 0:1, :] = jnp.zeros((bb, H, 1, C), bf16)
    pad_ref[:, 1:H + 1, W + 1:W + 2, :] = jnp.zeros((bb, H, 1, C), bf16)

    # ---- conv1: 1x1 conv == channel matmul + bias + ReLU --------------------
    x = x_ref[...].reshape(M, Cin).astype(bf16)      # cast after pipelined load
    h = jnp.dot(x, w1_ref[...], preferred_element_type=f32)
    h = jnp.maximum(h + b1_ref[...], 0.0)            # (M, C) f32

    # ---- 3x3 same-padded conv: 3 matmuls of K=3*C (one per ky row) ----------
    def conv3x3_relu(h_f32, w_ref, b_ref):
        # bf16 halo scratch: interior write + im2col reads move half the bytes.
        pad_ref[:, 1:H + 1, 1:W + 1, :] = (
            h_f32.astype(bf16).reshape(bb, H, W, C))
        acc = None
        for ky in range(3):
            # Lane-aligned concat of the three x-offset reads -> (bb, H, W, 3C).
            nbr = jnp.concatenate(
                [pad_ref[:, ky:ky + H, kx:kx + W, :] for kx in range(3)],
                axis=3)
            d = jnp.dot(nbr.reshape(M, 3 * C), w_ref[ky],
                        preferred_element_type=f32)
            acc = d if acc is None else acc + d
        return jnp.maximum(acc + b_ref[...], 0.0)    # (M, C) f32

    h = conv3x3_relu(h, w2_ref, b2_ref)
    h = conv3x3_relu(h, w3_ref, b3_ref)

    # ---- spatial mean -> lane-dense (bb, 256) f32 output --------------------
    out_ref[...] = jnp.mean(h.reshape(bb, H * W, C), axis=1).reshape(1, bb, C)


@jax.jit
def posecnn_forward(x, params):
    """x: (B, H, W, 512) res5 features -> (B, NUM_CONTEXT, 6) poses."""
    B, H, W, _ = x.shape
    w1, b1, w2, b2, w3, b3, w4, b4 = params
    bf16 = jnp.bfloat16
    f32 = jnp.float32

    # Repack weights once (outside the kernel) into bf16 matmul shapes.
    w1p = w1.reshape(C_IN, C_MID).astype(bf16)
    w2p = w2.reshape(3, 3 * C_MID, C_MID).astype(bf16)   # (ky, kx*Cin, Cout)
    w3p = w3.reshape(3, 3 * C_MID, C_MID).astype(bf16)
    b1p, b2p, b3p = (b.astype(f32).reshape(1, C_MID) for b in (b1, b2, b3))

    # Batch tile: largest divisor of B that is <= BATCH_TILE and yields >= 2
    # grid steps when B > 1 (so the "parallel" batch axis covers both v7x
    # TensorCores).  Exact division -> no ragged blocks.  For production
    # shapes prefer bb such that M = bb*H*W is a multiple of 256 (MXU-native).
    bb_cap = 1 if B <= 1 else min(BATCH_TILE, (B + 1) // 2)
    bb = max(d for d in range(1, bb_cap + 1) if B % d == 0)
    steps = B // bb
    Wp = ((W + 2 + 7) // 8) * 8            # sublane-aligned padded width
    M = bb * H * W

    # Per-step VMEM footprint with headroom, clamped under v7x's 64 MiB.
    vmem_est = (
        2 * bb * H * W * C_IN * 4                              # x block (2x buf)
        + 2 * (C_IN * C_MID + 2 * 3 * 3 * C_MID * C_MID) * 2   # bf16 weights
        + bb * (H + 2) * Wp * C_MID * 2                        # bf16 halo scratch
        + 3 * M * C_MID * 4                                    # f32 activations
        + 2 * M * 3 * C_MID * 2                                # bf16 im2col temps
        + 2 * bb * C_MID * 4)                                  # output block
    vmem_limit = int(min(max(vmem_est + (8 << 20), 32 << 20), 60 << 20))

    # TODO(synk): for production-sized res5 maps also tile H (1-row halo via
    # the index_map) so the per-step activation set fits v7x's 64 MiB VMEM.
    means = pl.pallas_call(
        posecnn_kernel,
        out_shape=jax.ShapeDtypeStruct((steps, bb, C_MID), f32),
        grid=(steps,),
        in_specs=[
            pl.BlockSpec((bb, H, W, C_IN), lambda i: (i, 0, 0, 0)),     # x
            pl.BlockSpec((C_IN, C_MID), lambda i: (0, 0)),              # w1
            pl.BlockSpec((1, C_MID), lambda i: (0, 0)),                 # b1
            pl.BlockSpec((3, 3 * C_MID, C_MID), lambda i: (0, 0, 0)),   # w2
            pl.BlockSpec((1, C_MID), lambda i: (0, 0)),                 # b2
            pl.BlockSpec((3, 3 * C_MID, C_MID), lambda i: (0, 0, 0)),   # w3
            pl.BlockSpec((1, C_MID), lambda i: (0, 0)),                 # b3
        ],
        out_specs=pl.BlockSpec((1, bb, C_MID), lambda i: (i, 0, 0)),
        scratch_shapes=[pltpu.VMEM((bb, H + 2, Wp, C_MID), bf16)],
        compiler_params=pltpu.CompilerParams(
            dimension_semantics=("parallel",),
            vmem_limit_bytes=vmem_limit),
    )(x, w1p, b1p, w2p, b2p, w3p, b3p)

    # conv4 (1x1, N=12) commuted with the spatial mean (exactly equivalent);
    # keeping the 12-wide GEMM in XLA keeps the kernel output lane-dense.
    w4p = w4.reshape(C_MID, C_OUT).astype(bf16)
    y = jnp.dot(means.reshape(B, C_MID).astype(bf16), w4p,
                preferred_element_type=f32)
    y = 0.01 * (y + b4.astype(f32).reshape(1, C_OUT))
    return y.reshape(B, NUM_CONTEXT, 6)


def posecnn_ref(x, params):
    """Pure-JAX reference (mirrors the PyTorch forward in NHWC/HWIO, with the
    same bf16-operand / f32-accumulation precision as the kernel)."""
    w1, b1, w2, b2, w3, b3, w4, b4 = params
    dn = ('NHWC', 'HWIO', 'NHWC')
    bf16 = jnp.bfloat16

    def conv(h, w, b, pad):
        y = lax.conv_general_dilated(
            h.astype(bf16), w.astype(bf16), (1, 1), [(pad, pad), (pad, pad)],
            dimension_numbers=dn, preferred_element_type=jnp.float32)
        return y + b.reshape(1, 1, 1, -1)

    h = jax.nn.relu(conv(x, w1, b1, 0))
    h = jax.nn.relu(conv(h, w2, b2, 1))
    h = jax.nn.relu(conv(h, w3, b3, 1))
    y = conv(h, w4, b4, 0)
    y = y.mean(axis=(1, 2))                 # == out.mean(3).mean(2) in NCHW
    return (0.01 * y).reshape(x.shape[0], NUM_CONTEXT, 6)


def kaiming_a1(key, shape):
    """kaiming_normal_(w, a=1): gain = sqrt(2/(1+1)) = 1, std = 1/sqrt(fan_in)."""
    kh, kw, cin, _ = shape
    std = 1.0 / np.sqrt(kh * kw * cin)
    return (std * jax.random.normal(key, shape, jnp.float32)).astype(jnp.float32)


if __name__ == "__main__":
    key = jax.random.PRNGKey(0)
    kx, k1, k2, k3, k4 = jax.random.split(key, 5)

    B, H, W = 2, 8, 8   # small res5-like feature map
    x = jax.random.normal(kx, (B, H, W, C_IN), jnp.float32)

    w1 = kaiming_a1(k1, (1, 1, C_IN, C_MID))
    b1 = jnp.zeros((1, C_MID), jnp.float32)
    w2 = kaiming_a1(k2, (3, 3, C_MID, C_MID))
    b2 = jnp.zeros((1, C_MID), jnp.float32)
    w3 = kaiming_a1(k3, (3, 3, C_MID, C_MID))
    b3 = jnp.zeros((1, C_MID), jnp.float32)
    w4 = kaiming_a1(k4, (1, 1, C_MID, C_OUT))
    b4 = jnp.zeros((1, C_OUT), jnp.float32)
    params = (w1, b1, w2, b2, w3, b3, w4, b4)

    out = posecnn_forward(x, params)
    jax.block_until_ready(out)

    assert out.shape == (B, NUM_CONTEXT, 6), out.shape
    ref = posecnn_ref(x, params)
    np.testing.assert_allclose(np.asarray(out), np.asarray(ref),
                               rtol=2e-2, atol=5e-5)
    print("KERNEL_OK")
</pallas_src>

<mosaic_0001>
module attributes {stable_mosaic.version = 11 : i64} {
  func.func @posecnn_kernel(%arg0: i32, %arg1: memref<1x8x8x512xf32, #tpu.memory_space<vmem>>, %arg2: memref<512x256xbf16, #tpu.memory_space<vmem>>, %arg3: memref<1x256xf32, #tpu.memory_space<vmem>>, %arg4: memref<3x768x256xbf16, #tpu.memory_space<vmem>>, %arg5: memref<1x256xf32, #tpu.memory_space<vmem>>, %arg6: memref<3x768x256xbf16, #tpu.memory_space<vmem>>, %arg7: memref<1x256xf32, #tpu.memory_space<vmem>>, %arg8: memref<1x1x256xf32, #tpu.memory_space<vmem>>, %arg9: memref<1x10x16x256xbf16, #tpu.memory_space<vmem>>) attributes {dimension_semantics = [#tpu.dimension_semantics<parallel>], iteration_bounds = array<i64: 2>, scalar_prefetch = 0 : i64, scratch_operands = 1 : i64, tpu.core_type = #tpu.core_type<tc>, window_params = [{transform_indices = @transform_0, window_bounds = array<i64: 1, 8, 8, 512>}, {pipeline_mode = #tpu.pipeline_mode<synchronous>, transform_indices = @transform_1, window_bounds = array<i64: 512, 256>}, {pipeline_mode = #tpu.pipeline_mode<synchronous>, transform_indices = @transform_2, window_bounds = array<i64: 1, 256>}, {pipeline_mode = #tpu.pipeline_mode<synchronous>, transform_indices = @transform_3, window_bounds = array<i64: 3, 768, 256>}, {pipeline_mode = #tpu.pipeline_mode<synchronous>, transform_indices = @transform_4, window_bounds = array<i64: 1, 256>}, {pipeline_mode = #tpu.pipeline_mode<synchronous>, transform_indices = @transform_5, window_bounds = array<i64: 3, 768, 256>}, {pipeline_mode = #tpu.pipeline_mode<synchronous>, transform_indices = @transform_6, window_bounds = array<i64: 1, 256>}, {transform_indices = @transform_7, window_bounds = array<i64: 1, 1, 256>}]} {
    %cst = arith.constant 0.000000e+00 : bf16
    %0 = vector.broadcast %cst : bf16 to vector<1x1x16x256xbf16>
    %c0 = arith.constant 0 : index
    %c0_0 = arith.constant 0 : index
    %c0_1 = arith.constant 0 : index
    %c0_2 = arith.constant 0 : index
    %1 = vector.load %arg9[%c0, %c0_0, %c0_1, %c0_2] : memref<1x10x16x256xbf16, #tpu.memory_space<vmem>>, vector<1x1x16x256xbf16>
    tpu.vector_store %arg9[%c0, %c0_0, %c0_1, %c0_2], %0 {strides = array<i32>} : memref<1x10x16x256xbf16, #tpu.memory_space<vmem>>, vector<1x1x16x256xbf16>,
    %cst_3 = arith.constant 0.000000e+00 : bf16
    %2 = vector.broadcast %cst_3 : bf16 to vector<1x1x16x256xbf16>
    %c0_4 = arith.constant 0 : index
    %c9 = arith.constant 9 : index
    %c0_5 = arith.constant 0 : index
    %c0_6 = arith.constant 0 : index
    %3 = vector.load %arg9[%c0_4, %c9, %c0_5, %c0_6] : memref<1x10x16x256xbf16, #tpu.memory_space<vmem>>, vector<1x1x16x256xbf16>
    tpu.vector_store %arg9[%c0_4, %c9, %c0_5, %c0_6], %2 {strides = array<i32>} : memref<1x10x16x256xbf16, #tpu.memory_space<vmem>>, vector<1x1x16x256xbf16>,
    %cst_7 = arith.constant 0.000000e+00 : bf16
    %4 = vector.broadcast %cst_7 : bf16 to vector<1x8x1x256xbf16>
    %c0_8 = arith.constant 0 : index
    %c1 = arith.constant 1 : index
    %c0_9 = arith.constant 0 : index
    %c0_10 = arith.constant 0 : index
    %5 = vector.load %arg9[%c0_8, %c1, %c0_9, %c0_10] : memref<1x10x16x256xbf16, #tpu.memory_space<vmem>>, vector<1x8x1x256xbf16>
    tpu.vector_store %arg9[%c0_8, %c1, %c0_9, %c0_10], %4 {strides = array<i32>} : memref<1x10x16x256xbf16, #tpu.memory_space<vmem>>, vector<1x8x1x256xbf16>,
    %cst_11 = arith.constant 0.000000e+00 : bf16
    %6 = vector.broadcast %cst_11 : bf16 to vector<1x8x1x256xbf16>
    %c0_12 = arith.constant 0 : index
    %c1_13 = arith.constant 1 : index
    %c9_14 = arith.constant 9 : index
    %c0_15 = arith.constant 0 : index
    %7 = vector.load %arg9[%c0_12, %c1_13, %c9_14, %c0_15] : memref<1x10x16x256xbf16, #tpu.memory_space<vmem>>, vector<1x8x1x256xbf16>
    tpu.vector_store %arg9[%c0_12, %c1_13, %c9_14, %c0_15], %6 {strides = array<i32>} : memref<1x10x16x256xbf16, #tpu.memory_space<vmem>>, vector<1x8x1x256xbf16>,
    %c0_16 = arith.constant 0 : index
    %c0_17 = arith.constant 0 : index
    %c0_18 = arith.constant 0 : index
    %c0_19 = arith.constant 0 : index
    %8 = vector.load %arg1[%c0_16, %c0_17, %c0_18, %c0_19] : memref<1x8x8x512xf32, #tpu.memory_space<vmem>>, vector<1x8x8x512xf32>
    %9 = vector.shape_cast %8 : vector<1x8x8x512xf32> to vector<64x512xf32>
    %10 = arith.truncf %9 : vector<64x512xf32> to vector<64x512xbf16>
    %c0_20 = arith.constant 0 : index
    %c0_21 = arith.constant 0 : index
    %11 = vector.load %arg2[%c0_20, %c0_21] : memref<512x256xbf16, #tpu.memory_space<vmem>>, vector<512x256xbf16>
    %cst_22 = arith.constant dense<0.000000e+00> : vector<64x256xf32>
    %12 = tpu.matmul %10, %11, %cst_22 {dimension_numbers = #tpu.dot_dimension_numbers<[1], [0], [0], [1], [0, 0, 1, 1], [], []>} : vector<64x512xbf16>, vector<512x256xbf16>, vector<64x256xf32> -> vector<64x256xf32>
    %c0_23 = arith.constant 0 : index
    %c0_24 = arith.constant 0 : index
    %13 = vector.load %arg3[%c0_23, %c0_24] : memref<1x256xf32, #tpu.memory_space<vmem>>, vector<1x256xf32>
    %14 = vector.broadcast %13 : vector<1x256xf32> to vector<64x256xf32>
    %15 = arith.addf %12, %14 : vector<64x256xf32>
    %cst_25 = arith.constant 0.000000e+00 : f32
    %16 = vector.broadcast %cst_25 : f32 to vector<64x256xf32>
    %17 = arith.maximumf %15, %16 : vector<64x256xf32>
    %18 = arith.truncf %17 : vector<64x256xf32> to vector<64x256xbf16>
    %19 = vector.shape_cast %18 : vector<64x256xbf16> to vector<1x8x8x256xbf16>
    %c0_26 = arith.constant 0 : index
    %c1_27 = arith.constant 1 : index
    %c1_28 = arith.constant 1 : index
    %c0_29 = arith.constant 0 : index
    %20 = vector.load %arg9[%c0_26, %c1_27, %c1_28, %c0_29] : memref<1x10x16x256xbf16, #tpu.memory_space<vmem>>, vector<1x8x8x256xbf16>
    tpu.vector_store %arg9[%c0_26, %c1_27, %c1_28, %c0_29], %19 {strides = array<i32>} : memref<1x10x16x256xbf16, #tpu.memory_space<vmem>>, vector<1x8x8x256xbf16>,
    %c0_30 = arith.constant 0 : index
    %c0_31 = arith.constant 0 : index
    %c0_32 = arith.constant 0 : index
    %c0_33 = arith.constant 0 : index
    %21 = vector.load %arg9[%c0_30, %c0_31, %c0_32, %c0_33] : memref<1x10x16x256xbf16, #tpu.memory_space<vmem>>, vector<1x8x8x256xbf16>
    %c0_34 = arith.constant 0 : index
    %c0_35 = arith.constant 0 : index
    %c1_36 = arith.constant 1 : index
    %c0_37 = arith.constant 0 : index
    %22 = vector.load %arg9[%c0_34, %c0_35, %c1_36, %c0_37] : memref<1x10x16x256xbf16, #tpu.memory_space<vmem>>, vector<1x8x8x256xbf16>
    %c0_38 = arith.constant 0 : index
    %c0_39 = arith.constant 0 : index
    %c2 = arith.constant 2 : index
    %c0_40 = arith.constant 0 : index
    %23 = vector.load %arg9[%c0_38, %c0_39, %c2, %c0_40] : memref<1x10x16x256xbf16, #tpu.memory_space<vmem>>, vector<1x8x8x256xbf16>
    %24 = tpu.concatenate %21, %22, %23 in 3 : vector<1x8x8x256xbf16>, vector<1x8x8x256xbf16>, vector<1x8x8x256xbf16> -> vector<1x8x8x768xbf16>
    %25 = vector.shape_cast %24 : vector<1x8x8x768xbf16> to vector<64x768xbf16>
    %c0_41 = arith.constant 0 : index
    %c0_42 = arith.constant 0 : index
    %c0_43 = arith.constant 0 : index
    %26 = vector.load %arg4[%c0_41, %c0_42, %c0_43] : memref<3x768x256xbf16, #tpu.memory_space<vmem>>, vector<1x768x256xbf16>
    %27 = vector.shape_cast %26 : vector<1x768x256xbf16> to vector<768x256xbf16>
    %cst_44 = arith.constant dense<0.000000e+00> : vector<64x256xf32>
    %28 = tpu.matmul %25, %27, %cst_44 {dimension_numbers = #tpu.dot_dimension_numbers<[1], [0], [0], [1], [0, 0, 1, 1], [], []>} : vector<64x768xbf16>, vector<768x256xbf16>, vector<64x256xf32> -> vector<64x256xf32>
    %c0_45 = arith.constant 0 : index
    %c1_46 = arith.constant 1 : index
    %c0_47 = arith.constant 0 : index
    %c0_48 = arith.constant 0 : index
    %29 = vector.load %arg9[%c0_45, %c1_46, %c0_47, %c0_48] : memref<1x10x16x256xbf16, #tpu.memory_space<vmem>>, vector<1x8x8x256xbf16>
    %c0_49 = arith.constant 0 : index
    %c1_50 = arith.constant 1 : index
    %c1_51 = arith.constant 1 : index
    %c0_52 = arith.constant 0 : index
    %30 = vector.load %arg9[%c0_49, %c1_50, %c1_51, %c0_52] : memref<1x10x16x256xbf16, #tpu.memory_space<vmem>>, vector<1x8x8x256xbf16>
    %c0_53 = arith.constant 0 : index
    %c1_54 = arith.constant 1 : index
    %c2_55 = arith.constant 2 : index
    %c0_56 = arith.constant 0 : index
    %31 = vector.load %arg9[%c0_53, %c1_54, %c2_55, %c0_56] : memref<1x10x16x256xbf16, #tpu.memory_space<vmem>>, vector<1x8x8x256xbf16>
    %32 = tpu.concatenate %29, %30, %31 in 3 : vector<1x8x8x256xbf16>, vector<1x8x8x256xbf16>, vector<1x8x8x256xbf16> -> vector<1x8x8x768xbf16>
    %33 = vector.shape_cast %32 : vector<1x8x8x768xbf16> to vector<64x768xbf16>
    %c1_57 = arith.constant 1 : index
    %c0_58 = arith.constant 0 : index
    %c0_59 = arith.constant 0 : index
    %34 = vector.load %arg4[%c1_57, %c0_58, %c0_59] : memref<3x768x256xbf16, #tpu.memory_space<vmem>>, vector<1x768x256xbf16>
    %35 = vector.shape_cast %34 : vector<1x768x256xbf16> to vector<768x256xbf16>
    %cst_60 = arith.constant dense<0.000000e+00> : vector<64x256xf32>
    %36 = tpu.matmul %33, %35, %cst_60 {dimension_numbers = #tpu.dot_dimension_numbers<[1], [0], [0], [1], [0, 0, 1, 1], [], []>} : vector<64x768xbf16>, vector<768x256xbf16>, vector<64x256xf32> -> vector<64x256xf32>
    %37 = arith.addf %28, %36 : vector<64x256xf32>
    %c0_61 = arith.constant 0 : index
    %c2_62 = arith.constant 2 : index
    %c0_63 = arith.constant 0 : index
    %c0_64 = arith.constant 0 : index
    %38 = vector.load %arg9[%c0_61, %c2_62, %c0_63, %c0_64] : memref<1x10x16x256xbf16, #tpu.memory_space<vmem>>, vector<1x8x8x256xbf16>
    %c0_65 = arith.constant 0 : index
    %c2_66 = arith.constant 2 : index
    %c1_67 = arith.constant 1 : index
    %c0_68 = arith.constant 0 : index
    %39 = vector.load %arg9[%c0_65, %c2_66, %c1_67, %c0_68] : memref<1x10x16x256xbf16, #tpu.memory_space<vmem>>, vector<1x8x8x256xbf16>
    %c0_69 = arith.constant 0 : index
    %c2_70 = arith.constant 2 : index
    %c2_71 = arith.constant 2 : index
    %c0_72 = arith.constant 0 : index
    %40 = vector.load %arg9[%c0_69, %c2_70, %c2_71, %c0_72] : memref<1x10x16x256xbf16, #tpu.memory_space<vmem>>, vector<1x8x8x256xbf16>
    %41 = tpu.concatenate %38, %39, %40 in 3 : vector<1x8x8x256xbf16>, vector<1x8x8x256xbf16>, vector<1x8x8x256xbf16> -> vector<1x8x8x768xbf16>
    %42 = vector.shape_cast %41 : vector<1x8x8x768xbf16> to vector<64x768xbf16>
    %c2_73 = arith.constant 2 : index
    %c0_74 = arith.constant 0 : index
    %c0_75 = arith.constant 0 : index
    %43 = vector.load %arg4[%c2_73, %c0_74, %c0_75] : memref<3x768x256xbf16, #tpu.memory_space<vmem>>, vector<1x768x256xbf16>
    %44 = vector.shape_cast %43 : vector<1x768x256xbf16> to vector<768x256xbf16>
    %cst_76 = arith.constant dense<0.000000e+00> : vector<64x256xf32>
    %45 = tpu.matmul %42, %44, %cst_76 {dimension_numbers = #tpu.dot_dimension_numbers<[1], [0], [0], [1], [0, 0, 1, 1], [], []>} : vector<64x768xbf16>, vector<768x256xbf16>, vector<64x256xf32> -> vector<64x256xf32>
    %46 = arith.addf %37, %45 : vector<64x256xf32>
    %c0_77 = arith.constant 0 : index
    %c0_78 = arith.constant 0 : index
    %47 = vector.load %arg5[%c0_77, %c0_78] : memref<1x256xf32, #tpu.memory_space<vmem>>, vector<1x256xf32>
    %48 = vector.broadcast %47 : vector<1x256xf32> to vector<64x256xf32>
    %49 = arith.addf %46, %48 : vector<64x256xf32>
    %cst_79 = arith.constant 0.000000e+00 : f32
    %50 = vector.broadcast %cst_79 : f32 to vector<64x256xf32>
    %51 = arith.maximumf %49, %50 : vector<64x256xf32>
    %52 = arith.truncf %51 : vector<64x256xf32> to vector<64x256xbf16>
    %53 = vector.shape_cast %52 : vector<64x256xbf16> to vector<1x8x8x256xbf16>
    %c0_80 = arith.constant 0 : index
    %c1_81 = arith.constant 1 : index
    %c1_82 = arith.constant 1 : index
    %c0_83 = arith.constant 0 : index
    %54 = vector.load %arg9[%c0_80, %c1_81, %c1_82, %c0_83] : memref<1x10x16x256xbf16, #tpu.memory_space<vmem>>, vector<1x8x8x256xbf16>
    tpu.vector_store %arg9[%c0_80, %c1_81, %c1_82, %c0_83], %53 {strides = array<i32>} : memref<1x10x16x256xbf16, #tpu.memory_space<vmem>>, vector<1x8x8x256xbf16>,
    %c0_84 = arith.constant 0 : index
    %c0_85 = arith.constant 0 : index
    %c0_86 = arith.constant 0 : index
    %c0_87 = arith.constant 0 : index
    %55 = vector.load %arg9[%c0_84, %c0_85, %c0_86, %c0_87] : memref<1x10x16x256xbf16, #tpu.memory_space<vmem>>, vector<1x8x8x256xbf16>
    %c0_88 = arith.constant 0 : index
    %c0_89 = arith.constant 0 : index
    %c1_90 = arith.constant 1 : index
    %c0_91 = arith.constant 0 : index
    %56 = vector.load %arg9[%c0_88, %c0_89, %c1_90, %c0_91] : memref<1x10x16x256xbf16, #tpu.memory_space<vmem>>, vector<1x8x8x256xbf16>
    %c0_92 = arith.constant 0 : index
    %c0_93 = arith.constant 0 : index
    %c2_94 = arith.constant 2 : index
    %c0_95 = arith.constant 0 : index
    %57 = vector.load %arg9[%c0_92, %c0_93, %c2_94, %c0_95] : memref<1x10x16x256xbf16, #tpu.memory_space<vmem>>, vector<1x8x8x256xbf16>
    %58 = tpu.concatenate %55, %56, %57 in 3 : vector<1x8x8x256xbf16>, vector<1x8x8x256xbf16>, vector<1x8x8x256xbf16> -> vector<1x8x8x768xbf16>
    %59 = vector.shape_cast %58 : vector<1x8x8x768xbf16> to vector<64x768xbf16>
    %c0_96 = arith.constant 0 : index
    %c0_97 = arith.constant 0 : index
    %c0_98 = arith.constant 0 : index
    %60 = vector.load %arg6[%c0_96, %c0_97, %c0_98] : memref<3x768x256xbf16, #tpu.memory_space<vmem>>, vector<1x768x256xbf16>
    %61 = vector.shape_cast %60 : vector<1x768x256xbf16> to vector<768x256xbf16>
    %cst_99 = arith.constant dense<0.000000e+00> : vector<64x256xf32>
    %62 = tpu.matmul %59, %61, %cst_99 {dimension_numbers = #tpu.dot_dimension_numbers<[1], [0], [0], [1], [0, 0, 1, 1], [], []>} : vector<64x768xbf16>, vector<768x256xbf16>, vector<64x256xf32> -> vector<64x256xf32>
    %c0_100 = arith.constant 0 : index
    %c1_101 = arith.constant 1 : index
    %c0_102 = arith.constant 0 : index
    %c0_103 = arith.constant 0 : index
    %63 = vector.load %arg9[%c0_100, %c1_101, %c0_102, %c0_103] : memref<1x10x16x256xbf16, #tpu.memory_space<vmem>>, vector<1x8x8x256xbf16>
    %c0_104 = arith.constant 0 : index
    %c1_105 = arith.constant 1 : index
    %c1_106 = arith.constant 1 : index
    %c0_107 = arith.constant 0 : index
    %64 = vector.load %arg9[%c0_104, %c1_105, %c1_106, %c0_107] : memref<1x10x16x256xbf16, #tpu.memory_space<vmem>>, vector<1x8x8x256xbf16>
    %c0_108 = arith.constant 0 : index
    %c1_109 = arith.constant 1 : index
    %c2_110 = arith.constant 2 : index
    %c0_111 = arith.constant 0 : index
    %65 = vector.load %arg9[%c0_108, %c1_109, %c2_110, %c0_111] : memref<1x10x16x256xbf16, #tpu.memory_space<vmem>>, vector<1x8x8x256xbf16>
    %66 = tpu.concatenate %63, %64, %65 in 3 : vector<1x8x8x256xbf16>, vector<1x8x8x256xbf16>, vector<1x8x8x256xbf16> -> vector<1x8x8x768xbf16>
    %67 = vector.shape_cast %66 : vector<1x8x8x768xbf16> to vector<64x768xbf16>
    %c1_112 = arith.constant 1 : index
    %c0_113 = arith.constant 0 : index
    %c0_114 = arith.constant 0 : index
    %68 = vector.load %arg6[%c1_112, %c0_113, %c0_114] : memref<3x768x256xbf16, #tpu.memory_space<vmem>>, vector<1x768x256xbf16>
    %69 = vector.shape_cast %68 : vector<1x768x256xbf16> to vector<768x256xbf16>
    %cst_115 = arith.constant dense<0.000000e+00> : vector<64x256xf32>
    %70 = tpu.matmul %67, %69, %cst_115 {dimension_numbers = #tpu.dot_dimension_numbers<[1], [0], [0], [1], [0, 0, 1, 1], [], []>} : vector<64x768xbf16>, vector<768x256xbf16>, vector<64x256xf32> -> vector<64x256xf32>
    %71 = arith.addf %62, %70 : vector<64x256xf32>
    %c0_116 = arith.constant 0 : index
    %c2_117 = arith.constant 2 : index
    %c0_118 = arith.constant 0 : index
    %c0_119 = arith.constant 0 : index
    %72 = vector.load %arg9[%c0_116, %c2_117, %c0_118, %c0_119] : memref<1x10x16x256xbf16, #tpu.memory_space<vmem>>, vector<1x8x8x256xbf16>
    %c0_120 = arith.constant 0 : index
    %c2_121 = arith.constant 2 : index
    %c1_122 = arith.constant 1 : index
    %c0_123 = arith.constant 0 : index
    %73 = vector.load %arg9[%c0_120, %c2_121, %c1_122, %c0_123] : memref<1x10x16x256xbf16, #tpu.memory_space<vmem>>, vector<1x8x8x256xbf16>
    %c0_124 = arith.constant 0 : index
    %c2_125 = arith.constant 2 : index
    %c2_126 = arith.constant 2 : index
    %c0_127 = arith.constant 0 : index
    %74 = vector.load %arg9[%c0_124, %c2_125, %c2_126, %c0_127] : memref<1x10x16x256xbf16, #tpu.memory_space<vmem>>, vector<1x8x8x256xbf16>
    %75 = tpu.concatenate %72, %73, %74 in 3 : vector<1x8x8x256xbf16>, vector<1x8x8x256xbf16>, vector<1x8x8x256xbf16> -> vector<1x8x8x768xbf16>
    %76 = vector.shape_cast %75 : vector<1x8x8x768xbf16> to vector<64x768xbf16>
    %c2_128 = arith.constant 2 : index
    %c0_129 = arith.constant 0 : index
    %c0_130 = arith.constant 0 : index
    %77 = vector.load %arg6[%c2_128, %c0_129, %c0_130] : memref<3x768x256xbf16, #tpu.memory_space<vmem>>, vector<1x768x256xbf16>
    %78 = vector.shape_cast %77 : vector<1x768x256xbf16> to vector<768x256xbf16>
    %cst_131 = arith.constant dense<0.000000e+00> : vector<64x256xf32>
    %79 = tpu.matmul %76, %78, %cst_131 {dimension_numbers = #tpu.dot_dimension_numbers<[1], [0], [0], [1], [0, 0, 1, 1], [], []>} : vector<64x768xbf16>, vector<768x256xbf16>, vector<64x256xf32> -> vector<64x256xf32>
    %80 = arith.addf %71, %79 : vector<64x256xf32>
    %c0_132 = arith.constant 0 : index
    %c0_133 = arith.constant 0 : index
    %81 = vector.load %arg7[%c0_132, %c0_133] : memref<1x256xf32, #tpu.memory_space<vmem>>, vector<1x256xf32>
    %82 = vector.broadcast %81 : vector<1x256xf32> to vector<64x256xf32>
    %83 = arith.addf %80, %82 : vector<64x256xf32>
    %cst_134 = arith.constant 0.000000e+00 : f32
    %84 = vector.broadcast %cst_134 : f32 to vector<64x256xf32>
    %85 = arith.maximumf %83, %84 : vector<64x256xf32>
    %86 = vector.shape_cast %85 : vector<64x256xf32> to vector<1x64x256xf32>
    %cst_135 = arith.constant dense<0.000000e+00> : vector<1x256xf32>
    %87 = vector.multi_reduction <add>, %86, %cst_135 [1] : vector<1x64x256xf32> to vector<1x256xf32>
    %cst_136 = arith.constant 6.400000e+01 : f32
    %88 = vector.broadcast %cst_136 : f32 to vector<1x256xf32>
    %89 = arith.divf %87, %88 : vector<1x256xf32>
    %90 = vector.shape_cast %89 : vector<1x256xf32> to vector<1x1x256xf32>
    %c0_137 = arith.constant 0 : index
    %c0_138 = arith.constant 0 : index
    %c0_139 = arith.constant 0 : index
    %91 = vector.load %arg8[%c0_137, %c0_138, %c0_139] : memref<1x1x256xf32, #tpu.memory_space<vmem>>, vector<1x1x256xf32>
    tpu.vector_store %arg8[%c0_137, %c0_138, %c0_139], %90 {strides = array<i32>} : memref<1x1x256xf32, #tpu.memory_space<vmem>>, vector<1x1x256xf32>,
    return
  }
  func.func @transform_0(%arg0: i32) -> (i32, i32, i32, i32) {
    %c0_i32 = arith.constant 0 : i32
    %c0_i32_0 = arith.constant 0 : i32
    %c0_i32_1 = arith.constant 0 : i32
    %c0_i32_2 = arith.constant 0 : i32
    return %arg0, %c0_i32, %c0_i32_0, %c0_i32_1 : i32, i32, i32, i32
  }
  func.func @transform_1(%arg0: i32) -> (i32, i32) {
    %c0_i32 = arith.constant 0 : i32
    %c0_i32_0 = arith.constant 0 : i32
    %c0_i32_1 = arith.constant 0 : i32
    return %c0_i32, %c0_i32_0 : i32, i32
  }
  func.func @transform_2(%arg0: i32) -> (i32, i32) {
    %c0_i32 = arith.constant 0 : i32
    %c0_i32_0 = arith.constant 0 : i32
    %c0_i32_1 = arith.constant 0 : i32
    return %c0_i32, %c0_i32_0 : i32, i32
  }
  func.func @transform_3(%arg0: i32) -> (i32, i32, i32) {
    %c0_i32 = arith.constant 0 : i32
    %c0_i32_0 = arith.constant 0 : i32
    %c0_i32_1 = arith.constant 0 : i32
    %c0_i32_2 = arith.constant 0 : i32
    return %c0_i32, %c0_i32_0, %c0_i32_1 : i32, i32, i32
  }
  func.func @transform_4(%arg0: i32) -> (i32, i32) {
    %c0_i32 = arith.constant 0 : i32
    %c0_i32_0 = arith.constant 0 : i32
    %c0_i32_1 = arith.constant 0 : i32
    return %c0_i32, %c0_i32_0 : i32, i32
  }
  func.func @transform_5(%arg0: i32) -> (i32, i32, i32) {
    %c0_i32 = arith.constant 0 : i32
    %c0_i32_0 = arith.constant 0 : i32
    %c0_i32_1 = arith.constant 0 : i32
    %c0_i32_2 = arith.constant 0 : i32
    return %c0_i32, %c0_i32_0, %c0_i32_1 : i32, i32, i32
  }
  func.func @transform_6(%arg0: i32) -> (i32, i32) {
    %c0_i32 = arith.constant 0 : i32
    %c0_i32_0 = arith.constant 0 : i32
    %c0_i32_1 = arith.constant 0 : i32
    return %c0_i32, %c0_i32_0 : i32, i32
  }
  func.func @transform_7(%arg0: i32) -> (i32, i32, i32) {
    %c0_i32 = arith.constant 0 : i32
    %c0_i32_0 = arith.constant 0 : i32
    %c0_i32_1 = arith.constant 0 : i32
    return %arg0, %c0_i32, %c0_i32_0 : i32, i32, i32
  }
}

</mosaic_0001>

<bundles_post_ra>
// kernel: posecnn_forward.1
= control target key start
LH: loop header
LB: loop body
LE: loop exit
PB: predicated region body
PF: predicated region fallthrough
CT: control target
= control target key end

     0   :  { %s10866_s24 = smov 0   ;;  %s13053_s0 = inlined_call_operand.vmem [shape: f32[2,8,8,512], index: 0, kind: input, shape index: {}]   ;;  %s13054_s1 = inlined_call_operand.vmem [shape: bf16[512,256], index: 1, kind: input, shape index: {}]   ;;  %s13055_s2 = inlined_call_operand.vmem [shape: f32[1,256], index: 2, kind: input, shape index: {}]   ;;  %s13056_s3 = inlined_call_operand.vmem [shape: bf16[3,768,256], index: 3, kind: input, shape index: {}]   ;;  %s13057_s4 = inlined_call_operand.vmem [shape: f32[1,256], index: 4, kind: input, shape index: {}]   ;;  %s13058_s5 = inlined_call_operand.vmem [shape: bf16[3,768,256], index: 5, kind: input, shape index: {}]   ;;  %s13059_s6 = inlined_call_operand.vmem [shape: f32[1,256], index: 6, kind: input, shape index: {}]   ;;  %s13060_s7 = inlined_call_operand.vmem [shape: f32[2,1,256], index: 7, kind: output, shape index: {}]  }
   0x1 LB: > { %s8266_s25 = sadd.s32 4294967295, %s10822_s24   ;;  %p8270_p0 = scmp.ge.s32.totalorder %s10822_s24, 1  ;;  %s10822_s24 = sphi %s10866_s24, %s17_s24  }
   0x2   : > { %p237_p1 = scmp.lt.s32.totalorder %s10822_s24, 3 }
   0x4   : > { %p238_p2 = pnand %p8270_p0, %p237_p1 }
   0x5   : > { %v9807_v0 = vld [vmem:[%s13054_s1 + $0x4] ss:$8 sps:$4 sm:$0xff] (!%p238_p2)   ;;  %v9811_v2 = vld [vmem:[%s13054_s1] ss:$8 sps:$4 sm:$0xff] (!%p238_p2)   ;;  %v9813_v4 = vld [vmem:[%s13054_s1 + $0x14] ss:$8 sps:$4 sm:$0xff] (!%p238_p2)  }
   0x6   : > { %241 = sbr.rel (%p238_p2) target bundleno = 1841 (0x731), region = 48  ;;  %v9809_v1 = vld [vmem:[%s13054_s1 + $0x104] ss:$8 sps:$4 sm:$0xff] (!%p238_p2)   ;;  %830 = vmatprep.subr.bf16.mxu1 (!%p238_p2), %v9807_v0  ;;  %v9812_v3 = vld [vmem:[%s13054_s1 + $0x100] ss:$8 sps:$4 sm:$0xff] (!%p238_p2)   ;;  %p268_p3 = scmp.lt.s32.totalorder (!%p238_p2), %s8266_s25, 1 }
   0x7   : > { %903 = vmatprep.subr.bf16.mxu0 (!%p238_p2), %v9809_v1  ;;  %831 = vmatpush1.bf16.msra.mxu1 (!%p238_p2), %v9811_v2  ;;  %v9815_v5 = vld [vmem:[%s13054_s1 + $0x114] ss:$8 sps:$4 sm:$0xff] (!%p238_p2)   ;;  %v9817_v6 = vld [vmem:[%s13054_s1 + $0x10] ss:$8 sps:$4 sm:$0xff] (!%p238_p2)   ;;  %v9819_v8 = vld [vmem:[%s13054_s1 + $0x24] ss:$8 sps:$4 sm:$0xff] (!%p238_p2)  }
   0x8   : > { %904 = vmatpush1.bf16.msra.mxu0 (!%p238_p2), %v9812_v3  ;;  %832 = vmatprep.subr.bf16.mxu1 (!%p238_p2), %v9813_v4  ;;  %v9818_v7 = vld [vmem:[%s13054_s1 + $0x110] ss:$8 sps:$4 sm:$0xff] (!%p238_p2)   ;;  %v9821_v9 = vld [vmem:[%s13054_s1 + $0x124] ss:$8 sps:$4 sm:$0xff] (!%p238_p2)   ;;  %v9823_v10 = vld [vmem:[%s13054_s1 + $0x20] ss:$8 sps:$4 sm:$0xff] (!%p238_p2)  }
   0x9   : > { %905 = vmatprep.subr.bf16.mxu0 (!%p238_p2), %v9815_v5  ;;  %v9824_v11 = vld [vmem:[%s13054_s1 + $0x120] ss:$8 sps:$4 sm:$0xff] (!%p238_p2)   ;;  %v9825_v12 = vld [vmem:[%s13054_s1 + $0x34] ss:$8 sps:$4 sm:$0xff] (!%p238_p2)   ;;  %v9829_v14 = vld [vmem:[%s13054_s1 + $0x30] ss:$8 sps:$4 sm:$0xff] (!%p238_p2)  }
   0xa   : > { %v9827_v13 = vld [vmem:[%s13054_s1 + $0x134] ss:$8 sps:$4 sm:$0xff] (!%p238_p2)   ;;  %v9830_v15 = vld [vmem:[%s13054_s1 + $0x130] ss:$8 sps:$4 sm:$0xff] (!%p238_p2)   ;;  %v9831_v16 = vld [vmem:[%s13054_s1 + $0x44] ss:$8 sps:$4 sm:$0xff] (!%p238_p2)  }
   0xb   : > { %833 = vmatpush1.bf16.msra.mxu1 (!%p238_p2), %v9817_v6  ;;  %v9833_v17 = vld [vmem:[%s13054_s1 + $0x144] ss:$8 sps:$4 sm:$0xff] (!%p238_p2)   ;;  %v9835_v18 = vld [vmem:[%s13054_s1 + $0x40] ss:$8 sps:$4 sm:$0xff] (!%p238_p2)   ;;  %v9837_v20 = vld [vmem:[%s13054_s1 + $0x54] ss:$8 sps:$4 sm:$0xff] (!%p238_p2)  }
   0xc   : > { %906 = vmatpush1.bf16.msra.mxu0 (!%p238_p2), %v9818_v7  ;;  %834 = vmatprep.subr.bf16.mxu1 (!%p238_p2), %v9819_v8  ;;  %v9836_v19 = vld [vmem:[%s13054_s1 + $0x140] ss:$8 sps:$4 sm:$0xff] (!%p238_p2)   ;;  %v9839_v21 = vld [vmem:[%s13054_s1 + $0x154] ss:$8 sps:$4 sm:$0xff] (!%p238_p2)   ;;  %v9841_v22 = vld [vmem:[%s13054_s1 + $0x50] ss:$8 sps:$4 sm:$0xff] (!%p238_p2)  }
   0xd   : > { %907 = vmatprep.subr.bf16.mxu0 %v9821_v9  ;;  %v9842_v23 = vld [vmem:[%s13054_s1 + $0x150] ss:$8 sps:$4 sm:$0xff]   ;;  %v9843_v24 = vld [vmem:[%s13054_s1 + $0x64] ss:$8 sps:$4 sm:$0xff]   ;;  %v9847_v26 = vld [vmem:[%s13054_s1 + $0x60] ss:$8 sps:$4 sm:$0xff]  }
   0xe   : > { %v9845_v25 = vld [vmem:[%s13054_s1 + $0x164] ss:$8 sps:$4 sm:$0xff]   ;;  %v9848_v27 = vld [vmem:[%s13054_s1 + $0x160] ss:$8 sps:$4 sm:$0xff]   ;;  %v9849_v28 = vld [vmem:[%s13054_s1 + $0x74] ss:$8 sps:$4 sm:$0xff]  }
   0xf   : > { %835 = vmatpush1.bf16.msra.mxu1 %v9823_v10  ;;  %v9851_v29 = vld [vmem:[%s13054_s1 + $0x174] ss:$8 sps:$4 sm:$0xff]   ;;  %v9853_v30 = vld [vmem:[%s13054_s1 + $0x70] ss:$8 sps:$4 sm:$0xff]   ;;  %v9855_v32 = vld [vmem:[%s13054_s1 + $0x84] ss:$8 sps:$4 sm:$0xff]  }
  0x10   : > { %908 = vmatpush1.bf16.msra.mxu0 %v9824_v11  ;;  %836 = vmatprep.subr.bf16.mxu1 %v9825_v12  ;;  %v9854_v31 = vld [vmem:[%s13054_s1 + $0x170] ss:$8 sps:$4 sm:$0xff]   ;;  %v9857_v33 = vld [vmem:[%s13054_s1 + $0x184] ss:$8 sps:$4 sm:$0xff]   ;;  %v9859_v34 = vld [vmem:[%s13054_s1 + $0x80] ss:$8 sps:$4 sm:$0xff]  }
  0x11   : > { %909 = vmatprep.subr.bf16.mxu0 %v9827_v13  ;;  %v9860_v35 = vld [vmem:[%s13054_s1 + $0x180] ss:$8 sps:$4 sm:$0xff]   ;;  %v9861_v36 = vld [vmem:[%s13054_s1 + $0x94] ss:$8 sps:$4 sm:$0xff]   ;;  %s13068_s25 = smov (!%p268_p3, %s8266_s25), 1  ;;  %vm284_vm0 = vcmask 1040384  }
  0x12   : > { %v9863_v37 = vld [vmem:[%s13054_s1 + $0x194] ss:$8 sps:$4 sm:$0xff]   ;;  %v9865_v38 = vld [vmem:[%s13054_s1 + $0x90] ss:$8 sps:$4 sm:$0xff]   ;;  %v9867_v40 = vld [vmem:[%s13054_s1 + $0xa4] ss:$8 sps:$4 sm:$0xff]  }
  0x13   : > { %837 = vmatpush1.bf16.msra.mxu1 %v9829_v14  ;;  %v9866_v39 = vld [vmem:[%s13054_s1 + $0x190] ss:$8 sps:$4 sm:$0xff]   ;;  %s9476_s22 = sshll.u32 %s13068_s25, 8  ;;  %v9869_v41 = vld [vmem:[%s13054_s1 + $0x1a4] ss:$8 sps:$4 sm:$0xff]   ;;  %vm335_vm2 = vcmask 1044484  }
  0x14   : > { %910 = vmatpush1.bf16.msra.mxu0 %v9830_v15  ;;  %838 = vmatprep.subr.bf16.mxu1 %v9831_v16  ;;  %v9871_v42 = vld [vmem:[%s13054_s1 + $0xa0] ss:$8 sps:$4 sm:$0xff]   ;;  %s11016_s10 = scalar_lea.vmem %s13053_s0, %s9476_s22  ;;  %v9873_v44 = vld [vmem:[%s13054_s1 + $0xb4] ss:$8 sps:$4 sm:$0xff]   ;;  %v9877_v50 = vld [vmem:[%s13054_s1 + $0xb0] ss:$8 sps:$4 sm:$0xff]  }
  0x15   : > { %911 = vmatprep.subr.bf16.mxu0 %v9833_v17  ;;  %v9872_v43 = vld [vmem:[%s13054_s1 + $0x1a0] ss:$8 sps:$4 sm:$0xff]   ;;  %v9875_v45 = vld [vmem:[%s13054_s1 + $0x1b4] ss:$8 sps:$4 sm:$0xff]   ;;  %v9878_v51 = vld [vmem:[%s13054_s1 + $0x1b0] ss:$8 sps:$4 sm:$0xff]  }
  0x16   : > { %v387_v46 = vld [vmem:[%s11016_s10 + $0x8] sm:$0xff]  ;;  %v389_v48 = vld [vmem:[%s11016_s10 + $0x18] sm:$0xff]  ;;  %v386_v6 = vld [vmem:[%s11016_s10] sm:$0xff]  ;;  %vm285_vm1 = vsmask.f32 256  ;;  %vm1168_vm6 = vcmask 1044480  }
  0x17   : > { %839 = vmatpush1.bf16.msra.mxu1 %v9835_v18  ;;  %v391_v47 = vld [vmem:[%s11016_s10 + $0x28] sm:$0xff]  ;;  %v393_v49 = vld [vmem:[%s11016_s10 + $0x38] sm:$0xff]  ;;  %v390_v7 = vld [vmem:[%s11016_s10 + $0x20] sm:$0xff]  ;;  %vm336_vm4 = vsmask.f32 7954  ;;  %s8273_s15 = sshll.u32 %s13068_s25, 1 }
  0x18   : > { %912 = vmatpush1.bf16.msra.mxu0 %v9836_v19  ;;  %840 = vmatprep.subr.bf16.mxu1 %v9837_v20  ;;  %v419_v52 = vpack.c.bf16 %v391_v47, %v387_v46  ;;  %v421_v53 = vpack.c.bf16 %v393_v49, %v389_v48  ;;  %v9879_v54 = vld [vmem:[%s13054_s1 + $0xc4] ss:$8 sps:$4 sm:$0xff]   ;;  %v9883_v56 = vld [vmem:[%s13054_s1 + $0xc0] ss:$8 sps:$4 sm:$0xff]   ;;  %v9885_v58 = vld [vmem:[%s13054_s1 + $0xd4] ss:$8 sps:$4 sm:$0xff]   ;;  %v418_v15 = vpack.c.bf16 %v390_v7, %v386_v6  ;;  %s276_s18 = scalar_lea.vmem %s13060_s7, %s8273_s15 }
  0x19   : > { %913 = vmatprep.subr.bf16.mxu0 %v9839_v21  ;;  %v9881_v55 = vld [vmem:[%s13054_s1 + $0x1c4] ss:$8 sps:$4 sm:$0xff]   ;;  %v9884_v57 = vld [vmem:[%s13054_s1 + $0x1c0] ss:$8 sps:$4 sm:$0xff]   ;;  %v9887_v59 = vld [vmem:[%s13054_s1 + $0x1d4] ss:$8 sps:$4 sm:$0xff]  }
  0x1a   : > { %862 = vmatprep.mubr.bf16.mxu1 %v419_v52  ;;  %935 = vmatprep.mubr.bf16.mxu0 %v421_v53  ;;  %v9889_v60 = vld [vmem:[%s13054_s1 + $0xd0] ss:$8 sps:$4 sm:$0xff]   ;;  %v9891_v62 = vld [vmem:[%s13054_s1 + $0xe4] ss:$8 sps:$4 sm:$0xff]   ;;  %v9895_v0 = vld [vmem:[%s13054_s1 + $0xe0] ss:$8 sps:$4 sm:$0xff]  }
  0x1b   : > { %841 = vmatpush1.bf16.msra.mxu1 %v9841_v22  ;;  %v9890_v61 = vld [vmem:[%s13054_s1 + $0x1d0] ss:$8 sps:$4 sm:$0xff]   ;;  %v9893_v63 = vld [vmem:[%s13054_s1 + $0x1e4] ss:$8 sps:$4 sm:$0xff]   ;;  %v9896_v1 = vld [vmem:[%s13054_s1 + $0x1e0] ss:$8 sps:$4 sm:$0xff]  }
  0x1c   : > { %914 = vmatpush1.bf16.msra.mxu0 %v9842_v23  ;;  %842 = vmatprep.subr.bf16.mxu1 %v9843_v24  ;;  %v9897_v2 = vld [vmem:[%s13054_s1 + $0xf4] ss:$8 sps:$4 sm:$0xff]   ;;  %v9901_v4 = vld [vmem:[%s13054_s1 + $0xf0] ss:$8 sps:$4 sm:$0xff]   ;;  %v395_v10 = vld [vmem:[%s11016_s10 + $0x48] sm:$0xff] }
  0x1d   : > { %915 = vmatprep.subr.bf16.mxu0 %v9845_v25  ;;  %v9899_v3 = vld [vmem:[%s13054_s1 + $0x1f4] ss:$8 sps:$4 sm:$0xff]   ;;  %v9902_v5 = vld [vmem:[%s13054_s1 + $0x1f0] ss:$8 sps:$4 sm:$0xff]   ;;  %v399_v11 = vld [vmem:[%s11016_s10 + $0x68] sm:$0xff] }
  0x1e   : > { %v388_v8 = vld [vmem:[%s11016_s10 + $0x10] sm:$0xff]  ;;  %v397_v12 = vld [vmem:[%s11016_s10 + $0x58] sm:$0xff]  ;;  %v9905_v14 = vld [vmem:[%s13056_s3 + $0x304] ss:$8 sps:$4 sm:$0xff]   ;;  %v423_v17 = vpack.c.bf16 %v399_v11, %v395_v10  ;;  %vm1169_vm7 = vsmask.f32 4354 }
  0x1f   : > { %843 = vmatpush1.bf16.msra.mxu1 %v9847_v26  ;;  %v392_v9 = vld [vmem:[%s11016_s10 + $0x30] sm:$0xff]  ;;  %v401_v13 = vld [vmem:[%s11016_s10 + $0x78] sm:$0xff]  ;;  %v9903_v19 = vld [vmem:[%s13056_s3 + $0x300] ss:$8 sps:$4 sm:$0xff]  }
  0x20   : > { %916 = vmatpush1.bf16.msra.mxu0 %v9848_v27  ;;  %844 = vmatprep.subr.bf16.mxu1 %v9849_v28  ;;  %v420_v16 = vpack.c.bf16 %v392_v9, %v388_v8  ;;  %v425_v18 = vpack.c.bf16 %v401_v13, %v397_v12  ;;  %v9908_v20 = vld [vmem:[%s13056_s3 + $0x314] ss:$8 sps:$4 sm:$0xff]   ;;  %v394_v21 = vld [vmem:[%s11016_s10 + $0x40] sm:$0xff]  ;;  %v403_v25 = vld [vmem:[%s11016_s10 + $0x88] sm:$0xff] }
  0x21   : > { %917 = vmatprep.subr.bf16.mxu0 %v9851_v29  ;;  %v398_v22 = vld [vmem:[%s11016_s10 + $0x60] sm:$0xff]  ;;  %v396_v23 = vld [vmem:[%s11016_s10 + $0x50] sm:$0xff]  ;;  %v407_v26 = vld [vmem:[%s11016_s10 + $0xa8] sm:$0xff] }
  0x22   : > { %v400_v24 = vld [vmem:[%s11016_s10 + $0x70] sm:$0xff]  ;;  %v405_v27 = vld [vmem:[%s11016_s10 + $0x98] sm:$0xff]  ;;  %v9917_v46 = vld [vmem:[%s13056_s3 + $0x344] ss:$8 sps:$4 sm:$0xff]  }
  0x23   : > { %845 = vmatpush1.bf16.msra.mxu1 %v9853_v30  ;;  %v409_v28 = vld [vmem:[%s11016_s10 + $0xb8] sm:$0xff]  ;;  %v9911_v30 = vld [vmem:[%s13056_s3 + $0x324] ss:$8 sps:$4 sm:$0xff]   ;;  %v9915_v49 = vld [vmem:[%s13056_s3 + $0x340] ss:$8 sps:$4 sm:$0xff]  }
  0x24   : > { %918 = vmatpush1.bf16.msra.mxu0 %v9854_v31  ;;  %846 = vmatprep.subr.bf16.mxu1 %v9855_v32  ;;  %v9906_v29 = vld [vmem:[%s13056_s3 + $0x310] ss:$8 sps:$4 sm:$0xff]   ;;  %v422_v31 = vpack.c.bf16 %v398_v22, %v394_v21  ;;  %v424_v32 = vpack.c.bf16 %v400_v24, %v396_v23  ;;  %v9920_v52 = vld [vmem:[%s13056_s3 + $0x354] ss:$8 sps:$4 sm:$0xff]   ;;  %v410_v53 = vld [vmem:[%s11016_s10 + $0xc0] sm:$0xff] }
  0x25   : > { %919 = vmatprep.subr.bf16.mxu0 %v9857_v33  ;;  %v9909_v33 = vld [vmem:[%s13056_s3 + $0x320] ss:$8 sps:$4 sm:$0xff]   ;;  %vm11170_vm3 = vmand %vm284_vm0, %vm285_vm1  ;;  %v338_v6 = vld [vmem:[#allocation2 + $0x10] sm:$0x10] }
  0x26   : > { %v9935_v7 = vld [vmem:[%s13056_s3 + $0x3a4] ss:$8 sps:$4 sm:$0xff]   ;;  %vm11179_vm5 = vmand %vm335_vm2, %vm336_vm4  ;;  %v9933_v10 = vld [vmem:[%s13056_s3 + $0x3a0] ss:$8 sps:$4 sm:$0xff]  }
  0x27   : > { %847 = vmatpush1.bf16.msra.mxu1 %v9859_v34  ;;  %v427_v34 = vpack.c.bf16 %v407_v26, %v403_v25  ;;  %v339_v11 = vsel %vm11179_vm5, 0, %v338_v6  ;;  %v290_v12 = vld [vmem:[#allocation2 + $0x18] sm:$0x1]  ;;  %v341_v13 = vld [vmem:[#allocation2 + $0x18] sm:$0x10]  ;;  %vm11307_vm8 = vmand %vm1168_vm6, %vm1169_vm7 }
  0x28   : > { %920 = vmatpush1.bf16.msra.mxu0 %v9860_v35  ;;  %848 = vmatprep.subr.bf16.mxu1 %v9861_v36  ;;  %v429_v35 = vpack.c.bf16 %v409_v28, %v405_v27  ;;  %v9914_v36 = vld [vmem:[%s13056_s3 + $0x334] ss:$8 sps:$4 sm:$0xff]   ;;  %340 = vst [vmem:[#allocation2 + $0x10] sm:$0x10] %v339_v11  ;;  %v296_v21 = vld [vmem:[#allocation2 + $0x28] sm:$0x1] }
  0x29   : > { %921 = vmatprep.subr.bf16.mxu0 %v9863_v37  ;;  %v402_v37 = vld [vmem:[%s11016_s10 + $0x80] sm:$0xff]  ;;  %v347_v22 = vld [vmem:[#allocation2 + $0x28] sm:$0x10]  ;;  %v297_v23 = vsel %vm11170_vm3, 0, %v296_v21  ;;  %v9936_v25 = vld [vmem:[%s13056_s3 + $0x3b0] ss:$8 sps:$4 sm:$0xff]  }
  0x2a   : > { %v348_v24 = vsel %vm11179_vm5, 0, %v347_v22  ;;  %298 = vst [vmem:[#allocation2 + $0x28] sm:$0x1] %v297_v23  ;;  %v9941_v26 = vld [vmem:[%s13056_s3 + $0x3c4] ss:$8 sps:$4 sm:$0xff]   ;;  %v10824_v21 = vmov 0   ;;  %v500_v22 = vlaneseq }
  0x2b   : > { %849 = vmatpush1.bf16.msra.mxu1 %v9865_v38  ;;  %v406_v38 = vld [vmem:[%s11016_s10 + $0xa0] sm:$0xff]  ;;  %349 = vst [vmem:[#allocation2 + $0x28] sm:$0x10] %v348_v24  ;;  %v299_v28 = vld [vmem:[#allocation2 + $0x30] sm:$0x1]  ;;  %279 = vst [vmem:[#allocation2 + $0x8] sm:$0xff] %v10824_v21 }
  0x2c   : > { %922 = vmatpush1.bf16.msra.mxu0 %v9866_v39  ;;  %850 = vmatprep.subr.bf16.mxu1 %v9867_v40  ;;  %v404_v39 = vld [vmem:[%s11016_s10 + $0x90] sm:$0xff]  ;;  %v426_v47 = vpack.c.bf16 %v406_v38, %v402_v37  ;;  %v9939_v27 = vld [vmem:[%s13056_s3 + $0x3c0] ss:$8 sps:$4 sm:$0xff]   ;;  %v356_v38 = vld [vmem:[#allocation2 + $0x40] sm:$0x10]  ;;  %278 = vst [vmem:[#allocation2] sm:$0xff] %v10824_v21 }
  0x2d   : > { %923 = vmatprep.subr.bf16.mxu0 %v9869_v41  ;;  %v408_v40 = vld [vmem:[%s11016_s10 + $0xb0] sm:$0xff]  ;;  %v411_v41 = vld [vmem:[%s11016_s10 + $0xc8] sm:$0xff]  ;;  %v305_v37 = vld [vmem:[#allocation2 + $0x40] sm:$0x1]  ;;  %281 = vst [vmem:[#allocation2 + $0x90] sm:$0xff] %v10824_v21  ;;  %v11282_v23 = vshrl.u32 %v500_v22, 7 }
  0x2e   : > { %v428_v48 = vpack.c.bf16 %v408_v40, %v404_v39  ;;  %v306_v40 = vsel %vm11170_vm3, 0, %v305_v37  ;;  %282 = vst [vmem:[#allocation2 + $0x98] sm:$0xff] %v10824_v21  ;;  %vm8210_vm9 = vcmp.lt.s32.totalorder %v500_v22, 256 }
  0x2f   : > { %851 = vmatpush1.bf16.msra.mxu1 %v9871_v42  ;;  %v415_v42 = vld [vmem:[%s11016_s10 + $0xe8] sm:$0xff]  ;;  %307 = vst [vmem:[#allocation2 + $0x40] sm:$0x1] %v306_v40  ;;  %v11288_v24 = vsub.s32 0, %v11282_v23  ;;  %v11291_v9 = vsub.s32 1, %v11282_v23 }
  0x30   : > { %924 = vmatpush1.bf16.msra.mxu0 %v9872_v43  ;;  %852 = vmatprep.subr.bf16.mxu1 %v9873_v44  ;;  %v413_v43 = vld [vmem:[%s11016_s10 + $0xd8] sm:$0xff] }
  0x31   : > { %925 = vmatprep.subr.bf16.mxu0 %v9875_v45  ;;  %v417_v44 = vld [vmem:[%s11016_s10 + $0xf8] sm:$0xff] }
  0x32   : > { %v9912_v45 = vld [vmem:[%s13056_s3 + $0x330] ss:$8 sps:$4 sm:$0xff]  }
  0x33   : > { %853 = vmatpush1.bf16.msra.mxu1 %v9877_v50  ;;  %v431_v50 = vpack.c.bf16 %v415_v42, %v411_v41  ;;  %v357_v41 = vsel %vm11179_vm5, 0, %v356_v38  ;;  %v359_v42 = vld [vmem:[#allocation2 + $0x48] sm:$0x10] }
  0x34   : > { %926 = vmatpush1.bf16.msra.mxu0 %v9878_v51  ;;  %854 = vmatprep.subr.bf16.mxu1 %v9879_v54  ;;  %v433_v51 = vpack.c.bf16 %v417_v44, %v413_v43  ;;  %v414_v54 = vld [vmem:[%s11016_s10 + $0xe0] sm:$0xff]  ;;  %v9942_v43 = vld [vmem:[%s13056_s3 + $0x3d0] ss:$8 sps:$4 sm:$0xff]   ;;  %358 = vst [vmem:[#allocation2 + $0x40] sm:$0x10] %v357_v41  ;;  %v360_v44 = vsel %vm11179_vm5, 0, %v359_v42 }
  0x35   : > { %927 = vmatprep.subr.bf16.mxu0 %v9881_v55  ;;  %v412_v55 = vld [vmem:[%s11016_s10 + $0xd0] sm:$0xff]  ;;  %361 = vst [vmem:[#allocation2 + $0x48] sm:$0x10] %v360_v44 }
  0x37   : > { %855 = vmatpush1.bf16.msra.mxu1 %v9883_v56  ;;  %v416_v56 = vld [vmem:[%s11016_s10 + $0xf0] sm:$0xff] }
  0x38   : > { %928 = vmatpush1.bf16.msra.mxu0 %v9884_v57  ;;  %856 = vmatprep.subr.bf16.mxu1 %v9885_v58  ;;  %v9918_v57 = vld [vmem:[%s13056_s3 + $0x350] ss:$8 sps:$4 sm:$0xff]   ;;  %v9923_v58 = vld [vmem:[%s13056_s3 + $0x364] ss:$8 sps:$4 sm:$0xff]  }
  0x39   : > { %929 = vmatprep.subr.bf16.mxu0 %v9887_v59  ;;  %v430_v59 = vpack.c.bf16 %v414_v54, %v410_v53 }
  0x3b   : > { %857 = vmatpush1.bf16.msra.mxu1 %v9889_v60  ;;  %v432_v60 = vpack.c.bf16 %v416_v56, %v412_v55  ;;  %v9948_v55 = vld [vmem:[%s13056_s3 + $0x3f0] ss:$8 sps:$4 sm:$0xff]   ;;  %v365_v56 = vld [vmem:[#allocation2 + $0x58] sm:$0x10] }
  0x3c   : > { %930 = vmatpush1.bf16.msra.mxu0 %v9890_v61  ;;  %858 = vmatprep.subr.bf16.mxu1 %v9891_v62  ;;  %v9921_v61 = vld [vmem:[%s13056_s3 + $0x360] ss:$8 sps:$4 sm:$0xff]   ;;  %v9926_v62 = vld [vmem:[%s13056_s3 + $0x374] ss:$8 sps:$4 sm:$0xff]  }
  0x3d   : > { %931 = vmatprep.subr.bf16.mxu0 %v9893_v63  ;;  %v9924_v63 = vld [vmem:[%s13056_s3 + $0x370] ss:$8 sps:$4 sm:$0xff]  }
  0x3f   : > { %859 = vmatpush1.bf16.msra.mxu1 %v9895_v0  ;;  %v9929_v0 = vld [vmem:[%s13056_s3 + $0x384] ss:$8 sps:$4 sm:$0xff]  }
  0x40   : > { %932 = vmatpush1.bf16.msra.mxu0 %v9896_v1  ;;  %860 = vmatprep.subr.bf16.mxu1 %v9897_v2  ;;  %v9927_v1 = vld [vmem:[%s13056_s3 + $0x380] ss:$8 sps:$4 sm:$0xff]   ;;  %v9932_v2 = vld [vmem:[%s13056_s3 + $0x394] ss:$8 sps:$4 sm:$0xff]  }
  0x41   : > { %933 = vmatprep.subr.bf16.mxu0 %v9899_v3  ;;  %v9930_v3 = vld [vmem:[%s13056_s3 + $0x390] ss:$8 sps:$4 sm:$0xff]  }
  0x43   : > { %861 = vmatpush1.bf16.msra.mxu1 %v9901_v4  ;;  %v287_v4 = vld [vmem:[#allocation2 + $0x10] sm:$0x1] }
  0x44   : > { %934 = vmatpush1.bf16.msra.mxu0 %v9902_v5  ;;  %2452 = vmatprep.subr.bf16.mxu1 %v9905_v14  ;;  %v288_v8 = vsel %vm11170_vm3, 0, %v287_v4  ;;  %v9938_v14 = vld [vmem:[%s13056_s3 + $0x3b4] ss:$8 sps:$4 sm:$0xff]   ;;  %v498_v5 = vld [vmem:[%s13055_s2] sm:$0x3] }
  0x45   : > { %289 = vst [vmem:[#allocation2 + $0x10] sm:$0x1] %v288_v8  ;;  %v374_v4 = vld [vmem:[#allocation2 + $0x70] sm:$0x10]  ;;  %v326_v8 = vld [vmem:[#allocation2 + $0x78] sm:$0x1] }
  0x46   : > { %863 = vmatmul.mubr.bf16.vlgmr.msra.gmra.mrb[0].mxu1 %v418_v15  ;;  %v291_v15 = vsel %vm11170_vm3, 0, %v290_v12  ;;  %v327_v11 = vsel %vm11170_vm3, 0, %v326_v8 }
  0x47   : > { %936 = vmatmul.mubr.bf16.vlgmr.msra.gmra.mrb[0].mxu0 %v420_v16  ;;  %872 = vmatprep.mubr.bf16.mxu1 %v423_v17  ;;  %v342_v16 = vsel %vm11179_vm5, 0, %v341_v13  ;;  %v293_v17 = vld [vmem:[#allocation2 + $0x20] sm:$0x1]  ;;  %292 = vst [vmem:[#allocation2 + $0x18] sm:$0x1] %v291_v15 }
  0x48   : > { %945 = vmatprep.mubr.bf16.mxu0 %v425_v18  ;;  %2453 = vmatpush1.bf16.msra.mxu1 %v9903_v19  ;;  %v344_v18 = vld [vmem:[#allocation2 + $0x20] sm:$0x10]  ;;  %343 = vst [vmem:[#allocation2 + $0x18] sm:$0x10] %v342_v16  ;;  %v294_v19 = vsel %vm11170_vm3, 0, %v293_v17 }
  0x49   : > { %2454 = vmatprep.subr.bf16.mxu1 %v9908_v20  ;;  %v345_v20 = vsel %vm11179_vm5, 0, %v344_v18  ;;  %295 = vst [vmem:[#allocation2 + $0x20] sm:$0x1] %v294_v19  ;;  %v329_v13 = vld [vmem:[#allocation2 + $0x80] sm:$0x1] }
  0x4a   : > { %346 = vst [vmem:[#allocation2 + $0x20] sm:$0x10] %v345_v20  ;;  %328 = vst [vmem:[#allocation2 + $0x78] sm:$0x1] %v327_v11  ;;  %v380_v15 = vld [vmem:[#allocation2 + $0x80] sm:$0x10] }
  0x4b   : > { %v381_v16 = vsel %vm11179_vm5, 0, %v380_v15  ;;  %v332_v17 = vld [vmem:[#allocation2 + $0x88] sm:$0x1]  ;;  %v383_v19 = vld [vmem:[#allocation2 + $0x88] sm:$0x10] }
  0x4c   : > { %2455 = vmatpush1.bf16.msra.mxu1 %v9906_v29  ;;  %v350_v29 = vld [vmem:[#allocation2 + $0x30] sm:$0x10]  ;;  %382 = vst [vmem:[#allocation2 + $0x80] sm:$0x10] %v381_v16  ;;  %v333_v18 = vsel %vm11170_vm3, 0, %v332_v17  ;;  %v384_v20 = vsel %vm11179_vm5, 0, %v383_v19 }
  0x4d   : > { %2456 = vmatprep.subr.bf16.mxu1 %v9911_v30  ;;  %v300_v30 = vsel %vm11170_vm3, 0, %v299_v28  ;;  %334 = vst [vmem:[#allocation2 + $0x88] sm:$0x1] %v333_v18  ;;  %385 = vst [vmem:[#allocation2 + $0x88] sm:$0x10] %v384_v20 }
  0x4e   : > { %873 = vmatmul.mubr.bf16.gmra.mrb[4].mxu1 %v422_v31  ;;  %v351_v31 = vsel %vm11179_vm5, 0, %v350_v29  ;;  %301 = vst [vmem:[#allocation2 + $0x30] sm:$0x1] %v300_v30  ;;  %v1180_v17 = vld [vmem:[#allocation2 + $0x28] sm:$0x1f] }
  0x4f   : > { %946 = vmatmul.mubr.bf16.gmra.mrb[4].mxu0 %v424_v32  ;;  %882 = vmatprep.mubr.bf16.mxu1 %v427_v34  ;;  %v302_v32 = vld [vmem:[#allocation2 + $0x38] sm:$0x1]  ;;  %352 = vst [vmem:[#allocation2 + $0x30] sm:$0x10] %v351_v31  ;;  %v353_v34 = vld [vmem:[#allocation2 + $0x38] sm:$0x10] }
  0x50   : > { %955 = vmatprep.mubr.bf16.mxu0 %v429_v35  ;;  %2457 = vmatpush1.bf16.msra.mxu1 %v9909_v33  ;;  %v303_v33 = vsel %vm11170_vm3, 0, %v302_v32  ;;  %v354_v35 = vsel %vm11179_vm5, 0, %v353_v34 }
  0x51   : > { %2458 = vmatprep.subr.bf16.mxu1 %v9914_v36  ;;  %304 = vst [vmem:[#allocation2 + $0x38] sm:$0x1] %v303_v33  ;;  %v308_v36 = vld [vmem:[#allocation2 + $0x48] sm:$0x1]  ;;  %355 = vst [vmem:[#allocation2 + $0x38] sm:$0x10] %v354_v35 }
  0x52   : > { %v309_v39 = vsel %vm11170_vm3, 0, %v308_v36  ;;  %v1177_v16 = vld [vmem:[#allocation2 + $0x20] sm:$0x1f] }
  0x53   : > { %310 = vst [vmem:[#allocation2 + $0x48] sm:$0x1] %v309_v39 }
  0x54   : > { %2459 = vmatpush1.bf16.msra.mxu1 %v9912_v45  ;;  %v9944_v45 = vld [vmem:[%s13056_s3 + $0x3d4] ss:$8 sps:$4 sm:$0xff]  }
  0x55   : > { %2460 = vmatprep.subr.bf16.mxu1 %v9917_v46  ;;  %v9947_v46 = vld [vmem:[%s13056_s3 + $0x3e4] ss:$8 sps:$4 sm:$0xff]  }
  0x56   : > { %883 = vmatmul.mubr.bf16.gmra.mrb[8].mxu1 %v426_v47  ;;  %v9945_v47 = vld [vmem:[%s13056_s3 + $0x3e0] ss:$8 sps:$4 sm:$0xff]  }
  0x57   : > { %956 = vmatmul.mubr.bf16.gmra.mrb[8].mxu0 %v428_v48  ;;  %892 = vmatprep.mubr.bf16.mxu1 %v431_v50  ;;  %v9950_v48 = vld [vmem:[%s13056_s3 + $0x3f4] ss:$8 sps:$4 sm:$0xff]  }
  0x58   : > { %965 = vmatprep.mubr.bf16.mxu0 %v433_v51  ;;  %2461 = vmatpush1.bf16.msra.mxu1 %v9915_v49  ;;  %v311_v49 = vld [vmem:[#allocation2 + $0x50] sm:$0x1]  ;;  %v362_v50 = vld [vmem:[#allocation2 + $0x50] sm:$0x10]  ;;  %v314_v51 = vld [vmem:[#allocation2 + $0x58] sm:$0x1] }
  0x59   : > { %2462 = vmatprep.subr.bf16.mxu1 %v9920_v52  ;;  %v312_v52 = vsel %vm11170_vm3, 0, %v311_v49  ;;  %v363_v53 = vsel %vm11179_vm5, 0, %v362_v50  ;;  %v315_v54 = vsel %vm11170_vm3, 0, %v314_v51 }
  0x5a   : > { %313 = vst [vmem:[#allocation2 + $0x50] sm:$0x1] %v312_v52  ;;  %364 = vst [vmem:[#allocation2 + $0x50] sm:$0x10] %v363_v53 }
  0x5b   : > { %316 = vst [vmem:[#allocation2 + $0x58] sm:$0x1] %v315_v54 }
  0x5c   : > { %2463 = vmatpush1.bf16.msra.mxu1 %v9918_v57  ;;  %v317_v57 = vld [vmem:[#allocation2 + $0x60] sm:$0x1] }
  0x5d   : > { %2464 = vmatprep.subr.bf16.mxu1 %v9923_v58  ;;  %v366_v58 = vsel %vm11179_vm5, 0, %v365_v56 }
  0x5e   : > { %893 = vmatmul.mubr.bf16.gmra.mrb[12].mxu1 %v430_v59  ;;  %v318_v59 = vsel %vm11170_vm3, 0, %v317_v57  ;;  %367 = vst [vmem:[#allocation2 + $0x58] sm:$0x10] %v366_v58  ;;  %v1171_v57 = vld [vmem:[#allocation2 + $0x10] sm:$0x1f] }
  0x5f   : > { %966 = vmatmul.mubr.bf16.gmra.mrb[12].mxu0 %v432_v60  ;;  %v368_v60 = vld [vmem:[#allocation2 + $0x60] sm:$0x10]  ;;  %319 = vst [vmem:[#allocation2 + $0x60] sm:$0x1] %v318_v59 }
  0x60   : > { %2465 = vmatpush1.bf16.msra.mxu1 %v9921_v61  ;;  %v320_v61 = vld [vmem:[#allocation2 + $0x68] sm:$0x1] }
  0x61   : > { %2466 = vmatprep.subr.bf16.mxu1 %v9926_v62  ;;  %v369_v62 = vsel %vm11179_vm5, 0, %v368_v60 }
  0x62   : > { %370 = vst [vmem:[#allocation2 + $0x60] sm:$0x10] %v369_v62 }
  0x64   : > { %2467 = vmatpush1.bf16.msra.mxu1 %v9924_v63  ;;  %v321_v63 = vsel %vm11170_vm3, 0, %v320_v61 }
  0x65   : > { %2468 = vmatprep.subr.bf16.mxu1 %v9929_v0  ;;  %v371_v0 = vld [vmem:[#allocation2 + $0x68] sm:$0x10]  ;;  %322 = vst [vmem:[#allocation2 + $0x68] sm:$0x1] %v321_v63 }
  0x68   : > { %2469 = vmatpush1.bf16.msra.mxu1 %v9927_v1  ;;  %v372_v1 = vsel %vm11179_vm5, 0, %v371_v0 }
  0x69   : > { %2470 = vmatprep.subr.bf16.mxu1 %v9932_v2  ;;  %v9954_v2 = vld [vmem:[%s13056_s3 + $0x404] ss:$8 sps:$4 sm:$0xff]   ;;  %373 = vst [vmem:[#allocation2 + $0x68] sm:$0x10] %v372_v1  ;;  %v10428_v1 = vld [vmem:[%s13058_s5 + $0x450] ss:$8 sps:$4 sm:$0xff]  }
  0x6c   : > { %2471 = vmatpush1.bf16.msra.mxu1 %v9930_v3  ;;  %v323_v3 = vld [vmem:[#allocation2 + $0x70] sm:$0x1] }
  0x6d   : > { %2472 = vmatprep.subr.bf16.mxu1 %v9935_v7  ;;  %v324_v6 = vsel %vm11170_vm3, 0, %v323_v3  ;;  %v375_v7 = vsel %vm11179_vm5, 0, %v374_v4 }
  0x6e   : > { %325 = vst [vmem:[#allocation2 + $0x70] sm:$0x1] %v324_v6  ;;  %376 = vst [vmem:[#allocation2 + $0x70] sm:$0x10] %v375_v7 }
  0x70   : > { %2473 = vmatpush1.bf16.msra.mxu1 %v9933_v10  ;;  %v377_v10 = vld [vmem:[#allocation2 + $0x78] sm:$0x10] }
  0x71   : > { %2474 = vmatprep.subr.bf16.mxu1 %v9938_v14  ;;  %v378_v12 = vsel %vm11179_vm5, 0, %v377_v10  ;;  %v330_v14 = vsel %vm11170_vm3, 0, %v329_v13 }
  0x72   : > { %379 = vst [vmem:[#allocation2 + $0x78] sm:$0x10] %v378_v12  ;;  %331 = vst [vmem:[#allocation2 + $0x80] sm:$0x1] %v330_v14 }
  0x74   : > { %2475 = vmatpush1.bf16.msra.mxu1 %v9936_v25  ;;  %v11294_v25 = vrot.slane %v498_v5, %v11288_v24 }
  0x75   : > { %2476 = vmatprep.subr.bf16.mxu1 %v9941_v26  ;;  %v11297_v26 = vrot.slane %v498_v5, %v11291_v9 }
  0x78   : > { %2477 = vmatpush1.bf16.msra.mxu1 %v9939_v27 }
  0x79   : > { %2478 = vmatprep.subr.bf16.mxu1 %v9944_v45 }
  0x7c   : > { %2479 = vmatpush1.bf16.msra.mxu1 %v9942_v43 }
  0x7d   : > { %2480 = vmatprep.subr.bf16.mxu1 %v9947_v46 }
  0x80   : > { %2481 = vmatpush1.bf16.msra.mxu1 %v9945_v47 }
  0x81   : > { %2482 = vmatprep.subr.bf16.mxu1 %v9950_v48 }
  0x84   : > { %2483 = vmatpush1.bf16.msra.mxu1 %v9948_v55 }
  0x85   : > { %2525 = vmatprep.subr.bf16.mxu1 %v9954_v2  ;;  %v1174_v2 = vld [vmem:[#allocation2 + $0x18] sm:$0x1f] }
 0x119   : > { %v864_v27 = vpop.f32.mrb[0].mxu1 }
 0x11a   : > { %v937_v28 = vpop.f32.mrb[0].mxu0  ;;  %v865_v29 = vadd.f32 %v864_v27, %v11294_v25  ;;  %v866_v30 = vpop.f32.mrb[1].mxu1 }
 0x11b   : > { %v939_v31 = vpop.f32.mrb[1].mxu0  ;;  %v867_v32 = vadd.f32 %v866_v30, %v11297_v26  ;;  %v868_v33 = vpop.f32.mrb[2].mxu1 }
 0x11c   : > { %v941_v34 = vpop.f32.mrb[2].mxu0  ;;  %v938_v35 = vadd.f32 %v937_v28, %v865_v29  ;;  %v869_v36 = vadd.f32 %v868_v33, %v11294_v25  ;;  %v870_v37 = vpop.f32.mrb[3].mxu1 }
 0x11d   : > { %v943_v38 = vpop.f32.mrb[3].mxu0  ;;  %v940_v39 = vadd.f32 %v939_v31, %v867_v32  ;;  %v871_v40 = vadd.f32 %v870_v37, %v11297_v26 }
 0x11e   : > { %v976_v41 = vmax.f32 %v938_v35, 0.0  ;;  %v942_v42 = vadd.f32 %v941_v34, %v869_v36 }
 0x11f   : > { %v977_v43 = vmax.f32 %v940_v39, 0.0  ;;  %v944_v44 = vadd.f32 %v943_v38, %v871_v40 }
 0x120   : > { %v9477_v45 = vpack.c.bf16 %v976_v41, %v976_v41  ;;  %v978_v46 = vmax.f32 %v942_v42, 0.0 }
 0x121   : > { %v9478_v47 = vpack.c.bf16 %v977_v43, %v977_v43  ;;  %v979_v48 = vmax.f32 %v944_v44, 0.0  ;;  %v874_v49 = vpop.f32.mrb[4].mxu1 }
 0x122   : > { %v947_v50 = vpop.f32.mrb[4].mxu0  ;;  %v1041_v51 = vshrl.u32 %v9477_v45, 16  ;;  %v1044_v52 = vshll.u32 %v9477_v45, 16  ;;  %v9479_v53 = vpack.c.bf16 %v978_v46, %v978_v46  ;;  %v875_v54 = vadd.f32 %v874_v49, %v11294_v25  ;;  %v876_v55 = vpop.f32.mrb[5].mxu1 }
 0x123   : > { %v949_v56 = vpop.f32.mrb[5].mxu0  ;;  %v1048_v58 = vshrl.u32 %v9478_v47, 16  ;;  %v1051_v59 = vshll.u32 %v9478_v47, 16  ;;  %v9480_v60 = vpack.c.bf16 %v979_v48, %v979_v48  ;;  %v877_v61 = vadd.f32 %v876_v55, %v11297_v26  ;;  %v878_v62 = vpop.f32.mrb[6].mxu1 }
 0x124   : > { %v951_v63 = vpop.f32.mrb[6].mxu0  ;;  %v1043_v0 = vrot.slane %v1041_v51, 7  ;;  %v1055_v3 = vshrl.u32 %v9479_v53, 16  ;;  %v1058_v4 = vshll.u32 %v9479_v53, 16  ;;  %v879_v6 = vadd.f32 %v878_v62, %v11294_v25  ;;  %v880_v7 = vpop.f32.mrb[7].mxu1 }
 0x125   : > { %v953_v8 = vpop.f32.mrb[7].mxu0  ;;  %v1050_v10 = vrot.slane %v1048_v58, 7  ;;  %v1062_v11 = vshrl.u32 %v9480_v60, 16  ;;  %v1065_v12 = vshll.u32 %v9480_v60, 16  ;;  %v948_v13 = vadd.f32 %v947_v50, %v875_v54  ;;  %v1183_v50 = vld [vmem:[#allocation2 + $0x30] sm:$0x1f] }
 0x126   : > { %v1046_v14 = vor.u32 %v1044_v52, %v1043_v0  ;;  %v1057_v15 = vrot.slane %v1055_v3, 7  ;;  %v881_v18 = vadd.f32 %v880_v7, %v11297_v26  ;;  %v950_v19 = vadd.f32 %v949_v56, %v877_v61  ;;  %v1186_v62 = vld [vmem:[#allocation2 + $0x38] sm:$0x1f] }
 0x127   : > { %v1053_v20 = vor.u32 %v1051_v59, %v1050_v10  ;;  %v1064_v21 = vrot.slane %v1062_v11, 7  ;;  %v980_v5 = vmax.f32 %v948_v13, 0.0  ;;  %v952_v27 = vadd.f32 %v951_v63, %v879_v6  ;;  %v1189_v6 = vld [vmem:[#allocation2 + $0x40] sm:$0x1f] }
 0x128   : > { %v1172_v28 = vsel %vm11307_vm8, %v1046_v14, %v1171_v57  ;;  %v1060_v29 = vor.u32 %v1058_v4, %v1057_v15  ;;  %v981_v30 = vmax.f32 %v950_v19, 0.0  ;;  %v954_v31 = vadd.f32 %v953_v8, %v881_v18 }
 0x129   : > { %1173 = vst [vmem:[#allocation2 + $0x10] sm:$0x1f] %v1172_v28  ;;  %v1175_v32 = vsel %vm11307_vm8, %v1053_v20, %v1174_v2  ;;  %v1067_v33 = vor.u32 %v1065_v12, %v1064_v21  ;;  %v9481_v34 = vpack.c.bf16 %v980_v5, %v980_v5  ;;  %v982_v35 = vmax.f32 %v952_v27, 0.0  ;;  %v884_v36 = vpop.f32.mrb[8].mxu1  ;;  %v1192_v12 = vld [vmem:[#allocation2 + $0x48] sm:$0x1f] }
 0x12a   : > { %v957_v37 = vpop.f32.mrb[8].mxu0  ;;  %1176 = vst [vmem:[#allocation2 + $0x18] sm:$0x1f] %v1175_v32  ;;  %v1178_v38 = vsel %vm11307_vm8, %v1060_v29, %v1177_v16  ;;  %v9482_v39 = vpack.c.bf16 %v981_v30, %v981_v30  ;;  %v983_v40 = vmax.f32 %v954_v31, 0.0  ;;  %v885_v41 = vadd.f32 %v884_v36, %v11294_v25  ;;  %v886_v42 = vpop.f32.mrb[9].mxu1 }
 0x12b   : > { %v959_v43 = vpop.f32.mrb[9].mxu0  ;;  %1179 = vst [vmem:[#allocation2 + $0x20] sm:$0x1f] %v1178_v38  ;;  %v1181_v44 = vsel %vm11307_vm8, %v1067_v33, %v1180_v17  ;;  %v1069_v45 = vshrl.u32 %v9481_v34, 16  ;;  %v1072_v46 = vshll.u32 %v9481_v34, 16  ;;  %v9483_v47 = vpack.c.bf16 %v982_v35, %v982_v35  ;;  %v888_v48 = vpop.f32.mrb[10].mxu1 }
 0x12c   : > { %v961_v49 = vpop.f32.mrb[10].mxu0  ;;  %1182 = vst [vmem:[#allocation2 + $0x28] sm:$0x1f] %v1181_v44  ;;  %v1076_v51 = vshrl.u32 %v9482_v39, 16  ;;  %v1079_v52 = vshll.u32 %v9482_v39, 16  ;;  %v9484_v53 = vpack.c.bf16 %v983_v40, %v983_v40  ;;  %v887_v54 = vadd.f32 %v886_v42, %v11297_v26  ;;  %v890_v55 = vpop.f32.mrb[11].mxu1 }
 0x12d   : > { %v963_v56 = vpop.f32.mrb[11].mxu0  ;;  %v1071_v57 = vrot.slane %v1069_v45, 7  ;;  %v1083_v58 = vshrl.u32 %v9483_v47, 16  ;;  %v1086_v59 = vshll.u32 %v9483_v47, 16  ;;  %v889_v60 = vadd.f32 %v888_v48, %v11294_v25  ;;  %v9952_v31 = vld [vmem:[%s13056_s3 + $0x400] ss:$8 sps:$4 sm:$0xff]  }
 0x12e   : > { %v1078_v61 = vrot.slane %v1076_v51, 7  ;;  %v1090_v63 = vshrl.u32 %v9484_v53, 16  ;;  %v1093_v0 = vshll.u32 %v9484_v53, 16  ;;  %v958_v2 = vadd.f32 %v957_v37, %v885_v41 }
 0x12f   : > { %v1074_v3 = vor.u32 %v1072_v46, %v1071_v57  ;;  %v1085_v4 = vrot.slane %v1083_v58, 7  ;;  %v891_v7 = vadd.f32 %v890_v55, %v11297_v26  ;;  %v960_v8 = vadd.f32 %v959_v43, %v887_v54  ;;  %v1198_v58 = vld [vmem:[#allocation2 + $0x58] sm:$0x1f] }
 0x130   : > { %v1081_v10 = vor.u32 %v1079_v52, %v1078_v61  ;;  %v1092_v11 = vrot.slane %v1090_v63, 7  ;;  %v984_v13 = vmax.f32 %v958_v2, 0.0  ;;  %v962_v14 = vadd.f32 %v961_v49, %v889_v60  ;;  %v1195_v52 = vld [vmem:[#allocation2 + $0x50] sm:$0x1f]  ;;  %v1204_v2 = vld [vmem:[#allocation2 + $0x68] sm:$0x1f] }
 0x131   : > { %v1184_v15 = vsel %vm11307_vm8, %v1074_v3, %v1183_v50  ;;  %v1088_v16 = vor.u32 %v1086_v59, %v1085_v4  ;;  %v985_v17 = vmax.f32 %v960_v8, 0.0  ;;  %v964_v18 = vadd.f32 %v963_v56, %v891_v7  ;;  %v894_v19 = vpop.f32.mrb[12].mxu1  ;;  %v9958_v50 = vld [vmem:[%s13056_s3 + $0x414] ss:$8 sps:$4 sm:$0xff]   ;;  %v9956_v56 = vld [vmem:[%s13056_s3 + $0x410] ss:$8 sps:$4 sm:$0xff]  }
 0x132   : > { %v967_v20 = vpop.f32.mrb[12].mxu0  ;;  %1185 = vst [vmem:[#allocation2 + $0x30] sm:$0x1f] %v1184_v15  ;;  %v1187_v21 = vsel %vm11307_vm8, %v1081_v10, %v1186_v62  ;;  %v1095_v5 = vor.u32 %v1093_v0, %v1092_v11  ;;  %v9485_v27 = vpack.c.bf16 %v984_v13, %v984_v13  ;;  %v986_v28 = vmax.f32 %v962_v14, 0.0  ;;  %v896_v29 = vpop.f32.mrb[13].mxu1 }
 0x133   : > { %v969_v30 = vpop.f32.mrb[13].mxu0  ;;  %1188 = vst [vmem:[#allocation2 + $0x38] sm:$0x1f] %v1187_v21  ;;  %v1190_v32 = vsel %vm11307_vm8, %v1088_v16, %v1189_v6  ;;  %v9486_v33 = vpack.c.bf16 %v985_v17, %v985_v17  ;;  %v987_v34 = vmax.f32 %v964_v18, 0.0  ;;  %v895_v35 = vadd.f32 %v894_v19, %v11294_v25  ;;  %v898_v36 = vpop.f32.mrb[14].mxu1 }
 0x134   : > { %v971_v37 = vpop.f32.mrb[14].mxu0  ;;  %1191 = vst [vmem:[#allocation2 + $0x40] sm:$0x1f] %v1190_v32  ;;  %v1193_v38 = vsel %vm11307_vm8, %v1095_v5, %v1192_v12  ;;  %v1097_v39 = vshrl.u32 %v9485_v27, 16  ;;  %v1100_v40 = vshll.u32 %v9485_v27, 16  ;;  %v9487_v41 = vpack.c.bf16 %v986_v28, %v986_v28  ;;  %v900_v42 = vpop.f32.mrb[15].mxu1 }
 0x135   : > { %v973_v43 = vpop.f32.mrb[15].mxu0  ;;  %v9951_v44 = vld [vmem:[#allocation2 + $0x18] ss:$16 sps:$4 sm:$0xff]   ;;  %1194 = vst [vmem:[#allocation2 + $0x48] sm:$0x1f] %v1193_v38  ;;  %v1104_v45 = vshrl.u32 %v9486_v33, 16  ;;  %v9488_v47 = vpack.c.bf16 %v987_v34, %v987_v34  ;;  %v897_v48 = vadd.f32 %v896_v29, %v11297_v26  ;;  %v899_v55 = vadd.f32 %v898_v36, %v11294_v25 }
 0x136   : > { %v1107_v46 = vshll.u32 %v9486_v33, 16  ;;  %v9955_v49 = vld [vmem:[#allocation2 + $0x10] ss:$16 sps:$4 sm:$0xff]   ;;  %v1099_v51 = vrot.slane %v1097_v39, 7  ;;  %v1111_v53 = vshrl.u32 %v9487_v41, 16  ;;  %v1114_v54 = vshll.u32 %v9487_v41, 16  ;;  %2484 = vmatprep.mubr.bf16.mxu1 %v9951_v44 }
 0x137   : > { %v1106_v57 = vrot.slane %v1104_v45, 7  ;;  %v1118_v59 = vshrl.u32 %v9488_v47, 16  ;;  %v1121_v60 = vshll.u32 %v9488_v47, 16  ;;  %v968_v61 = vadd.f32 %v967_v20, %v895_v35  ;;  %2485 = vmatmul.mubr.bf16.vlgmr.msra.gmra.mrb[16].mxu1 %v9955_v49  ;;  %v1201_v0 = vld [vmem:[#allocation2 + $0x60] sm:$0x1f] }
 0x138   : > { %v1102_v62 = vor.u32 %v1100_v40, %v1099_v51  ;;  %v1113_v63 = vrot.slane %v1111_v53, 7  ;;  %v901_v3 = vadd.f32 %v900_v42, %v11297_v26  ;;  %v970_v4 = vadd.f32 %v969_v30, %v897_v48  ;;  %2526 = vmatpush1.bf16.msra.mxu1 %v9952_v31  ;;  %v9962_v10 = vld [vmem:[%s13056_s3 + $0x424] ss:$8 sps:$4 sm:$0xff]   ;;  %v9960_v26 = vld [vmem:[%s13056_s3 + $0x420] ss:$8 sps:$4 sm:$0xff]  }
 0x139   : > { %v1109_v25 = vor.u32 %v1107_v46, %v1106_v57  ;;  %v1120_v6 = vrot.slane %v1118_v59, 7  ;;  %v988_v7 = vmax.f32 %v968_v61, 0.0  ;;  %v972_v8 = vadd.f32 %v971_v37, %v899_v55  ;;  %2527 = vmatprep.subr.bf16.mxu1 %v9958_v50  ;;  %v9966_v32 = vld [vmem:[%s13056_s3 + $0x434] ss:$8 sps:$4 sm:$0xff]   ;;  %v9964_v36 = vld [vmem:[%s13056_s3 + $0x430] ss:$8 sps:$4 sm:$0xff]  }
 0x13a   : > { %v1196_v11 = vsel %vm11307_vm8, %v1102_v62, %v1195_v52  ;;  %v1116_v12 = vor.u32 %v1114_v54, %v1113_v63  ;;  %v989_v13 = vmax.f32 %v970_v4, 0.0  ;;  %v974_v14 = vadd.f32 %v973_v43, %v901_v3  ;;  %v1207_v38 = vld [vmem:[#allocation2 + $0x70] sm:$0x1f]  ;;  %v1210_v42 = vld [vmem:[#allocation2 + $0x78] sm:$0x1f] }
 0x13b   : > { %1197 = vst [vmem:[#allocation2 + $0x50] sm:$0x1f] %v1196_v11  ;;  %v1199_v15 = vsel %vm11307_vm8, %v1109_v25, %v1198_v58  ;;  %v1123_v16 = vor.u32 %v1121_v60, %v1120_v6  ;;  %v9489_v17 = vpack.c.bf16 %v988_v7, %v988_v7  ;;  %v990_v18 = vmax.f32 %v972_v8, 0.0  ;;  %v9963_v19 = vld [vmem:[#allocation2 + $0x30] ss:$16 sps:$4 sm:$0xff]  }
 0x13c   : > { %1200 = vst [vmem:[#allocation2 + $0x58] sm:$0x1f] %v1199_v15  ;;  %v1202_v20 = vsel %vm11307_vm8, %v1116_v12, %v1201_v0  ;;  %v9490_v21 = vpack.c.bf16 %v989_v13, %v989_v13  ;;  %v991_v5 = vmax.f32 %v974_v14, 0.0  ;;  %2528 = vmatpush1.bf16.msra.mxu1 %v9956_v56  ;;  %v9959_v27 = vld [vmem:[#allocation2 + $0x38] ss:$16 sps:$4 sm:$0xff]  }
 0x13d   : > { %1203 = vst [vmem:[#allocation2 + $0x60] sm:$0x1f] %v1202_v20  ;;  %v1205_v28 = vsel %vm11307_vm8, %v1123_v16, %v1204_v2  ;;  %v1125_v29 = vshrl.u32 %v9489_v17, 16  ;;  %v1128_v30 = vshll.u32 %v9489_v17, 16  ;;  %v9491_v31 = vpack.c.bf16 %v990_v18, %v990_v18  ;;  %2529 = vmatprep.subr.bf16.mxu1 %v9962_v10  ;;  %2494 = vmatprep.mubr.bf16.mxu1 %v9959_v27  ;;  %v9970_v47 = vld [vmem:[%s13056_s3 + $0x444] ss:$8 sps:$4 sm:$0xff]  }
 0x13e   : > { %1206 = vst [vmem:[#allocation2 + $0x68] sm:$0x1f] %v1205_v28  ;;  %v1132_v33 = vshrl.u32 %v9490_v21, 16  ;;  %v1135_v34 = vshll.u32 %v9490_v21, 16  ;;  %v9492_v35 = vpack.c.bf16 %v991_v5, %v991_v5  ;;  %v1590_v48 = vld [vmem:[#allocation2 + $0x28] sm:$0x1f] }
 0x13f   : > { %v1127_v37 = vrot.slane %v1125_v29, 7  ;;  %v1139_v39 = vshrl.u32 %v9491_v31, 16  ;;  %v1142_v40 = vshll.u32 %v9491_v31, 16  ;;  %2495 = vmatmul.mubr.bf16.gmra.mrb[20].mxu1 %v9963_v19  ;;  %v1213_v50 = vld [vmem:[#allocation2 + $0x80] sm:$0x1f]  ;;  %v1643_v59 = vshll.u32 %v1590_v48, 16 }
 0x140   : > { %v1134_v41 = vrot.slane %v1132_v33, 7  ;;  %v1146_v43 = vshrl.u32 %v9492_v35, 16  ;;  %v1149_v44 = vshll.u32 %v9492_v35, 16  ;;  %2530 = vmatpush1.bf16.msra.mxu1 %v9960_v26  ;;  %v1216_v54 = vld [vmem:[#allocation2 + $0x88] sm:$0x1f]  ;;  %v1641_v7 = vshrl.u32 %v1590_v48, 16 }
 0x141   : > { %v1130_v45 = vor.u32 %v1128_v30, %v1127_v37  ;;  %v1141_v46 = vrot.slane %v1139_v39, 7  ;;  %2531 = vmatprep.subr.bf16.mxu1 %v9966_v32  ;;  %v1588_v55 = vld [vmem:[#allocation2 + $0x18] sm:$0x1f]  ;;  %v9968_v62 = vld [vmem:[%s13056_s3 + $0x440] ss:$8 sps:$4 sm:$0xff]   ;;  %v1645_v3 = vrot.slane %v1643_v59, 1 }
 0x142   : > { %v1137_v49 = vor.u32 %v1135_v34, %v1134_v41  ;;  %v1148_v51 = vrot.slane %v1146_v43, 7  ;;  %v9974_v0 = vld [vmem:[%s13056_s3 + $0x454] ss:$8 sps:$4 sm:$0xff]   ;;  %v1629_v2 = vshll.u32 %v1588_v55, 16  ;;  %v9972_v4 = vld [vmem:[%s13056_s3 + $0x450] ss:$8 sps:$4 sm:$0xff]  }
 0x143   : > { %v1208_v52 = vsel %vm11307_vm8, %v1130_v45, %v1207_v38  ;;  %v1144_v53 = vor.u32 %v1142_v40, %v1141_v46  ;;  %v9978_v25 = vld [vmem:[%s13056_s3 + $0x464] ss:$8 sps:$4 sm:$0xff]   ;;  %v1627_v8 = vshrl.u32 %v1588_v55, 16  ;;  %v1646_v10 = vor.u32 %v1645_v3, %v1641_v7  ;;  %v9976_v13 = vld [vmem:[%s13056_s3 + $0x460] ss:$8 sps:$4 sm:$0xff]  }
 0x144   : > { %1209 = vst [vmem:[#allocation2 + $0x70] sm:$0x1f] %v1208_v52  ;;  %v1211_v56 = vsel %vm11307_vm8, %v1137_v49, %v1210_v42  ;;  %v1151_v57 = vor.u32 %v1149_v44, %v1148_v51  ;;  %2532 = vmatpush1.bf16.msra.mxu1 %v9964_v36  ;;  %v9971_v58 = vld [vmem:[#allocation2 + $0x50] ss:$16 sps:$4 sm:$0xff]   ;;  %v1631_v6 = vrot.slane %v1629_v2, 1 }
 0x145   : > { %1212 = vst [vmem:[#allocation2 + $0x78] sm:$0x1f] %v1211_v56  ;;  %v1214_v60 = vsel %vm11307_vm8, %v1144_v53, %v1213_v50  ;;  %v9967_v61 = vld [vmem:[#allocation2 + $0x58] ss:$16 sps:$4 sm:$0xff]   ;;  %2533 = vmatprep.subr.bf16.mxu1 %v9970_v47  ;;  %v9982_v26 = vld [vmem:[%s13056_s3 + $0x474] ss:$8 sps:$4 sm:$0xff]  }
 0x146   : > { %1215 = vst [vmem:[#allocation2 + $0x80] sm:$0x1f] %v1214_v60  ;;  %v1217_v63 = vsel %vm11307_vm8, %v1151_v57, %v1216_v54  ;;  %2504 = vmatprep.mubr.bf16.mxu1 %v9967_v61  ;;  %v1632_v14 = vor.u32 %v1631_v6, %v1627_v8  ;;  %v9980_v16 = vld [vmem:[%s13056_s3 + $0x470] ss:$8 sps:$4 sm:$0xff]   ;;  %v9985_v17 = vld [vmem:[%s13056_s3 + $0x484] ss:$8 sps:$4 sm:$0xff]  }
 0x147   : > { %1218 = vst [vmem:[#allocation2 + $0x88] sm:$0x1f] %v1217_v63  ;;  %2505 = vmatmul.mubr.bf16.gmra.mrb[24].mxu1 %v9971_v58  ;;  %v9983_v18 = vld [vmem:[%s13056_s3 + $0x480] ss:$8 sps:$4 sm:$0xff]   ;;  %v9988_v19 = vld [vmem:[%s13056_s3 + $0x494] ss:$8 sps:$4 sm:$0xff]  }
 0x148   : > { %2534 = vmatpush1.bf16.msra.mxu1 %v9968_v62  ;;  %v8453_v15 = vcombine.low %v1632_v14, %v1646_v10  ;;  %v9986_v20 = vld [vmem:[%s13056_s3 + $0x490] ss:$8 sps:$4 sm:$0xff]   ;;  %v9991_v21 = vld [vmem:[%s13056_s3 + $0x4a4] ss:$8 sps:$4 sm:$0xff]   ;;  %v9989_v5 = vld [vmem:[%s13056_s3 + $0x4a0] ss:$8 sps:$4 sm:$0xff]  }
 0x149   : > { %2535 = vmatprep.subr.bf16.mxu1 %v9974_v0  ;;  %v9994_v27 = vld [vmem:[%s13056_s3 + $0x4b4] ss:$8 sps:$4 sm:$0xff]   ;;  %v9992_v28 = vld [vmem:[%s13056_s3 + $0x4b0] ss:$8 sps:$4 sm:$0xff]   ;;  %v9997_v29 = vld [vmem:[%s13056_s3 + $0x4c4] ss:$8 sps:$4 sm:$0xff]  }
 0x14a   : > { %v9995_v30 = vld [vmem:[%s13056_s3 + $0x4c0] ss:$8 sps:$4 sm:$0xff]   ;;  %v10000_v31 = vld [vmem:[%s13056_s3 + $0x4d4] ss:$8 sps:$4 sm:$0xff]   ;;  %v9998_v35 = vld [vmem:[%s13056_s3 + $0x4d0] ss:$8 sps:$4 sm:$0xff]  }
 0x14b   : > { %v1589_v32 = vld [vmem:[#allocation2 + $0x20] sm:$0x1f]  ;;  %v1592_v33 = vld [vmem:[#allocation2 + $0x38] sm:$0x1f]  ;;  %v1594_v34 = vld [vmem:[#allocation2 + $0x48] sm:$0x1f] }
 0x14c   : > { %2536 = vmatpush1.bf16.msra.mxu1 %v9972_v4  ;;  %v1587_v36 = vld [vmem:[#allocation2 + $0x10] sm:$0x1f]  ;;  %v10003_v37 = vld [vmem:[%s13056_s3 + $0x4e4] ss:$8 sps:$4 sm:$0xff]   ;;  %v1636_v38 = vshll.u32 %v1589_v32, 16  ;;  %v1657_v39 = vshll.u32 %v1592_v33, 16 }
 0x14d   : > { %v9979_v11 = vld [vmem:[#allocation2 + $0x70] ss:$16 sps:$4 sm:$0xff]   ;;  %2537 = vmatprep.subr.bf16.mxu1 %v9978_v25  ;;  %v1671_v40 = vshll.u32 %v1594_v34, 16  ;;  %v1622_v41 = vshll.u32 %v1587_v36, 16  ;;  %v10006_v43 = vld [vmem:[%s13056_s3 + $0x4f4] ss:$8 sps:$4 sm:$0xff]  }
 0x14e   : > { %v9975_v12 = vld [vmem:[#allocation2 + $0x78] ss:$16 sps:$4 sm:$0xff]   ;;  %v1638_v44 = vrot.slane %v1636_v38, 1  ;;  %v1591_v45 = vld [vmem:[#allocation2 + $0x30] sm:$0x1f]  ;;  %v1655_v46 = vshrl.u32 %v1592_v33, 16 }
 0x14f   : > { %2514 = vmatprep.mubr.bf16.mxu1 %v9975_v12  ;;  %v10001_v42 = vld [vmem:[%s13056_s3 + $0x4e0] ss:$8 sps:$4 sm:$0xff]   ;;  %v1659_v47 = vrot.slane %v1657_v39, 1  ;;  %v1669_v48 = vshrl.u32 %v1594_v34, 16  ;;  %v1673_v49 = vrot.slane %v1671_v40, 1  ;;  %v1624_v51 = vrot.slane %v1622_v41, 1 }
 0x150   : > { %2515 = vmatmul.mubr.bf16.gmra.mrb[28].mxu1 %v9979_v11  ;;  %v1593_v50 = vld [vmem:[#allocation2 + $0x40] sm:$0x1f]  ;;  %v1634_v52 = vshrl.u32 %v1589_v32, 16  ;;  %v1596_v53 = vld [vmem:[#allocation2 + $0x58] sm:$0x1f]  ;;  %v1620_v56 = vshrl.u32 %v1587_v36, 16 }
 0x151   : > { %2538 = vmatpush1.bf16.msra.mxu1 %v9976_v13  ;;  %2557 = vmatprep.mubr.bf16.mxu1 %v8453_v15  ;;  %v1598_v54 = vld [vmem:[#allocation2 + $0x68] sm:$0x1f]  ;;  %v10004_v55 = vld [vmem:[%s13056_s3 + $0x4f0] ss:$8 sps:$4 sm:$0xff]   ;;  %v1650_v59 = vshll.u32 %v1591_v45, 16  ;;  %v1664_v60 = vshll.u32 %v1593_v50, 16  ;;  %v1660_v61 = vor.u32 %v1659_v47, %v1655_v46  ;;  %v1674_v62 = vor.u32 %v1673_v49, %v1669_v48 }
 0x152   : > { %2539 = vmatprep.subr.bf16.mxu1 %v9982_v26  ;;  %v1639_v57 = vor.u32 %v1638_v44, %v1634_v52  ;;  %v10009_v58 = vld [vmem:[%s13056_s3 + $0x504] ss:$8 sps:$4 sm:$0xff]   ;;  %v1685_v63 = vshll.u32 %v1596_v53, 16  ;;  %v1699_v0 = vshll.u32 %v1598_v54, 16  ;;  %v1625_v2 = vor.u32 %v1624_v51, %v1620_v56  ;;  %v10007_v3 = vld [vmem:[%s13056_s3 + $0x500] ss:$8 sps:$4 sm:$0xff]  }
 0x153   : > { %v10012_v4 = vld [vmem:[%s13056_s3 + $0x514] ss:$8 sps:$4 sm:$0xff]   ;;  %v1648_v25 = vshrl.u32 %v1591_v45, 16  ;;  %v1662_v6 = vshrl.u32 %v1593_v50, 16  ;;  %v1652_v8 = vrot.slane %v1650_v59, 1  ;;  %v1666_v10 = vrot.slane %v1664_v60, 1 }
 0x154   : > { %v8452_v7 = vcombine.low %v1625_v2, %v1639_v57  ;;  %v1683_v11 = vshrl.u32 %v1596_v53, 16  ;;  %v1595_v12 = vld [vmem:[#allocation2 + $0x50] sm:$0x1f]  ;;  %v8459_v13 = vcombine.low %v1660_v61, %v1674_v62  ;;  %v1687_v14 = vrot.slane %v1685_v63, 1  ;;  %v10013_v33 = vld [vmem:[%s13056_s3 + $0x520] ss:$8 sps:$4 sm:$0xff]  }
 0x155   : > { %2540 = vmatpush1.bf16.msra.mxu1 %v9980_v16  ;;  %v1697_v26 = vshrl.u32 %v1598_v54, 16  ;;  %v1701_v15 = vrot.slane %v1699_v0, 1  ;;  %v1597_v16 = vld [vmem:[#allocation2 + $0x60] sm:$0x1f]  ;;  %v10018_v34 = vld [vmem:[%s13056_s3 + $0x534] ss:$8 sps:$4 sm:$0xff]  }
 0x156   : > { %2541 = vmatprep.subr.bf16.mxu1 %v9985_v17  ;;  %v1600_v17 = vld [vmem:[#allocation2 + $0x78] sm:$0x1f]  ;;  %v10021_v48 = vld [vmem:[%s13056_s3 + $0x544] ss:$8 sps:$4 sm:$0xff]   ;;  %v10019_v53 = vld [vmem:[%s13056_s3 + $0x540] ss:$8 sps:$4 sm:$0xff]  }
 0x157   : > { %v1711_v38 = vshrl.u32 %v1600_v17, 16  ;;  %v10016_v47 = vld [vmem:[%s13056_s3 + $0x530] ss:$8 sps:$4 sm:$0xff]   ;;  %v10024_v56 = vld [vmem:[%s13056_s3 + $0x554] ss:$8 sps:$4 sm:$0xff]  }
 0x158   : > { %v1606_v63 = vld [vmem:[#allocation2 + $0x28] sm:$0x1e]  ;;  %v10022_v0 = vld [vmem:[%s13056_s3 + $0x550] ss:$8 sps:$4 sm:$0xff]  }
 0x159   : > { %2542 = vmatpush1.bf16.msra.mxu1 %v9983_v18  ;;  %v1602_v18 = vld [vmem:[#allocation2 + $0x88] sm:$0x1f] }
 0x15a   : > { %2543 = vmatprep.subr.bf16.mxu1 %v9988_v19  ;;  %v10010_v19 = vld [vmem:[%s13056_s3 + $0x510] ss:$8 sps:$4 sm:$0xff]   ;;  %v1727_v32 = vshll.u32 %v1602_v18, 16  ;;  %v1725_v41 = vshrl.u32 %v1602_v18, 16  ;;  %v10037_v18 = vld [vmem:[%s13056_s3 + $0x5a0] ss:$8 sps:$4 sm:$0xff]  }
 0x15c   : > { %v1729_v46 = vrot.slane %v1727_v32, 1  ;;  %v1605_v32 = vld [vmem:[#allocation2 + $0x20] sm:$0x1e] }
 0x15d   : > { %2544 = vmatpush1.bf16.msra.mxu1 %v9986_v20  ;;  %v1678_v20 = vshll.u32 %v1595_v12, 16 }
 0x15e   : > { %2545 = vmatprep.subr.bf16.mxu1 %v9991_v21  ;;  %v1653_v21 = vor.u32 %v1652_v8, %v1648_v25  ;;  %v1604_v25 = vld [vmem:[#allocation2 + $0x18] sm:$0x1e] }
 0x15f   : > { %v1680_v36 = vrot.slane %v1678_v20, 1  ;;  %v1748_v8 = vrot.slane %v1604_v25, 1  ;;  %v10040_v20 = vld [vmem:[%s13056_s3 + $0x5b0] ss:$8 sps:$4 sm:$0xff]  }
 0x161   : > { %2546 = vmatpush1.bf16.msra.mxu1 %v9989_v5  ;;  %v1667_v5 = vor.u32 %v1666_v10, %v1662_v6  ;;  %v1750_v6 = vrot.slane %v1606_v63, 1  ;;  %v1618_v63 = vld [vmem:[#allocation2 + $0x88] sm:$0x1e] }
 0x162   : > { %2547 = vmatprep.subr.bf16.mxu1 %v9994_v27  ;;  %v10015_v27 = vld [vmem:[%s13056_s3 + $0x524] ss:$8 sps:$4 sm:$0xff]  }
 0x163   : > { %v8458_v39 = vcombine.low %v1653_v21, %v1667_v5  ;;  %v10045_v21 = vld [vmem:[%s13056_s3 + $0x5c4] ss:$8 sps:$4 sm:$0xff]   ;;  %v10043_v5 = vld [vmem:[%s13056_s3 + $0x5c0] ss:$8 sps:$4 sm:$0xff]  }
 0x165   : > { %2548 = vmatpush1.bf16.msra.mxu1 %v9992_v28  ;;  %v1692_v28 = vshll.u32 %v1597_v16, 16 }
 0x166   : > { %2549 = vmatprep.subr.bf16.mxu1 %v9997_v29  ;;  %v1688_v29 = vor.u32 %v1687_v14, %v1683_v11  ;;  %v10030_v11 = vld [vmem:[%s13056_s3 + $0x574] ss:$8 sps:$4 sm:$0xff]   ;;  %v10033_v14 = vld [vmem:[%s13056_s3 + $0x584] ss:$8 sps:$4 sm:$0xff]  }
 0x167   : > { %v1694_v40 = vrot.slane %v1692_v28, 1  ;;  %v10046_v28 = vld [vmem:[%s13056_s3 + $0x5d0] ss:$8 sps:$4 sm:$0xff]  }
 0x169   : > { %2550 = vmatpush1.bf16.msra.mxu1 %v9995_v30  ;;  %v1702_v30 = vor.u32 %v1701_v15, %v1697_v26  ;;  %v10031_v26 = vld [vmem:[%s13056_s3 + $0x580] ss:$8 sps:$4 sm:$0xff]   ;;  %v10036_v15 = vld [vmem:[%s13056_s3 + $0x594] ss:$8 sps:$4 sm:$0xff]  }
 0x16a   : > { %2551 = vmatprep.subr.bf16.mxu1 %v10000_v31  ;;  %v1713_v31 = vshll.u32 %v1600_v17, 16  ;;  %v10039_v17 = vld [vmem:[%s13056_s3 + $0x5a4] ss:$8 sps:$4 sm:$0xff]  }
 0x16b   : > { %v8465_v44 = vcombine.low %v1688_v29, %v1702_v30  ;;  %v10051_v29 = vld [vmem:[%s13056_s3 + $0x5e4] ss:$8 sps:$4 sm:$0xff]   ;;  %v10049_v30 = vld [vmem:[%s13056_s3 + $0x5e0] ss:$8 sps:$4 sm:$0xff]  }
 0x16c   : > { %v1715_v45 = vrot.slane %v1713_v31, 1  ;;  %v10054_v31 = vld [vmem:[%s13056_s3 + $0x5f4] ss:$8 sps:$4 sm:$0xff]  }
 0x16d   : > { %2552 = vmatpush1.bf16.msra.mxu1 %v9998_v35  ;;  %v1676_v35 = vshrl.u32 %v1595_v12, 16  ;;  %v8455_v12 = vcombine.low %v1748_v8, %v1750_v6  ;;  %v1762_v6 = vrot.slane %v1618_v63, 1 }
 0x16e   : > { %2553 = vmatprep.subr.bf16.mxu1 %v10003_v37  ;;  %v1690_v37 = vshrl.u32 %v1597_v16, 16  ;;  %v1716_v54 = vor.u32 %v1715_v45, %v1711_v38  ;;  %v10034_v16 = vld [vmem:[%s13056_s3 + $0x590] ss:$8 sps:$4 sm:$0xff]   ;;  %v10057_v38 = vld [vmem:[%s13056_s3 + $0x4] ss:$8 sps:$4 sm:$0xff]  }
 0x16f   : > { %v1681_v49 = vor.u32 %v1680_v36, %v1676_v35  ;;  %v10052_v35 = vld [vmem:[%s13056_s3 + $0x5f0] ss:$8 sps:$4 sm:$0xff]  }
 0x170   : > { %v1695_v50 = vor.u32 %v1694_v40, %v1690_v37  ;;  %v1603_v36 = vld [vmem:[#allocation2 + $0x10] sm:$0x1e]  ;;  %v1749_v37 = vrot.slane %v1605_v32, 1 }
 0x171   : > { %2554 = vmatpush1.bf16.msra.mxu1 %v10001_v42  ;;  %v1599_v42 = vld [vmem:[#allocation2 + $0x70] sm:$0x1f] }
 0x172   : > { %2555 = vmatprep.subr.bf16.mxu1 %v10006_v43  ;;  %v1601_v43 = vld [vmem:[#allocation2 + $0x80] sm:$0x1f]  ;;  %v1706_v51 = vshll.u32 %v1599_v42, 16  ;;  %v1704_v57 = vshrl.u32 %v1599_v42, 16  ;;  %v8464_v59 = vcombine.low %v1681_v49, %v1695_v50  ;;  %v1614_v49 = vld [vmem:[#allocation2 + $0x68] sm:$0x1e] }
 0x173   : > { %v1720_v52 = vshll.u32 %v1601_v43, 16  ;;  %v10055_v42 = vld [vmem:[%s13056_s3] ss:$8 sps:$4 sm:$0xff]   ;;  %v10058_v50 = vld [vmem:[%s13056_s3 + $0x10] ss:$8 sps:$4 sm:$0xff]  }
 0x174   : > { %v1708_v60 = vrot.slane %v1706_v51, 1  ;;  %v10091_v32 = vld [vmem:[%s13056_s3 + $0xb4] ss:$8 sps:$4 sm:$0xff]  }
 0x175   : > { %2556 = vmatpush1.bf16.msra.mxu1 %v10004_v55  ;;  %v1730_v55 = vor.u32 %v1729_v46, %v1725_v41  ;;  %v1722_v61 = vrot.slane %v1720_v52, 1  ;;  %v1747_v41 = vrot.slane %v1603_v36, 1  ;;  %v1607_v46 = vld [vmem:[#allocation2 + $0x30] sm:$0x1e] }
 0x176   : > { %2598 = vmatprep.subr.bf16.mxu1 %v10009_v58  ;;  %v1718_v58 = vshrl.u32 %v1601_v43, 16  ;;  %v1709_v2 = vor.u32 %v1708_v60, %v1704_v57  ;;  %v1751_v51 = vrot.slane %v1607_v46, 1  ;;  %v1611_v60 = vld [vmem:[#allocation2 + $0x50] sm:$0x1e]  ;;  %v10108_v46 = vld [vmem:[#allocation2 + $0x28] ss:$16 sps:$4 sm:$0xff]  }
 0x177   : > { %v8471_v62 = vcombine.low %v1716_v54, %v1730_v55  ;;  %v8454_v43 = vcombine.low %v1747_v41, %v1749_v37  ;;  %v1758_v55 = vrot.slane %v1614_v49, 1  ;;  %v10097_v36 = vld [vmem:[%s13056_s3 + $0xd4] ss:$8 sps:$4 sm:$0xff]   ;;  %v10095_v37 = vld [vmem:[%s13056_s3 + $0xd0] ss:$8 sps:$4 sm:$0xff]  }
 0x178   : > { %2558 = vmatmul.mubr.bf16.vlgmr.msra.gmra.mrb[16].mxu1 %v8452_v7  ;;  %v10025_v7 = vld [vmem:[%s13056_s3 + $0x560] ss:$8 sps:$4 sm:$0xff]   ;;  %v10101_v41 = vld [vmem:[%s13056_s3 + $0xf0] ss:$8 sps:$4 sm:$0xff]  }
 0x179   : > { %2567 = vmatprep.mubr.bf16.mxu1 %v8459_v13  ;;  %2599 = vmatpush1.bf16.msra.mxu1 %v10007_v3  ;;  %v1723_v3 = vor.u32 %v1722_v61, %v1718_v58  ;;  %v10028_v13 = vld [vmem:[%s13056_s3 + $0x570] ss:$8 sps:$4 sm:$0xff]   ;;  %v10066_v58 = vld [vmem:[%s13056_s3 + $0x34] ss:$8 sps:$4 sm:$0xff]   ;;  %v1613_v61 = vld [vmem:[#allocation2 + $0x60] sm:$0x1e] }
 0x17a   : > { %2600 = vmatprep.subr.bf16.mxu1 %v10012_v4  ;;  %v10027_v4 = vld [vmem:[%s13056_s3 + $0x564] ss:$8 sps:$4 sm:$0xff]   ;;  %v10113_v49 = vld [vmem:[%s13056_s3 + $0x120] ss:$8 sps:$4 sm:$0xff]  }
 0x17b   : > { %v8470_v10 = vcombine.low %v1709_v2, %v1723_v3  ;;  %v1755_v2 = vrot.slane %v1611_v60, 1  ;;  %v1757_v3 = vrot.slane %v1613_v61, 1  ;;  %v10120_v60 = vld [vmem:[#allocation2 + $0x40] ss:$16 sps:$4 sm:$0xff]   ;;  %v10127_v61 = vld [vmem:[%s13056_s3 + $0x154] ss:$8 sps:$4 sm:$0xff]  }
 0x17d   : > { %2601 = vmatpush1.bf16.msra.mxu1 %v10010_v19  ;;  %v10042_v19 = vld [vmem:[%s13056_s3 + $0x5b4] ss:$8 sps:$4 sm:$0xff]   ;;  %v8466_v8 = vcombine.low %v1755_v2, %v1757_v3  ;;  %v10125_v3 = vld [vmem:[%s13056_s3 + $0x150] ss:$8 sps:$4 sm:$0xff]  }
 0x17e   : > { %2602 = vmatprep.subr.bf16.mxu1 %v10015_v27  ;;  %v10048_v27 = vld [vmem:[%s13056_s3 + $0x5d4] ss:$8 sps:$4 sm:$0xff]  }
 0x180   : > { %2568 = vmatmul.mubr.bf16.gmra.mrb[20].mxu1 %v8458_v39 }
 0x181   : > { %2577 = vmatprep.mubr.bf16.mxu1 %v8465_v44  ;;  %2603 = vmatpush1.bf16.msra.mxu1 %v10013_v33  ;;  %v1608_v33 = vld [vmem:[#allocation2 + $0x38] sm:$0x1e] }
 0x182   : > { %2604 = vmatprep.subr.bf16.mxu1 %v10018_v34  ;;  %v1610_v34 = vld [vmem:[#allocation2 + $0x48] sm:$0x1e]  ;;  %v1752_v39 = vrot.slane %v1608_v33, 1  ;;  %v10060_v44 = vld [vmem:[%s13056_s3 + $0x14] ss:$8 sps:$4 sm:$0xff]  }
 0x183   : > { %v1754_v40 = vrot.slane %v1610_v34, 1  ;;  %v10089_v33 = vld [vmem:[%s13056_s3 + $0xb0] ss:$8 sps:$4 sm:$0xff]   ;;  %v10094_v34 = vld [vmem:[%s13056_s3 + $0xc4] ss:$8 sps:$4 sm:$0xff]  }
 0x185   : > { %2605 = vmatpush1.bf16.msra.mxu1 %v10016_v47  ;;  %v8461_v45 = vcombine.low %v1752_v39, %v1754_v40  ;;  %v1609_v47 = vld [vmem:[#allocation2 + $0x40] sm:$0x1e]  ;;  %v10103_v40 = vld [vmem:[%s13056_s3 + $0xf4] ss:$8 sps:$4 sm:$0xff]  }
 0x186   : > { %2606 = vmatprep.subr.bf16.mxu1 %v10021_v48  ;;  %v1612_v48 = vld [vmem:[#allocation2 + $0x58] sm:$0x1e]  ;;  %v1753_v52 = vrot.slane %v1609_v47, 1  ;;  %v10098_v39 = vld [vmem:[%s13056_s3 + $0xe0] ss:$8 sps:$4 sm:$0xff]  }
 0x187   : > { %v1756_v54 = vrot.slane %v1612_v48, 1  ;;  %v10109_v47 = vld [vmem:[%s13056_s3 + $0x110] ss:$8 sps:$4 sm:$0xff]   ;;  %v10115_v48 = vld [vmem:[%s13056_s3 + $0x124] ss:$8 sps:$4 sm:$0xff]  }
 0x188   : > { %2578 = vmatmul.mubr.bf16.gmra.mrb[24].mxu1 %v8464_v59  ;;  %v8460_v57 = vcombine.low %v1751_v51, %v1753_v52  ;;  %v10119_v51 = vld [vmem:[%s13056_s3 + $0x134] ss:$8 sps:$4 sm:$0xff]   ;;  %v10116_v52 = vld [vmem:[#allocation2 + $0x48] ss:$16 sps:$4 sm:$0xff]  }
 0x189   : > { %2587 = vmatprep.mubr.bf16.mxu1 %v8471_v62  ;;  %2607 = vmatpush1.bf16.msra.mxu1 %v10019_v53  ;;  %v10063_v53 = vld [vmem:[%s13056_s3 + $0x24] ss:$8 sps:$4 sm:$0xff]   ;;  %v8467_v59 = vcombine.low %v1756_v54, %v1758_v55  ;;  %v1616_v62 = vld [vmem:[#allocation2 + $0x78] sm:$0x1e] }
 0x18a   : > { %2608 = vmatprep.subr.bf16.mxu1 %v10024_v56  ;;  %v10061_v56 = vld [vmem:[%s13056_s3 + $0x20] ss:$8 sps:$4 sm:$0xff]   ;;  %v1760_v25 = vrot.slane %v1616_v62, 1  ;;  %v1238_v54 = vld [vmem:[#allocation2 + $0x18] sm:$0x1f] }
 0x18b   : > { %v10117_v55 = vld [vmem:[%s13056_s3 + $0x130] ss:$8 sps:$4 sm:$0xff]  }
 0x18c   : > { %v10124_v62 = vld [vmem:[#allocation2 + $0x68] ss:$16 sps:$4 sm:$0xff]  }
 0x18d   : > { %2609 = vmatpush1.bf16.msra.mxu1 %v10022_v0  ;;  %v10064_v0 = vld [vmem:[%s13056_s3 + $0x30] ss:$8 sps:$4 sm:$0xff]  }
 0x18e   : > { %2610 = vmatprep.subr.bf16.mxu1 %v10027_v4  ;;  %v10069_v4 = vld [vmem:[%s13056_s3 + $0x44] ss:$8 sps:$4 sm:$0xff]  }
 0x190   : > { %2588 = vmatmul.mubr.bf16.gmra.mrb[28].mxu1 %v8470_v10  ;;  %v10072_v10 = vld [vmem:[%s13056_s3 + $0x54] ss:$8 sps:$4 sm:$0xff]  }
 0x191   : > { %2611 = vmatpush1.bf16.msra.mxu1 %v10025_v7  ;;  %2630 = vmatprep.mubr.bf16.mxu1 %v8455_v12  ;;  %v10067_v7 = vld [vmem:[%s13056_s3 + $0x40] ss:$8 sps:$4 sm:$0xff]   ;;  %v1615_v12 = vld [vmem:[#allocation2 + $0x70] sm:$0x1e] }
 0x192   : > { %2612 = vmatprep.subr.bf16.mxu1 %v10030_v11  ;;  %v8473_v11 = vcombine.low %v1760_v25, %v1762_v6  ;;  %v10131_v25 = vld [vmem:[%s13056_s3 + $0x164] ss:$8 sps:$4 sm:$0xff]  }
 0x195   : > { %2613 = vmatpush1.bf16.msra.mxu1 %v10028_v13  ;;  %v1617_v13 = vld [vmem:[#allocation2 + $0x80] sm:$0x1e] }
 0x196   : > { %2614 = vmatprep.subr.bf16.mxu1 %v10033_v14  ;;  %v10070_v14 = vld [vmem:[%s13056_s3 + $0x50] ss:$8 sps:$4 sm:$0xff]  }
 0x199   : > { %2615 = vmatpush1.bf16.msra.mxu1 %v10031_v26  ;;  %v1759_v26 = vrot.slane %v1615_v12, 1 }
 0x19a   : > { %2616 = vmatprep.subr.bf16.mxu1 %v10036_v15  ;;  %v1761_v15 = vrot.slane %v1617_v13, 1  ;;  %v10132_v13 = vld [vmem:[%s13056_s3 + $0x170] ss:$8 sps:$4 sm:$0xff]  }
 0x19d   : > { %2617 = vmatpush1.bf16.msra.mxu1 %v10034_v16  ;;  %v10075_v16 = vld [vmem:[%s13056_s3 + $0x64] ss:$8 sps:$4 sm:$0xff]  }
 0x19e   : > { %2618 = vmatprep.subr.bf16.mxu1 %v10039_v17  ;;  %v10073_v17 = vld [vmem:[%s13056_s3 + $0x60] ss:$8 sps:$4 sm:$0xff]  }
 0x1a1   : > { %2619 = vmatpush1.bf16.msra.mxu1 %v10037_v18  ;;  %v8472_v18 = vcombine.low %v1759_v26, %v1761_v15  ;;  %v10135_v26 = vld [vmem:[%s13056_s3 + $0x180] ss:$8 sps:$4 sm:$0xff]   ;;  %v10140_v15 = vld [vmem:[%s13056_s3 + $0x194] ss:$8 sps:$4 sm:$0xff]  }
 0x1a2   : > { %2620 = vmatprep.subr.bf16.mxu1 %v10042_v19  ;;  %v10079_v19 = vld [vmem:[%s13056_s3 + $0x74] ss:$8 sps:$4 sm:$0xff]  }
 0x1a5   : > { %2621 = vmatpush1.bf16.msra.mxu1 %v10040_v20  ;;  %v10076_v20 = vld [vmem:[#allocation2 + $0x8] ss:$16 sps:$4 sm:$0xff]  }
 0x1a6   : > { %2622 = vmatprep.subr.bf16.mxu1 %v10045_v21  ;;  %v10077_v21 = vld [vmem:[%s13056_s3 + $0x70] ss:$8 sps:$4 sm:$0xff]  }
 0x1a9   : > { %2623 = vmatpush1.bf16.msra.mxu1 %v10043_v5  ;;  %v10082_v5 = vld [vmem:[%s13056_s3 + $0x84] ss:$8 sps:$4 sm:$0xff]  }
 0x1aa   : > { %2624 = vmatprep.subr.bf16.mxu1 %v10048_v27  ;;  %v10080_v27 = vld [vmem:[%s13056_s3 + $0x80] ss:$8 sps:$4 sm:$0xff]  }
 0x1ad   : > { %2625 = vmatpush1.bf16.msra.mxu1 %v10046_v28  ;;  %v10085_v28 = vld [vmem:[%s13056_s3 + $0x94] ss:$8 sps:$4 sm:$0xff]  }
 0x1ae   : > { %2626 = vmatprep.subr.bf16.mxu1 %v10051_v29  ;;  %v10083_v29 = vld [vmem:[%s13056_s3 + $0x90] ss:$8 sps:$4 sm:$0xff]  }
 0x1b1   : > { %2627 = vmatpush1.bf16.msra.mxu1 %v10049_v30  ;;  %v10088_v30 = vld [vmem:[%s13056_s3 + $0xa4] ss:$8 sps:$4 sm:$0xff]  }
 0x1b2   : > { %2628 = vmatprep.subr.bf16.mxu1 %v10054_v31  ;;  %v10086_v31 = vld [vmem:[%s13056_s3 + $0xa0] ss:$8 sps:$4 sm:$0xff]  }
 0x1b5   : > { %2629 = vmatpush1.bf16.msra.mxu1 %v10052_v35  ;;  %v10092_v35 = vld [vmem:[%s13056_s3 + $0xc0] ss:$8 sps:$4 sm:$0xff]  }
 0x1b6   : > { %3199 = vmatprep.subr.bf16.mxu1 %v10057_v38  ;;  %v10100_v38 = vld [vmem:[%s13056_s3 + $0xe4] ss:$8 sps:$4 sm:$0xff]  }
 0x1b8   : > { %2631 = vmatmul.mubr.bf16.vlgmr.msra.gmra.mrb[16].mxu1 %v8454_v43  ;;  %v10105_v43 = vld [vmem:[%s13056_s3 + $0x100] ss:$8 sps:$4 sm:$0xff]  }
 0x1b9   : > { %2640 = vmatprep.mubr.bf16.mxu1 %v8461_v45  ;;  %3200 = vmatpush1.bf16.msra.mxu1 %v10055_v42  ;;  %v10107_v42 = vld [vmem:[%s13056_s3 + $0x104] ss:$8 sps:$4 sm:$0xff]   ;;  %v10111_v45 = vld [vmem:[%s13056_s3 + $0x114] ss:$8 sps:$4 sm:$0xff]  }
 0x1ba   : > { %3201 = vmatprep.subr.bf16.mxu1 %v10060_v44  ;;  %v10104_v44 = vld [vmem:[#allocation2] ss:$16 sps:$4 sm:$0xff]  }
 0x1bd   : > { %3202 = vmatpush1.bf16.msra.mxu1 %v10058_v50  ;;  %v10112_v50 = vld [vmem:[#allocation2 + $0x20] ss:$16 sps:$4 sm:$0xff]  }
 0x1be   : > { %3203 = vmatprep.subr.bf16.mxu1 %v10063_v53  ;;  %v1236_v53 = vld [vmem:[#allocation2 + $0x8] sm:$0x1f] }
 0x1bf   : > { %v1275_v63 = vshrl.u32 %v1236_v53, 16 }
 0x1c0   : > { %2641 = vmatmul.mubr.bf16.gmra.mrb[20].mxu1 %v8460_v57  ;;  %v1277_v57 = vshll.u32 %v1236_v53, 16 }
 0x1c1   : > { %2650 = vmatprep.mubr.bf16.mxu1 %v8467_v59  ;;  %3204 = vmatpush1.bf16.msra.mxu1 %v10061_v56  ;;  %v10123_v56 = vld [vmem:[%s13056_s3 + $0x144] ss:$8 sps:$4 sm:$0xff]   ;;  %v10121_v59 = vld [vmem:[%s13056_s3 + $0x140] ss:$8 sps:$4 sm:$0xff]  }
 0x1c2   : > { %3205 = vmatprep.subr.bf16.mxu1 %v10066_v58  ;;  %v1291_v58 = vshll.u32 %v1238_v54, 16 }
 0x1c4   : > { %v1293_v2 = vrot.slane %v1291_v58, 1 }
 0x1c5   : > { %3206 = vmatpush1.bf16.msra.mxu1 %v10064_v0  ;;  %v1279_v0 = vrot.slane %v1277_v57, 1 }
 0x1c6   : > { %3207 = vmatprep.subr.bf16.mxu1 %v10069_v4  ;;  %v1289_v4 = vshrl.u32 %v1238_v54, 16  ;;  %v10161_v54 = vld [vmem:[%s13056_s3 + $0x204] ss:$8 sps:$4 sm:$0xff]  }
 0x1c7   : > { %v1280_v6 = vor.u32 %v1279_v0, %v1275_v63 }
 0x1c8   : > { %2651 = vmatmul.mubr.bf16.gmra.mrb[24].mxu1 %v8466_v8  ;;  %v10129_v8 = vld [vmem:[%s13056_s3 + $0x160] ss:$8 sps:$4 sm:$0xff]  }
 0x1c9   : > { %2660 = vmatprep.mubr.bf16.mxu1 %v8473_v11  ;;  %3208 = vmatpush1.bf16.msra.mxu1 %v10067_v7  ;;  %v1294_v7 = vor.u32 %v1293_v2, %v1289_v4  ;;  %v10134_v11 = vld [vmem:[%s13056_s3 + $0x174] ss:$8 sps:$4 sm:$0xff]  }
 0x1ca   : > { %3209 = vmatprep.subr.bf16.mxu1 %v10072_v10  ;;  %v10128_v10 = vld [vmem:[#allocation2 + $0x60] ss:$16 sps:$4 sm:$0xff]   ;;  %v10164_v2 = vld [vmem:[%s13056_s3 + $0x214] ss:$8 sps:$4 sm:$0xff]  }
 0x1cb   : > { %v8573_v12 = vcombine.low %v1280_v6, %v1294_v7 }
 0x1cd   : > { %3210 = vmatpush1.bf16.msra.mxu1 %v10070_v14  ;;  %v10137_v14 = vld [vmem:[%s13056_s3 + $0x184] ss:$8 sps:$4 sm:$0xff]  }
 0x1ce   : > { %3211 = vmatprep.subr.bf16.mxu1 %v10075_v16  ;;  %v10138_v16 = vld [vmem:[%s13056_s3 + $0x190] ss:$8 sps:$4 sm:$0xff]  }
 0x1d0   : > { %2661 = vmatmul.mubr.bf16.gmra.mrb[28].mxu1 %v8472_v18  ;;  %v10141_v18 = vld [vmem:[%s13056_s3 + $0x1a0] ss:$8 sps:$4 sm:$0xff]  }
 0x1d1   : > { %3212 = vmatpush1.bf16.msra.mxu1 %v10073_v17  ;;  %3231 = vmatprep.mubr.bf16.mxu1 %v10076_v20  ;;  %v10143_v17 = vld [vmem:[%s13056_s3 + $0x1a4] ss:$8 sps:$4 sm:$0xff]   ;;  %v10144_v20 = vld [vmem:[%s13056_s3 + $0x1b0] ss:$8 sps:$4 sm:$0xff]  }
 0x1d2   : > { %3213 = vmatprep.subr.bf16.mxu1 %v10079_v19  ;;  %v10146_v19 = vld [vmem:[%s13056_s3 + $0x1b4] ss:$8 sps:$4 sm:$0xff]  }
 0x1d5   : > { %3214 = vmatpush1.bf16.msra.mxu1 %v10077_v21  ;;  %v10149_v21 = vld [vmem:[%s13056_s3 + $0x1c4] ss:$8 sps:$4 sm:$0xff]  }
 0x1d6   : > { %3215 = vmatprep.subr.bf16.mxu1 %v10082_v5  ;;  %v10147_v5 = vld [vmem:[%s13056_s3 + $0x1c0] ss:$8 sps:$4 sm:$0xff]  }
 0x1d9   : > { %3216 = vmatpush1.bf16.msra.mxu1 %v10080_v27  ;;  %v10152_v27 = vld [vmem:[%s13056_s3 + $0x1d4] ss:$8 sps:$4 sm:$0xff]  }
 0x1da   : > { %3217 = vmatprep.subr.bf16.mxu1 %v10085_v28  ;;  %v1235_v28 = vld [vmem:[#allocation2] sm:$0x1f] }
 0x1dd   : > { %3218 = vmatpush1.bf16.msra.mxu1 %v10083_v29  ;;  %v1237_v29 = vld [vmem:[#allocation2 + $0x10] sm:$0x1f] }
 0x1de   : > { %3219 = vmatprep.subr.bf16.mxu1 %v10088_v30  ;;  %v1242_v30 = vld [vmem:[#allocation2 + $0x38] sm:$0x1f] }
 0x1e1   : > { %3220 = vmatpush1.bf16.msra.mxu1 %v10086_v31  ;;  %v10150_v31 = vld [vmem:[%s13056_s3 + $0x1d0] ss:$8 sps:$4 sm:$0xff]  }
 0x1e2   : > { %3221 = vmatprep.subr.bf16.mxu1 %v10091_v32  ;;  %v10155_v32 = vld [vmem:[%s13056_s3 + $0x1e4] ss:$8 sps:$4 sm:$0xff]  }
 0x1e5   : > { %3222 = vmatpush1.bf16.msra.mxu1 %v10089_v33  ;;  %v1270_v33 = vshll.u32 %v1235_v28, 16 }
 0x1e6   : > { %3223 = vmatprep.subr.bf16.mxu1 %v10094_v34  ;;  %v1284_v34 = vshll.u32 %v1237_v29, 16 }
 0x1e9   : > { %3224 = vmatpush1.bf16.msra.mxu1 %v10092_v35  ;;  %v1240_v35 = vld [vmem:[#allocation2 + $0x28] sm:$0x1f] }
 0x1ea   : > { %3225 = vmatprep.subr.bf16.mxu1 %v10097_v36  ;;  %v1319_v36 = vshll.u32 %v1242_v30, 16 }
 0x1ed   : > { %3226 = vmatpush1.bf16.msra.mxu1 %v10095_v37  ;;  %v10153_v37 = vld [vmem:[%s13056_s3 + $0x1e0] ss:$8 sps:$4 sm:$0xff]  }
 0x1ee   : > { %3227 = vmatprep.subr.bf16.mxu1 %v10100_v38  ;;  %v1305_v38 = vshll.u32 %v1240_v35, 16 }
 0x1f1   : > { %3228 = vmatpush1.bf16.msra.mxu1 %v10098_v39  ;;  %v10158_v39 = vld [vmem:[%s13056_s3 + $0x1f4] ss:$8 sps:$4 sm:$0xff]  }
 0x1f2   : > { %3229 = vmatprep.subr.bf16.mxu1 %v10103_v40  ;;  %v1268_v40 = vshrl.u32 %v1235_v28, 16 }
 0x1f5   : > { %3230 = vmatpush1.bf16.msra.mxu1 %v10101_v41  ;;  %v1272_v41 = vrot.slane %v1270_v33, 1 }
 0x1f6   : > { %3272 = vmatprep.subr.bf16.mxu1 %v10107_v42  ;;  %v1286_v42 = vrot.slane %v1284_v34, 1  ;;  %v10170_v34 = vld [vmem:[%s13056_s3 + $0x234] ss:$8 sps:$4 sm:$0xff]  }
 0x1f8   : > { %3232 = vmatmul.mubr.bf16.vlgmr.msra.gmra.mrb[16].mxu1 %v10104_v44  ;;  %v1321_v44 = vrot.slane %v1319_v36, 1 }
 0x1f9   : > { %3241 = vmatprep.mubr.bf16.mxu1 %v10108_v46  ;;  %3273 = vmatpush1.bf16.msra.mxu1 %v10105_v43  ;;  %v1317_v43 = vshrl.u32 %v1242_v30, 16  ;;  %v1282_v46 = vshrl.u32 %v1237_v29, 16  ;;  %v10165_v29 = vld [vmem:[%s13056_s3 + $0x220] ss:$8 sps:$4 sm:$0xff]  }
 0x1fa   : > { %3274 = vmatprep.subr.bf16.mxu1 %v10111_v45  ;;  %v1241_v45 = vld [vmem:[#allocation2 + $0x30] sm:$0x1f] }
 0x1fb   : > { %v1287_v53 = vor.u32 %v1286_v42, %v1282_v46  ;;  %v1322_v57 = vor.u32 %v1321_v44, %v1317_v43  ;;  %v1310_v63 = vshrl.u32 %v1241_v45, 16  ;;  %v1249_v42 = vld [vmem:[#allocation2 + $0x70] sm:$0x1f]  ;;  %v10173_v46 = vld [vmem:[%s13056_s3 + $0x244] ss:$8 sps:$4 sm:$0xff]  }
 0x1fc   : > { %v10168_v43 = vld [vmem:[%s13056_s3 + $0x230] ss:$8 sps:$4 sm:$0xff]  }
 0x1fd   : > { %3275 = vmatpush1.bf16.msra.mxu1 %v10109_v47  ;;  %v1244_v47 = vld [vmem:[#allocation2 + $0x48] sm:$0x1f] }
 0x1fe   : > { %3276 = vmatprep.subr.bf16.mxu1 %v10115_v48  ;;  %v1246_v48 = vld [vmem:[#allocation2 + $0x58] sm:$0x1f]  ;;  %v1333_v58 = vshll.u32 %v1244_v47, 16  ;;  %v1331_v4 = vshrl.u32 %v1244_v47, 16 }
 0x200   : > { %3242 = vmatmul.mubr.bf16.gmra.mrb[20].mxu1 %v10112_v50  ;;  %v1307_v50 = vrot.slane %v1305_v38, 1  ;;  %v1335_v7 = vrot.slane %v1333_v58, 1 }
 0x201   : > { %3251 = vmatprep.mubr.bf16.mxu1 %v10116_v52  ;;  %3277 = vmatpush1.bf16.msra.mxu1 %v10113_v49  ;;  %v10156_v49 = vld [vmem:[%s13056_s3 + $0x1f0] ss:$8 sps:$4 sm:$0xff]   ;;  %v1273_v52 = vor.u32 %v1272_v41, %v1268_v40 }
 0x202   : > { %3278 = vmatprep.subr.bf16.mxu1 %v10119_v51  ;;  %v1239_v51 = vld [vmem:[#allocation2 + $0x20] sm:$0x1f] }
 0x203   : > { %v8572_v0 = vcombine.low %v1273_v52, %v1287_v53 }
 0x205   : > { %3279 = vmatpush1.bf16.msra.mxu1 %v10117_v55  ;;  %v1312_v55 = vshll.u32 %v1241_v45, 16 }
 0x206   : > { %3280 = vmatprep.subr.bf16.mxu1 %v10123_v56  ;;  %v1303_v56 = vshrl.u32 %v1240_v35, 16 }
 0x208   : > { %3252 = vmatmul.mubr.bf16.gmra.mrb[24].mxu1 %v10120_v60  ;;  %v1298_v60 = vshll.u32 %v1239_v51, 16 }
 0x209   : > { %3261 = vmatprep.mubr.bf16.mxu1 %v10124_v62  ;;  %3281 = vmatpush1.bf16.msra.mxu1 %v10121_v59  ;;  %v1347_v59 = vshll.u32 %v1246_v48, 16  ;;  %v1308_v62 = vor.u32 %v1307_v50, %v1303_v56  ;;  %v1366_v56 = vshrl.u32 %v1249_v42, 16 }
 0x20a   : > { %3282 = vmatprep.subr.bf16.mxu1 %v10127_v61  ;;  %v10159_v61 = vld [vmem:[%s13056_s3 + $0x200] ss:$8 sps:$4 sm:$0xff]  }
 0x20b   : > { %v8579_v6 = vcombine.low %v1308_v62, %v1322_v57 }
 0x20d   : > { %3283 = vmatpush1.bf16.msra.mxu1 %v10125_v3  ;;  %v1314_v3 = vrot.slane %v1312_v55, 1 }
 0x20e   : > { %3284 = vmatprep.subr.bf16.mxu1 %v10131_v25  ;;  %v1243_v25 = vld [vmem:[#allocation2 + $0x40] sm:$0x1f] }
 0x20f   : > { %v1324_v30 = vshrl.u32 %v1243_v25, 16 }
 0x210   : > { %3262 = vmatmul.mubr.bf16.gmra.mrb[28].mxu1 %v10128_v10  ;;  %v1349_v10 = vrot.slane %v1347_v59, 1  ;;  %v1252_v59 = vld [vmem:[#allocation2 + $0x8] sm:$0x1e] }
 0x211   : > { %3285 = vmatpush1.bf16.msra.mxu1 %v10129_v8  ;;  %3304 = vmatprep.mubr.bf16.mxu1 %v8573_v12  ;;  %v1345_v8 = vshrl.u32 %v1246_v48, 16  ;;  %v1300_v12 = vrot.slane %v1298_v60, 1  ;;  %v1368_v48 = vshll.u32 %v1249_v42, 16  ;;  %v1254_v60 = vld [vmem:[#allocation2 + $0x18] sm:$0x1e] }
 0x212   : > { %3286 = vmatprep.subr.bf16.mxu1 %v10134_v11  ;;  %v1245_v11 = vld [vmem:[#allocation2 + $0x50] sm:$0x1f] }
 0x213   : > { %v1370_v57 = vrot.slane %v1368_v48, 1  ;;  %v1257_v42 = vld [vmem:[#allocation2 + $0x30] sm:$0x1e]  ;;  %v10215_v48 = vld [vmem:[%s13056_s3 + $0x624] ss:$8 sps:$4 sm:$0xff]  }
 0x215   : > { %3287 = vmatpush1.bf16.msra.mxu1 %v10132_v13  ;;  %v1248_v13 = vld [vmem:[#allocation2 + $0x68] sm:$0x1f] }
 0x216   : > { %3288 = vmatprep.subr.bf16.mxu1 %v10137_v14  ;;  %v1250_v14 = vld [vmem:[#allocation2 + $0x78] sm:$0x1f] }
 0x217   : > { %v1373_v40 = vshrl.u32 %v1250_v14, 16 }
 0x219   : > { %3289 = vmatpush1.bf16.msra.mxu1 %v10135_v26  ;;  %v10162_v26 = vld [vmem:[%s13056_s3 + $0x210] ss:$8 sps:$4 sm:$0xff]  }
 0x21a   : > { %3290 = vmatprep.subr.bf16.mxu1 %v10140_v15  ;;  %v1296_v15 = vshrl.u32 %v1239_v51, 16  ;;  %v10171_v51 = vld [vmem:[%s13056_s3 + $0x240] ss:$8 sps:$4 sm:$0xff]  }
 0x21c   : > { %v1301_v28 = vor.u32 %v1300_v12, %v1296_v15  ;;  %v10188_v12 = vld [vmem:[%s13056_s3 + $0x294] ss:$8 sps:$4 sm:$0xff]  }
 0x21d   : > { %3291 = vmatpush1.bf16.msra.mxu1 %v10138_v16  ;;  %v1315_v16 = vor.u32 %v1314_v3, %v1310_v63  ;;  %v1371_v63 = vor.u32 %v1370_v57, %v1366_v56  ;;  %v1398_v3 = vrot.slane %v1254_v60, 1  ;;  %v10194_v15 = vld [vmem:[%s13056_s3 + $0x2b4] ss:$8 sps:$4 sm:$0xff]   ;;  %v1259_v56 = vld [vmem:[#allocation2 + $0x40] sm:$0x1e] }
 0x21e   : > { %3292 = vmatprep.subr.bf16.mxu1 %v10143_v17  ;;  %v10167_v17 = vld [vmem:[%s13056_s3 + $0x224] ss:$8 sps:$4 sm:$0xff]   ;;  %v1261_v57 = vld [vmem:[#allocation2 + $0x50] sm:$0x1e] }
 0x21f   : > { %v8578_v33 = vcombine.low %v1301_v28, %v1315_v16  ;;  %v10192_v16 = vld [vmem:[%s13056_s3 + $0x2b0] ss:$8 sps:$4 sm:$0xff]   ;;  %v1251_v28 = vld [vmem:[#allocation2] sm:$0x1e] }
 0x220   : > { %v10216_v60 = vld [vmem:[%s13056_s3 + $0x630] ss:$8 sps:$4 sm:$0xff]  }
 0x221   : > { %3293 = vmatpush1.bf16.msra.mxu1 %v10141_v18  ;;  %v1326_v18 = vshll.u32 %v1243_v25, 16 }
 0x222   : > { %3294 = vmatprep.subr.bf16.mxu1 %v10146_v19  ;;  %v1340_v19 = vshll.u32 %v1245_v11, 16 }
 0x223   : > { %v1328_v35 = vrot.slane %v1326_v18, 1  ;;  %v10195_v18 = vld [vmem:[%s13056_s3 + $0x2c0] ss:$8 sps:$4 sm:$0xff]  }
 0x224   : > { %v1342_v36 = vrot.slane %v1340_v19, 1  ;;  %v10200_v19 = vld [vmem:[%s13056_s3 + $0x2d4] ss:$8 sps:$4 sm:$0xff]  }
 0x225   : > { %3295 = vmatpush1.bf16.msra.mxu1 %v10144_v20  ;;  %v1336_v20 = vor.u32 %v1335_v7, %v1331_v4  ;;  %v1329_v44 = vor.u32 %v1328_v35, %v1324_v30  ;;  %v10177_v4 = vld [vmem:[%s13056_s3 + $0x260] ss:$8 sps:$4 sm:$0xff]   ;;  %v1258_v30 = vld [vmem:[#allocation2 + $0x38] sm:$0x1e] }
 0x226   : > { %3296 = vmatprep.subr.bf16.mxu1 %v10149_v21  ;;  %v1350_v21 = vor.u32 %v1349_v10, %v1345_v8  ;;  %v10180_v8 = vld [vmem:[%s13056_s3 + $0x270] ss:$8 sps:$4 sm:$0xff]   ;;  %v10185_v10 = vld [vmem:[%s13056_s3 + $0x284] ss:$8 sps:$4 sm:$0xff]  }
 0x227   : > { %v1256_v35 = vld [vmem:[#allocation2 + $0x28] sm:$0x1e] }
 0x228   : > { %v8585_v38 = vcombine.low %v1336_v20, %v1350_v21  ;;  %v10198_v20 = vld [vmem:[%s13056_s3 + $0x2d0] ss:$8 sps:$4 sm:$0xff]   ;;  %v10203_v21 = vld [vmem:[%s13056_s3 + $0x2e4] ss:$8 sps:$4 sm:$0xff]  }
 0x229   : > { %3297 = vmatpush1.bf16.msra.mxu1 %v10147_v5  ;;  %v1361_v5 = vshll.u32 %v1248_v13, 16 }
 0x22a   : > { %3298 = vmatprep.subr.bf16.mxu1 %v10152_v27  ;;  %v1375_v27 = vshll.u32 %v1250_v14, 16  ;;  %v10191_v14 = vld [vmem:[%s13056_s3 + $0x2a4] ss:$8 sps:$4 sm:$0xff]  }
 0x22c   : > { %v1377_v41 = vrot.slane %v1375_v27, 1  ;;  %v10206_v27 = vld [vmem:[%s13056_s3 + $0x2f4] ss:$8 sps:$4 sm:$0xff]  }
 0x22d   : > { %3299 = vmatpush1.bf16.msra.mxu1 %v10150_v31  ;;  %v1338_v31 = vshrl.u32 %v1245_v11, 16  ;;  %v10183_v11 = vld [vmem:[%s13056_s3 + $0x280] ss:$8 sps:$4 sm:$0xff]  }
 0x22e   : > { %3300 = vmatprep.subr.bf16.mxu1 %v10155_v32  ;;  %v1247_v32 = vld [vmem:[#allocation2 + $0x60] sm:$0x1f]  ;;  %v1378_v50 = vor.u32 %v1377_v41, %v1373_v40  ;;  %v10212_v40 = vld [vmem:[%s13056_s3 + $0x614] ss:$8 sps:$4 sm:$0xff]  }
 0x22f   : > { %v1343_v45 = vor.u32 %v1342_v36, %v1338_v31  ;;  %v1354_v47 = vshll.u32 %v1247_v32, 16  ;;  %v1352_v52 = vshrl.u32 %v1247_v32, 16  ;;  %v10204_v31 = vld [vmem:[%s13056_s3 + $0x2f0] ss:$8 sps:$4 sm:$0xff]   ;;  %v1395_v32 = vrot.slane %v1251_v28, 1 }
 0x230   : > { %v1402_v36 = vrot.slane %v1258_v30, 1  ;;  %v10243_v28 = vld [vmem:[%s13056_s3 + $0x6b4] ss:$8 sps:$4 sm:$0xff]   ;;  %v10246_v30 = vld [vmem:[%s13056_s3 + $0x6c4] ss:$8 sps:$4 sm:$0xff]  }
 0x231   : > { %3301 = vmatpush1.bf16.msra.mxu1 %v10153_v37  ;;  %v1359_v37 = vshrl.u32 %v1248_v13, 16  ;;  %v8584_v53 = vcombine.low %v1329_v44, %v1343_v45  ;;  %v1356_v55 = vrot.slane %v1354_v47, 1  ;;  %v10186_v13 = vld [vmem:[%s13056_s3 + $0x290] ss:$8 sps:$4 sm:$0xff]   ;;  %v1401_v47 = vrot.slane %v1257_v42, 1 }
 0x232   : > { %3302 = vmatprep.subr.bf16.mxu1 %v10158_v39  ;;  %v1363_v39 = vrot.slane %v1361_v5, 1  ;;  %v10201_v5 = vld [vmem:[%s13056_s3 + $0x2e0] ss:$8 sps:$4 sm:$0xff]   ;;  %v1262_v44 = vld [vmem:[#allocation2 + $0x58] sm:$0x1e] }
 0x233   : > { %v1357_v62 = vor.u32 %v1356_v55, %v1352_v52  ;;  %v10210_v45 = vld [vmem:[%s13056_s3 + $0x610] ss:$8 sps:$4 sm:$0xff]   ;;  %v10213_v52 = vld [vmem:[%s13056_s3 + $0x620] ss:$8 sps:$4 sm:$0xff]  }
 0x234   : > { %v10260_v42 = vld [vmem:[#allocation2 + $0x48] ss:$16 sps:$4 sm:$0xff]  }
 0x235   : > { %3303 = vmatpush1.bf16.msra.mxu1 %v10156_v49  ;;  %v1364_v49 = vor.u32 %v1363_v39, %v1359_v37  ;;  %v8590_v25 = vcombine.low %v1357_v62, %v1371_v63  ;;  %v10207_v37 = vld [vmem:[%s13056_s3 + $0x600] ss:$8 sps:$4 sm:$0xff]   ;;  %v1405_v62 = vrot.slane %v1261_v57, 1  ;;  %v10221_v63 = vld [vmem:[%s13056_s3 + $0x644] ss:$8 sps:$4 sm:$0xff]  }
 0x236   : > { %3345 = vmatprep.subr.bf16.mxu1 %v10161_v54  ;;  %v10176_v54 = vld [vmem:[%s13056_s3 + $0x254] ss:$8 sps:$4 sm:$0xff]  }
 0x237   : > { %v8591_v58 = vcombine.low %v1364_v49, %v1378_v50  ;;  %v1406_v50 = vrot.slane %v1262_v44, 1  ;;  %v10267_v44 = vld [vmem:[%s13056_s3 + $0x724] ss:$8 sps:$4 sm:$0xff]   ;;  %v10279_v57 = vld [vmem:[%s13056_s3 + $0x754] ss:$8 sps:$4 sm:$0xff]  }
 0x238   : > { %3305 = vmatmul.mubr.bf16.vlgmr.msra.gmra.mrb[16].mxu1 %v8572_v0  ;;  %v10179_v0 = vld [vmem:[%s13056_s3 + $0x264] ss:$8 sps:$4 sm:$0xff]  }
 0x239   : > { %3314 = vmatprep.mubr.bf16.mxu1 %v8579_v6  ;;  %3346 = vmatpush1.bf16.msra.mxu1 %v10159_v61  ;;  %v10174_v61 = vld [vmem:[%s13056_s3 + $0x250] ss:$8 sps:$4 sm:$0xff]   ;;  %v10182_v6 = vld [vmem:[%s13056_s3 + $0x274] ss:$8 sps:$4 sm:$0xff]  }
 0x23a   : > { %3347 = vmatprep.subr.bf16.mxu1 %v10164_v2  ;;  %v1396_v2 = vrot.slane %v1252_v59, 1  ;;  %v1266_v59 = vld [vmem:[#allocation2 + $0x78] sm:$0x1e] }
 0x23c   : > { %v8575_v7 = vcombine.low %v1396_v2, %v1398_v3  ;;  %v1410_v2 = vrot.slane %v1266_v59, 1  ;;  %v10219_v3 = vld [vmem:[%s13056_s3 + $0x640] ss:$8 sps:$4 sm:$0xff]  }
 0x23d   : > { %3348 = vmatpush1.bf16.msra.mxu1 %v10162_v26  ;;  %v10189_v26 = vld [vmem:[%s13056_s3 + $0x2a0] ss:$8 sps:$4 sm:$0xff]  }
 0x23e   : > { %3349 = vmatprep.subr.bf16.mxu1 %v10167_v17  ;;  %v10197_v17 = vld [vmem:[%s13056_s3 + $0x2c4] ss:$8 sps:$4 sm:$0xff]  }
 0x240   : > { %3315 = vmatmul.mubr.bf16.gmra.mrb[20].mxu1 %v8578_v33 }
 0x241   : > { %3324 = vmatprep.mubr.bf16.mxu1 %v8585_v38  ;;  %3350 = vmatpush1.bf16.msra.mxu1 %v10165_v29  ;;  %v1253_v29 = vld [vmem:[#allocation2 + $0x10] sm:$0x1e]  ;;  %v1400_v38 = vrot.slane %v1256_v35, 1  ;;  %v10250_v35 = vld [vmem:[%s13056_s3 + $0x6e0] ss:$8 sps:$4 sm:$0xff]  }
 0x242   : > { %3351 = vmatprep.subr.bf16.mxu1 %v10170_v34  ;;  %v1397_v33 = vrot.slane %v1253_v29, 1  ;;  %v10209_v34 = vld [vmem:[%s13056_s3 + $0x604] ss:$8 sps:$4 sm:$0xff]   ;;  %v10241_v29 = vld [vmem:[%s13056_s3 + $0x6b0] ss:$8 sps:$4 sm:$0xff]  }
 0x243   : > { %v8581_v41 = vcombine.low %v1400_v38, %v1402_v36  ;;  %v10255_v36 = vld [vmem:[%s13056_s3 + $0x6f4] ss:$8 sps:$4 sm:$0xff]   ;;  %v10259_v38 = vld [vmem:[%s13056_s3 + $0x704] ss:$8 sps:$4 sm:$0xff]  }
 0x244   : > { %v8574_v39 = vcombine.low %v1395_v32, %v1397_v33  ;;  %v10249_v32 = vld [vmem:[%s13056_s3 + $0x6d4] ss:$8 sps:$4 sm:$0xff]   ;;  %v10247_v33 = vld [vmem:[%s13056_s3 + $0x6d0] ss:$8 sps:$4 sm:$0xff]  }
 0x245   : > { %3352 = vmatpush1.bf16.msra.mxu1 %v10168_v43  ;;  %v1260_v43 = vld [vmem:[#allocation2 + $0x48] sm:$0x1e] }
 0x246   : > { %3353 = vmatprep.subr.bf16.mxu1 %v10173_v46  ;;  %v1255_v46 = vld [vmem:[#allocation2 + $0x20] sm:$0x1e]  ;;  %v1404_v49 = vrot.slane %v1260_v43, 1  ;;  %v10261_v43 = vld [vmem:[%s13056_s3 + $0x710] ss:$8 sps:$4 sm:$0xff]  }
 0x248   : > { %3325 = vmatmul.mubr.bf16.gmra.mrb[24].mxu1 %v8584_v53  ;;  %v8587_v55 = vcombine.low %v1404_v49, %v1406_v50  ;;  %v3438_v49 = vld [vmem:[#allocation2 + $0x38] sm:$0x1f] }
 0x249   : > { %3334 = vmatprep.mubr.bf16.mxu1 %v8591_v58  ;;  %3354 = vmatpush1.bf16.msra.mxu1 %v10171_v51  ;;  %v1399_v51 = vrot.slane %v1255_v46, 1  ;;  %v1264_v58 = vld [vmem:[#allocation2 + $0x68] sm:$0x1e]  ;;  %v10264_v46 = vld [vmem:[#allocation2 + $0x40] ss:$16 sps:$4 sm:$0xff]   ;;  %v3489_v59 = vshrl.u32 %v3438_v49, 16 }
 0x24a   : > { %3355 = vmatprep.subr.bf16.mxu1 %v10176_v54  ;;  %v10218_v54 = vld [vmem:[%s13056_s3 + $0x634] ss:$8 sps:$4 sm:$0xff]   ;;  %v10269_v50 = vld [vmem:[%s13056_s3 + $0x730] ss:$8 sps:$4 sm:$0xff]  }
 0x24b   : > { %v8580_v53 = vcombine.low %v1399_v51, %v1401_v47  ;;  %v10271_v47 = vld [vmem:[%s13056_s3 + $0x734] ss:$8 sps:$4 sm:$0xff]   ;;  %v10275_v51 = vld [vmem:[%s13056_s3 + $0x744] ss:$8 sps:$4 sm:$0xff]  }
 0x24d   : > { %3356 = vmatpush1.bf16.msra.mxu1 %v10174_v61  ;;  %v1403_v61 = vrot.slane %v1259_v56, 1  ;;  %v10272_v56 = vld [vmem:[#allocation2 + $0x60] ss:$16 sps:$4 sm:$0xff]  }
 0x24e   : > { %3357 = vmatprep.subr.bf16.mxu1 %v10179_v0  ;;  %v1408_v0 = vrot.slane %v1264_v58, 1  ;;  %v10276_v58 = vld [vmem:[#allocation2 + $0x88] ss:$16 sps:$4 sm:$0xff]  }
 0x250   : > { %3335 = vmatmul.mubr.bf16.gmra.mrb[28].mxu1 %v8590_v25  ;;  %v10224_v25 = vld [vmem:[%s13056_s3 + $0x654] ss:$8 sps:$4 sm:$0xff]  }
 0x251   : > { %3358 = vmatpush1.bf16.msra.mxu1 %v10177_v4  ;;  %3377 = vmatprep.mubr.bf16.mxu1 %v8575_v7  ;;  %v8586_v4 = vcombine.low %v1403_v61, %v1405_v62  ;;  %v1263_v7 = vld [vmem:[#allocation2 + $0x60] sm:$0x1e]  ;;  %v10277_v61 = vld [vmem:[%s13056_s3 + $0x750] ss:$8 sps:$4 sm:$0xff]  }
 0x252   : > { %3359 = vmatprep.subr.bf16.mxu1 %v10182_v6  ;;  %v8593_v6 = vcombine.low %v1408_v0, %v1410_v2 }
 0x255   : > { %3360 = vmatpush1.bf16.msra.mxu1 %v10180_v8  ;;  %v1265_v8 = vld [vmem:[#allocation2 + $0x70] sm:$0x1e] }
 0x256   : > { %3361 = vmatprep.subr.bf16.mxu1 %v10185_v10  ;;  %v10222_v10 = vld [vmem:[%s13056_s3 + $0x650] ss:$8 sps:$4 sm:$0xff]  }
 0x259   : > { %3362 = vmatpush1.bf16.msra.mxu1 %v10183_v11  ;;  %v1407_v11 = vrot.slane %v1263_v7, 1 }
 0x25a   : > { %3363 = vmatprep.subr.bf16.mxu1 %v10188_v12  ;;  %v1409_v12 = vrot.slane %v1265_v8, 1  ;;  %v10359_v8 = vld [vmem:[%s13058_s5 + $0x300] ss:$8 sps:$4 sm:$0xff]  }
 0x25d   : > { %3364 = vmatpush1.bf16.msra.mxu1 %v10186_v13  ;;  %v10227_v13 = vld [vmem:[%s13056_s3 + $0x664] ss:$8 sps:$4 sm:$0xff]  }
 0x25e   : > { %3365 = vmatprep.subr.bf16.mxu1 %v10191_v14  ;;  %v10225_v14 = vld [vmem:[%s13056_s3 + $0x660] ss:$8 sps:$4 sm:$0xff]  }
 0x261   : > { %3366 = vmatpush1.bf16.msra.mxu1 %v10189_v26  ;;  %v8592_v26 = vcombine.low %v1407_v11, %v1409_v12  ;;  %v10284_v11 = vld [vmem:[%s13056_s3 + $0x770] ss:$8 sps:$4 sm:$0xff]   ;;  %v10364_v12 = vld [vmem:[%s13058_s5 + $0x314] ss:$8 sps:$4 sm:$0xff]  }
 0x262   : > { %3367 = vmatprep.subr.bf16.mxu1 %v10194_v15  ;;  %v10231_v15 = vld [vmem:[%s13056_s3 + $0x674] ss:$8 sps:$4 sm:$0xff]  }
 0x265   : > { %3368 = vmatpush1.bf16.msra.mxu1 %v10192_v16  ;;  %v10228_v16 = vld [vmem:[#allocation2 + $0x28] ss:$16 sps:$4 sm:$0xff]  }
 0x266   : > { %3369 = vmatprep.subr.bf16.mxu1 %v10197_v17  ;;  %v10229_v17 = vld [vmem:[%s13056_s3 + $0x670] ss:$8 sps:$4 sm:$0xff]  }
 0x269   : > { %3370 = vmatpush1.bf16.msra.mxu1 %v10195_v18  ;;  %v10234_v18 = vld [vmem:[%s13056_s3 + $0x684] ss:$8 sps:$4 sm:$0xff]  }
 0x26a   : > { %3371 = vmatprep.subr.bf16.mxu1 %v10200_v19  ;;  %v10232_v19 = vld [vmem:[%s13056_s3 + $0x680] ss:$8 sps:$4 sm:$0xff]  }
 0x26d   : > { %3372 = vmatpush1.bf16.msra.mxu1 %v10198_v20  ;;  %v10237_v20 = vld [vmem:[%s13056_s3 + $0x694] ss:$8 sps:$4 sm:$0xff]  }
 0x26e   : > { %3373 = vmatprep.subr.bf16.mxu1 %v10203_v21  ;;  %v10235_v21 = vld [vmem:[%s13056_s3 + $0x690] ss:$8 sps:$4 sm:$0xff]  }
 0x271   : > { %3374 = vmatpush1.bf16.msra.mxu1 %v10201_v5  ;;  %v10240_v5 = vld [vmem:[%s13056_s3 + $0x6a4] ss:$8 sps:$4 sm:$0xff]  }
 0x272   : > { %3375 = vmatprep.subr.bf16.mxu1 %v10206_v27  ;;  %v10238_v27 = vld [vmem:[%s13056_s3 + $0x6a0] ss:$8 sps:$4 sm:$0xff]  }
 0x275   : > { %3376 = vmatpush1.bf16.msra.mxu1 %v10204_v31  ;;  %v10244_v31 = vld [vmem:[%s13056_s3 + $0x6c0] ss:$8 sps:$4 sm:$0xff]  }
 0x276   : > { %4300 = vmatprep.subr.bf16.mxu1 %v10209_v34  ;;  %v10252_v34 = vld [vmem:[%s13056_s3 + $0x6e4] ss:$8 sps:$4 sm:$0xff]  }
 0x278   : > { %3378 = vmatmul.mubr.bf16.vlgmr.msra.gmra.mrb[16].mxu1 %v8574_v39  ;;  %v10257_v39 = vld [vmem:[%s13056_s3 + $0x700] ss:$8 sps:$4 sm:$0xff]  }
 0x279   : > { %3387 = vmatprep.mubr.bf16.mxu1 %v8581_v41  ;;  %4301 = vmatpush1.bf16.msra.mxu1 %v10207_v37  ;;  %v10253_v37 = vld [vmem:[%s13056_s3 + $0x6f0] ss:$8 sps:$4 sm:$0xff]   ;;  %v10263_v41 = vld [vmem:[%s13056_s3 + $0x714] ss:$8 sps:$4 sm:$0xff]  }
 0x27a   : > { %4302 = vmatprep.subr.bf16.mxu1 %v10212_v40  ;;  %v10256_v40 = vld [vmem:[#allocation2 + $0x20] ss:$16 sps:$4 sm:$0xff]  }
 0x27d   : > { %4303 = vmatpush1.bf16.msra.mxu1 %v10210_v45  ;;  %v10265_v45 = vld [vmem:[%s13056_s3 + $0x720] ss:$8 sps:$4 sm:$0xff]  }
 0x27e   : > { %4304 = vmatprep.subr.bf16.mxu1 %v10215_v48  ;;  %v10268_v48 = vld [vmem:[#allocation2 + $0x68] ss:$16 sps:$4 sm:$0xff]  }
 0x280   : > { %3388 = vmatmul.mubr.bf16.gmra.mrb[20].mxu1 %v8580_v53  ;;  %v3491_v53 = vshll.u32 %v3438_v49, 16  ;;  %v10380_v49 = vld [vmem:[%s13058_s5 + $0x370] ss:$8 sps:$4 sm:$0xff]  }
 0x281   : > { %3397 = vmatprep.mubr.bf16.mxu1 %v8587_v55  ;;  %4305 = vmatpush1.bf16.msra.mxu1 %v10213_v52  ;;  %v3436_v52 = vld [vmem:[#allocation2 + $0x28] sm:$0x1f] }
 0x282   : > { %4306 = vmatprep.subr.bf16.mxu1 %v10218_v54  ;;  %v10273_v54 = vld [vmem:[%s13056_s3 + $0x740] ss:$8 sps:$4 sm:$0xff]   ;;  %v3477_v55 = vshll.u32 %v3436_v52, 16  ;;  %v3475_v0 = vshrl.u32 %v3436_v52, 16 }
 0x284   : > { %v3479_v62 = vrot.slane %v3477_v55, 1  ;;  %v10310_v55 = vld [vmem:[%s13056_s3 + $0x7f4] ss:$8 sps:$4 sm:$0xff]  }
 0x285   : > { %4307 = vmatpush1.bf16.msra.mxu1 %v10216_v60  ;;  %v3493_v60 = vrot.slane %v3491_v53, 1 }
 0x286   : > { %4308 = vmatprep.subr.bf16.mxu1 %v10221_v63  ;;  %v10283_v63 = vld [vmem:[%s13056_s3 + $0x764] ss:$8 sps:$4 sm:$0xff]  }
 0x287   : > { %v3494_v2 = vor.u32 %v3493_v60, %v3489_v59 }
 0x288   : > { %3398 = vmatmul.mubr.bf16.gmra.mrb[24].mxu1 %v8586_v4  ;;  %v3480_v4 = vor.u32 %v3479_v62, %v3475_v0  ;;  %v10383_v62 = vld [vmem:[%s13058_s5 + $0x380] ss:$8 sps:$4 sm:$0xff]   ;;  %v3446_v0 = vld [vmem:[#allocation2 + $0x78] sm:$0x1f] }
 0x289   : > { %3407 = vmatprep.mubr.bf16.mxu1 %v8593_v6  ;;  %4309 = vmatpush1.bf16.msra.mxu1 %v10219_v3  ;;  %v10281_v3 = vld [vmem:[%s13056_s3 + $0x760] ss:$8 sps:$4 sm:$0xff]   ;;  %v10286_v6 = vld [vmem:[%s13056_s3 + $0x774] ss:$8 sps:$4 sm:$0xff]  }
 0x28a   : > { %4310 = vmatprep.subr.bf16.mxu1 %v10224_v25  ;;  %v10280_v25 = vld [vmem:[#allocation2 + $0x80] ss:$16 sps:$4 sm:$0xff]   ;;  %v8789_v7 = vcombine.low %v3480_v4, %v3494_v2  ;;  %v10388_v2 = vld [vmem:[%s13058_s5 + $0x394] ss:$8 sps:$4 sm:$0xff]  }
 0x28d   : > { %4311 = vmatpush1.bf16.msra.mxu1 %v10222_v10  ;;  %v10361_v10 = vld [vmem:[%s13058_s5 + $0x304] ss:$8 sps:$4 sm:$0xff]  }
 0x28e   : > { %4312 = vmatprep.subr.bf16.mxu1 %v10227_v13  ;;  %v10289_v13 = vld [vmem:[%s13056_s3 + $0x784] ss:$8 sps:$4 sm:$0xff]   ;;  %6035 = vmatprep.subr.bf16.mxu0 %v10361_v10 }
 0x28f   : > { %6036 = vmatpush1.bf16.msra.mxu0 %v10359_v8 }
 0x290   : > { %3408 = vmatmul.mubr.bf16.gmra.mrb[28].mxu1 %v8592_v26  ;;  %6037 = vmatprep.subr.bf16.mxu0 %v10364_v12  ;;  %v10367_v26 = vld [vmem:[%s13058_s5 + $0x324] ss:$8 sps:$4 sm:$0xff]  }
 0x291   : > { %4313 = vmatpush1.bf16.msra.mxu1 %v10225_v14  ;;  %4332 = vmatprep.mubr.bf16.mxu1 %v10228_v16  ;;  %v10362_v14 = vld [vmem:[%s13058_s5 + $0x310] ss:$8 sps:$4 sm:$0xff]   ;;  %v10292_v16 = vld [vmem:[%s13056_s3 + $0x794] ss:$8 sps:$4 sm:$0xff]  }
 0x292   : > { %4314 = vmatprep.subr.bf16.mxu1 %v10231_v15  ;;  %v10287_v15 = vld [vmem:[%s13056_s3 + $0x780] ss:$8 sps:$4 sm:$0xff]  }
 0x293   : > { %6038 = vmatpush1.bf16.msra.mxu0 %v10362_v14  ;;  %v10386_v14 = vld [vmem:[%s13058_s5 + $0x390] ss:$8 sps:$4 sm:$0xff]  }
 0x294   : > { %6039 = vmatprep.subr.bf16.mxu0 %v10367_v26 }
 0x295   : > { %4315 = vmatpush1.bf16.msra.mxu1 %v10229_v17  ;;  %v10365_v17 = vld [vmem:[%s13058_s5 + $0x320] ss:$8 sps:$4 sm:$0xff]  }
 0x296   : > { %4316 = vmatprep.subr.bf16.mxu1 %v10234_v18  ;;  %v10370_v18 = vld [vmem:[%s13058_s5 + $0x334] ss:$8 sps:$4 sm:$0xff]  }
 0x297   : > { %6040 = vmatpush1.bf16.msra.mxu0 %v10365_v17 }
 0x298   : > { %6041 = vmatprep.subr.bf16.mxu0 %v10370_v18 }
 0x299   : > { %4317 = vmatpush1.bf16.msra.mxu1 %v10232_v19  ;;  %v10290_v19 = vld [vmem:[%s13056_s3 + $0x790] ss:$8 sps:$4 sm:$0xff]  }
 0x29a   : > { %4318 = vmatprep.subr.bf16.mxu1 %v10237_v20  ;;  %v10295_v20 = vld [vmem:[%s13056_s3 + $0x7a4] ss:$8 sps:$4 sm:$0xff]  }
 0x29d   : > { %4319 = vmatpush1.bf16.msra.mxu1 %v10235_v21  ;;  %v10368_v21 = vld [vmem:[%s13058_s5 + $0x330] ss:$8 sps:$4 sm:$0xff]  }
 0x29e   : > { %4320 = vmatprep.subr.bf16.mxu1 %v10240_v5  ;;  %v10373_v5 = vld [vmem:[%s13058_s5 + $0x344] ss:$8 sps:$4 sm:$0xff]   ;;  %6042 = vmatpush1.bf16.msra.mxu0 %v10368_v21 }
 0x29f   : > { %6043 = vmatprep.subr.bf16.mxu0 %v10373_v5 }
 0x2a1   : > { %4321 = vmatpush1.bf16.msra.mxu1 %v10238_v27  ;;  %v10293_v27 = vld [vmem:[%s13056_s3 + $0x7a0] ss:$8 sps:$4 sm:$0xff]  }
 0x2a2   : > { %4322 = vmatprep.subr.bf16.mxu1 %v10243_v28  ;;  %v10298_v28 = vld [vmem:[%s13056_s3 + $0x7b4] ss:$8 sps:$4 sm:$0xff]  }
 0x2a5   : > { %4323 = vmatpush1.bf16.msra.mxu1 %v10241_v29  ;;  %v10371_v29 = vld [vmem:[%s13058_s5 + $0x340] ss:$8 sps:$4 sm:$0xff]  }
 0x2a6   : > { %4324 = vmatprep.subr.bf16.mxu1 %v10246_v30  ;;  %v10376_v30 = vld [vmem:[%s13058_s5 + $0x354] ss:$8 sps:$4 sm:$0xff]   ;;  %6044 = vmatpush1.bf16.msra.mxu0 %v10371_v29 }
 0x2a7   : > { %6045 = vmatprep.subr.bf16.mxu0 %v10376_v30  ;;  %v3545_v30 = vshrl.u32 %v3446_v0, 16 }
 0x2a9   : > { %4325 = vmatpush1.bf16.msra.mxu1 %v10244_v31  ;;  %v10296_v31 = vld [vmem:[%s13056_s3 + $0x7b0] ss:$8 sps:$4 sm:$0xff]  }
 0x2aa   : > { %4326 = vmatprep.subr.bf16.mxu1 %v10249_v32  ;;  %v10301_v32 = vld [vmem:[%s13056_s3 + $0x7c4] ss:$8 sps:$4 sm:$0xff]  }
 0x2ad   : > { %4327 = vmatpush1.bf16.msra.mxu1 %v10247_v33  ;;  %v10374_v33 = vld [vmem:[%s13058_s5 + $0x350] ss:$8 sps:$4 sm:$0xff]  }
 0x2ae   : > { %4328 = vmatprep.subr.bf16.mxu1 %v10252_v34  ;;  %v10379_v34 = vld [vmem:[%s13058_s5 + $0x364] ss:$8 sps:$4 sm:$0xff]   ;;  %6046 = vmatpush1.bf16.msra.mxu0 %v10374_v33 }
 0x2af   : > { %6047 = vmatprep.subr.bf16.mxu0 %v10379_v34  ;;  %v3448_v33 = vld [vmem:[#allocation2 + $0x88] sm:$0x1f]  ;;  %v3450_v34 = vld [vmem:[#allocation2 + $0x98] sm:$0x1f] }
 0x2b1   : > { %4329 = vmatpush1.bf16.msra.mxu1 %v10250_v35  ;;  %v10299_v35 = vld [vmem:[%s13056_s3 + $0x7c0] ss:$8 sps:$4 sm:$0xff]  }
 0x2b2   : > { %4330 = vmatprep.subr.bf16.mxu1 %v10255_v36  ;;  %v10304_v36 = vld [vmem:[%s13056_s3 + $0x7d4] ss:$8 sps:$4 sm:$0xff]  }
 0x2b5   : > { %4331 = vmatpush1.bf16.msra.mxu1 %v10253_v37  ;;  %v3435_v37 = vld [vmem:[#allocation2 + $0x20] sm:$0x1f] }
 0x2b6   : > { %4373 = vmatprep.subr.bf16.mxu1 %v10259_v38  ;;  %v3437_v38 = vld [vmem:[#allocation2 + $0x30] sm:$0x1f] }
 0x2b7   : > { %v3482_v53 = vshrl.u32 %v3437_v38, 16 }
 0x2b8   : > { %4333 = vmatmul.mubr.bf16.vlgmr.msra.gmra.mrb[16].mxu1 %v10256_v40  ;;  %v3440_v40 = vld [vmem:[#allocation2 + $0x48] sm:$0x1f] }
 0x2b9   : > { %4342 = vmatprep.mubr.bf16.mxu1 %v10260_v42  ;;  %4374 = vmatpush1.bf16.msra.mxu1 %v10257_v39  ;;  %v10377_v39 = vld [vmem:[%s13058_s5 + $0x360] ss:$8 sps:$4 sm:$0xff]   ;;  %v10382_v42 = vld [vmem:[%s13058_s5 + $0x374] ss:$8 sps:$4 sm:$0xff]  }
 0x2ba   : > { %4375 = vmatprep.subr.bf16.mxu1 %v10263_v41  ;;  %v3442_v41 = vld [vmem:[#allocation2 + $0x58] sm:$0x1f]  ;;  %6048 = vmatpush1.bf16.msra.mxu0 %v10377_v39  ;;  %v10319_v39 = vld [vmem:[%s13056_s3 + $0x824] ss:$8 sps:$4 sm:$0xff]  }
 0x2bb   : > { %6049 = vmatprep.subr.bf16.mxu0 %v10382_v42 }
 0x2bd   : > { %4376 = vmatpush1.bf16.msra.mxu1 %v10261_v43  ;;  %v10302_v43 = vld [vmem:[%s13056_s3 + $0x7d0] ss:$8 sps:$4 sm:$0xff]  }
 0x2be   : > { %4377 = vmatprep.subr.bf16.mxu1 %v10267_v44  ;;  %v3470_v44 = vshll.u32 %v3435_v37, 16  ;;  %6050 = vmatpush1.bf16.msra.mxu0 %v10380_v49 }
 0x2c0   : > { %4343 = vmatmul.mubr.bf16.gmra.mrb[20].mxu1 %v10264_v46  ;;  %v3484_v46 = vshll.u32 %v3437_v38, 16  ;;  %v3472_v52 = vrot.slane %v3470_v44, 1  ;;  %v3575_v44 = vshll.u32 %v3450_v34, 16 }
 0x2c1   : > { %4352 = vmatprep.mubr.bf16.mxu1 %v10268_v48  ;;  %4378 = vmatpush1.bf16.msra.mxu1 %v10265_v45  ;;  %v10307_v45 = vld [vmem:[%s13056_s3 + $0x7e4] ss:$8 sps:$4 sm:$0xff]   ;;  %v3519_v48 = vshll.u32 %v3442_v41, 16 }
 0x2c2   : > { %4379 = vmatprep.subr.bf16.mxu1 %v10271_v47  ;;  %v3505_v47 = vshll.u32 %v3440_v40, 16 }
 0x2c3   : > { %v3521_v60 = vrot.slane %v3519_v48, 1 }
 0x2c4   : > { %v3507_v59 = vrot.slane %v3505_v47, 1 }
 0x2c5   : > { %4380 = vmatpush1.bf16.msra.mxu1 %v10269_v50  ;;  %v10385_v50 = vld [vmem:[%s13058_s5 + $0x384] ss:$8 sps:$4 sm:$0xff]  }
 0x2c6   : > { %4381 = vmatprep.subr.bf16.mxu1 %v10275_v51  ;;  %v10305_v51 = vld [vmem:[%s13056_s3 + $0x7e0] ss:$8 sps:$4 sm:$0xff]   ;;  %6051 = vmatprep.subr.bf16.mxu0 %v10385_v50  ;;  %v10322_v50 = vld [vmem:[%s13056_s3 + $0x834] ss:$8 sps:$4 sm:$0xff]  }
 0x2c7   : > { %6052 = vmatpush1.bf16.msra.mxu0 %v10383_v62  ;;  %v10325_v62 = vld [vmem:[%s13056_s3 + $0x844] ss:$8 sps:$4 sm:$0xff]  }
 0x2c8   : > { %4353 = vmatmul.mubr.bf16.gmra.mrb[24].mxu1 %v10272_v56  ;;  %v3486_v56 = vrot.slane %v3484_v46, 1  ;;  %6053 = vmatprep.subr.bf16.mxu0 %v10388_v2 }
 0x2c9   : > { %4362 = vmatprep.mubr.bf16.mxu1 %v10276_v58  ;;  %4382 = vmatpush1.bf16.msra.mxu1 %v10273_v54  ;;  %v3503_v54 = vshrl.u32 %v3440_v40, 16  ;;  %v3439_v58 = vld [vmem:[#allocation2 + $0x40] sm:$0x1f] }
 0x2ca   : > { %4383 = vmatprep.subr.bf16.mxu1 %v10279_v57  ;;  %v3517_v57 = vshrl.u32 %v3442_v41, 16  ;;  %v3498_v4 = vshll.u32 %v3439_v58, 16 }
 0x2cb   : > { %v3508_v10 = vor.u32 %v3507_v59, %v3503_v54  ;;  %6054 = vmatpush1.bf16.msra.mxu0 %v10386_v14  ;;  %v10320_v59 = vld [vmem:[%s13056_s3 + $0x830] ss:$8 sps:$4 sm:$0xff]  }
 0x2cc   : > { %v3500_v17 = vrot.slane %v3498_v4, 1  ;;  %v10323_v4 = vld [vmem:[%s13056_s3 + $0x840] ss:$8 sps:$4 sm:$0xff]   ;;  %v10326_v14 = vld [vmem:[%s13056_s3 + $0x850] ss:$8 sps:$4 sm:$0xff]  }
 0x2cd   : > { %4384 = vmatpush1.bf16.msra.mxu1 %v10277_v61  ;;  %v3441_v61 = vld [vmem:[#allocation2 + $0x50] sm:$0x1f] }
 0x2ce   : > { %4385 = vmatprep.subr.bf16.mxu1 %v10283_v63  ;;  %v3444_v63 = vld [vmem:[#allocation2 + $0x68] sm:$0x1f]  ;;  %v3512_v8 = vshll.u32 %v3441_v61, 16  ;;  %v3510_v18 = vshrl.u32 %v3441_v61, 16 }
 0x2cf   : > { %v3533_v12 = vshll.u32 %v3444_v63, 16  ;;  %v3531_v5 = vshrl.u32 %v3444_v63, 16 }
 0x2d0   : > { %4363 = vmatmul.mubr.bf16.gmra.mrb[28].mxu1 %v10280_v25  ;;  %v3468_v25 = vshrl.u32 %v3435_v37, 16  ;;  %v3514_v21 = vrot.slane %v3512_v8, 1 }
 0x2d1   : > { %4386 = vmatpush1.bf16.msra.mxu1 %v10281_v3  ;;  %4405 = vmatprep.mubr.bf16.mxu1 %v8789_v7  ;;  %v10308_v3 = vld [vmem:[%s13056_s3 + $0x7f0] ss:$8 sps:$4 sm:$0xff]   ;;  %v10313_v7 = vld [vmem:[%s13056_s3 + $0x804] ss:$8 sps:$4 sm:$0xff]   ;;  %v3535_v29 = vrot.slane %v3533_v12, 1 }
 0x2d2   : > { %4387 = vmatprep.subr.bf16.mxu1 %v10286_v6  ;;  %v3487_v6 = vor.u32 %v3486_v56, %v3482_v53  ;;  %v3473_v26 = vor.u32 %v3472_v52, %v3468_v25  ;;  %v3515_v38 = vor.u32 %v3514_v21, %v3510_v18  ;;  %v3559_v52 = vshrl.u32 %v3448_v33, 16  ;;  %v3447_v53 = vld [vmem:[#allocation2 + $0x80] sm:$0x1f] }
 0x2d3   : > { %v3536_v41 = vor.u32 %v3535_v29, %v3531_v5  ;;  %v3573_v56 = vshrl.u32 %v3450_v34, 16  ;;  %v3554_v63 = vshll.u32 %v3447_v53, 16  ;;  %v3552_v25 = vshrl.u32 %v3447_v53, 16  ;;  %v10334_v5 = vld [vmem:[%s13056_s3 + $0x874] ss:$8 sps:$4 sm:$0xff]  }
 0x2d4   : > { %v10337_v29 = vld [vmem:[%s13056_s3 + $0x884] ss:$8 sps:$4 sm:$0xff]   ;;  %v10341_v34 = vld [vmem:[%s13056_s3 + $0x8a0] ss:$8 sps:$4 sm:$0xff]  }
 0x2d5   : > { %4388 = vmatpush1.bf16.msra.mxu1 %v10284_v11  ;;  %v3522_v11 = vor.u32 %v3521_v60, %v3517_v57  ;;  %v3577_v57 = vrot.slane %v3575_v44, 1  ;;  %v3556_v8 = vrot.slane %v3554_v63, 1  ;;  %v3453_v44 = vld [vmem:[#allocation2 + $0x30] sm:$0x1e] }
 0x2d6   : > { %4389 = vmatprep.subr.bf16.mxu1 %v10289_v13  ;;  %v3547_v13 = vshll.u32 %v3446_v0, 16 }
 0x2d9   : > { %4390 = vmatpush1.bf16.msra.mxu1 %v10287_v15  ;;  %v10311_v15 = vld [vmem:[%s13056_s3 + $0x800] ss:$8 sps:$4 sm:$0xff]  }
 0x2da   : > { %4391 = vmatprep.subr.bf16.mxu1 %v10292_v16  ;;  %v3496_v16 = vshrl.u32 %v3439_v58, 16  ;;  %v3449_v58 = vld [vmem:[#allocation2 + $0x90] sm:$0x1f] }
 0x2db   : > { %v3568_v0 = vshll.u32 %v3449_v58, 16 }
 0x2dc   : > { %v3501_v37 = vor.u32 %v3500_v17, %v3496_v16  ;;  %v10331_v16 = vld [vmem:[%s13056_s3 + $0x864] ss:$8 sps:$4 sm:$0xff]  }
 0x2dd   : > { %4392 = vmatpush1.bf16.msra.mxu1 %v10290_v19  ;;  %v8788_v19 = vcombine.low %v3473_v26, %v3487_v6  ;;  %v3557_v26 = vor.u32 %v3556_v8, %v3552_v25  ;;  %v3452_v17 = vld [vmem:[#allocation2 + $0x28] sm:$0x1e]  ;;  %v3466_v25 = vld [vmem:[#allocation2 + $0x98] sm:$0x1e] }
 0x2de   : > { %4393 = vmatprep.subr.bf16.mxu1 %v10295_v20  ;;  %v10316_v20 = vld [vmem:[%s13056_s3 + $0x814] ss:$8 sps:$4 sm:$0xff]   ;;  %v8794_v49 = vcombine.low %v3501_v37, %v3515_v38  ;;  %v10349_v37 = vld [vmem:[%s13056_s3 + $0x8c4] ss:$8 sps:$4 sm:$0xff]   ;;  %v10347_v38 = vld [vmem:[%s13056_s3 + $0x8c0] ss:$8 sps:$4 sm:$0xff]  }
 0x2e1   : > { %4394 = vmatpush1.bf16.msra.mxu1 %v10293_v27  ;;  %v3443_v27 = vld [vmem:[#allocation2 + $0x60] sm:$0x1f] }
 0x2e2   : > { %4395 = vmatprep.subr.bf16.mxu1 %v10298_v28  ;;  %v8795_v28 = vcombine.low %v3508_v10, %v3522_v11  ;;  %v3524_v46 = vshrl.u32 %v3443_v27, 16  ;;  %v3566_v10 = vshrl.u32 %v3449_v58, 16  ;;  %v3570_v11 = vrot.slane %v3568_v0, 1  ;;  %v3462_v58 = vld [vmem:[#allocation2 + $0x78] sm:$0x1e] }
 0x2e5   : > { %4396 = vmatpush1.bf16.msra.mxu1 %v10296_v31  ;;  %v3549_v31 = vrot.slane %v3547_v13, 1  ;;  %v3454_v13 = vld [vmem:[#allocation2 + $0x38] sm:$0x1e] }
 0x2e6   : > { %4397 = vmatprep.subr.bf16.mxu1 %v10301_v32  ;;  %v3445_v32 = vld [vmem:[#allocation2 + $0x70] sm:$0x1f]  ;;  %v3598_v18 = vrot.slane %v3454_v13, 1  ;;  %v3463_v13 = vld [vmem:[#allocation2 + $0x80] sm:$0x1e] }
 0x2e7   : > { %v3540_v40 = vshll.u32 %v3445_v32, 16  ;;  %v3550_v42 = vor.u32 %v3549_v31, %v3545_v30  ;;  %v3538_v48 = vshrl.u32 %v3445_v32, 16  ;;  %v10335_v30 = vld [vmem:[%s13056_s3 + $0x880] ss:$8 sps:$4 sm:$0xff]   ;;  %v10340_v31 = vld [vmem:[%s13056_s3 + $0x894] ss:$8 sps:$4 sm:$0xff]  }
 0x2e8   : > { %v10338_v32 = vld [vmem:[%s13056_s3 + $0x890] ss:$8 sps:$4 sm:$0xff]  }
 0x2e9   : > { %4398 = vmatpush1.bf16.msra.mxu1 %v10299_v35  ;;  %v10314_v35 = vld [vmem:[%s13056_s3 + $0x810] ss:$8 sps:$4 sm:$0xff]   ;;  %v8801_v54 = vcombine.low %v3536_v41, %v3550_v42  ;;  %v10355_v41 = vld [vmem:[%s13056_s3 + $0x8e4] ss:$8 sps:$4 sm:$0xff]   ;;  %v10353_v42 = vld [vmem:[%s13056_s3 + $0x8e0] ss:$8 sps:$4 sm:$0xff]  }
 0x2ea   : > { %4399 = vmatprep.subr.bf16.mxu1 %v10304_v36  ;;  %v3526_v36 = vshll.u32 %v3443_v27, 16 }
 0x2ec   : > { %v3528_v47 = vrot.slane %v3526_v36, 1  ;;  %v10344_v36 = vld [vmem:[%s13056_s3 + $0x8b0] ss:$8 sps:$4 sm:$0xff]  }
 0x2ed   : > { %4400 = vmatpush1.bf16.msra.mxu1 %v10302_v43  ;;  %v3561_v43 = vshll.u32 %v3448_v33, 16  ;;  %v10343_v33 = vld [vmem:[%s13056_s3 + $0x8a4] ss:$8 sps:$4 sm:$0xff]  }
 0x2ee   : > { %4401 = vmatprep.subr.bf16.mxu1 %v10307_v45  ;;  %v10317_v45 = vld [vmem:[%s13056_s3 + $0x820] ss:$8 sps:$4 sm:$0xff]   ;;  %v3529_v60 = vor.u32 %v3528_v47, %v3524_v46  ;;  %v3458_v46 = vld [vmem:[#allocation2 + $0x58] sm:$0x1e] }
 0x2ef   : > { %v10356_v47 = vld [vmem:[%s13056_s3 + $0x8f0] ss:$8 sps:$4 sm:$0xff]  }
 0x2f1   : > { %4402 = vmatpush1.bf16.msra.mxu1 %v10305_v51  ;;  %v3542_v51 = vrot.slane %v3540_v40, 1  ;;  %v10350_v40 = vld [vmem:[%s13056_s3 + $0x8d0] ss:$8 sps:$4 sm:$0xff]  }
 0x2f2   : > { %4403 = vmatprep.subr.bf16.mxu1 %v10310_v55  ;;  %v3563_v55 = vrot.slane %v3561_v43, 1  ;;  %v10358_v43 = vld [vmem:[%s13056_s3 + $0x8f4] ss:$8 sps:$4 sm:$0xff]  }
 0x2f3   : > { %v3543_v61 = vor.u32 %v3542_v51, %v3538_v48  ;;  %v3451_v48 = vld [vmem:[#allocation2 + $0x20] sm:$0x1e]  ;;  %v3602_v51 = vrot.slane %v3458_v46, 1 }
 0x2f4   : > { %v3564_v2 = vor.u32 %v3563_v55, %v3559_v52  ;;  %v3595_v52 = vrot.slane %v3451_v48, 1  ;;  %v3455_v55 = vld [vmem:[#allocation2 + $0x40] sm:$0x1e] }
 0x2f5   : > { %4404 = vmatpush1.bf16.msra.mxu1 %v10308_v3  ;;  %v3578_v3 = vor.u32 %v3577_v57, %v3573_v56  ;;  %v8800_v6 = vcombine.low %v3529_v60, %v3543_v61  ;;  %v3457_v56 = vld [vmem:[#allocation2 + $0x50] sm:$0x1e]  ;;  %v3460_v57 = vld [vmem:[#allocation2 + $0x68] sm:$0x1e] }
 0x2f6   : > { %4446 = vmatprep.subr.bf16.mxu1 %v10313_v7  ;;  %v10328_v7 = vld [vmem:[%s13056_s3 + $0x854] ss:$8 sps:$4 sm:$0xff]   ;;  %v3601_v60 = vrot.slane %v3457_v56, 1  ;;  %v3604_v61 = vrot.slane %v3460_v57, 1 }
 0x2f7   : > { %v8807_v12 = vcombine.low %v3564_v2, %v3578_v3  ;;  %v3459_v2 = vld [vmem:[#allocation2 + $0x60] sm:$0x1e]  ;;  %v3461_v3 = vld [vmem:[#allocation2 + $0x70] sm:$0x1e] }
 0x2f8   : > { %4406 = vmatmul.mubr.bf16.vlgmr.msra.gmra.mrb[16].mxu1 %v8788_v19  ;;  %v10329_v19 = vld [vmem:[%s13056_s3 + $0x860] ss:$8 sps:$4 sm:$0xff]  }
 0x2f9   : > { %4415 = vmatprep.mubr.bf16.mxu1 %v8795_v28  ;;  %4447 = vmatpush1.bf16.msra.mxu1 %v10311_v15  ;;  %v3571_v15 = vor.u32 %v3570_v11, %v3566_v10  ;;  %v10332_v28 = vld [vmem:[%s13056_s3 + $0x870] ss:$8 sps:$4 sm:$0xff]   ;;  %v3610_v10 = vrot.slane %v3466_v25, 1 }
 0x2fa   : > { %4448 = vmatprep.subr.bf16.mxu1 %v10316_v20  ;;  %v3596_v20 = vrot.slane %v3452_v17, 1  ;;  %v10389_v17 = vld [vmem:[%s13058_s5 + $0x3a0] ss:$8 sps:$4 sm:$0xff]  }
 0x2fb   : > { %v8806_v21 = vcombine.low %v3557_v26, %v3571_v15  ;;  %v3607_v26 = vrot.slane %v3463_v13, 1 }
 0x2fc   : > { %v8791_v27 = vcombine.low %v3596_v20, %v3598_v18  ;;  %v10391_v18 = vld [vmem:[%s13058_s5 + $0x3a4] ss:$8 sps:$4 sm:$0xff]   ;;  %v10392_v20 = vld [vmem:[%s13058_s5 + $0x3b0] ss:$8 sps:$4 sm:$0xff]  }
 0x2fd   : > { %4449 = vmatpush1.bf16.msra.mxu1 %v10314_v35  ;;  %v10346_v35 = vld [vmem:[%s13056_s3 + $0x8b4] ss:$8 sps:$4 sm:$0xff]   ;;  %6055 = vmatprep.subr.bf16.mxu0 %v10391_v18 }
 0x2fe   : > { %4450 = vmatprep.subr.bf16.mxu1 %v10319_v39  ;;  %v10352_v39 = vld [vmem:[%s13056_s3 + $0x8d4] ss:$8 sps:$4 sm:$0xff]   ;;  %6056 = vmatpush1.bf16.msra.mxu0 %v10389_v17 }
 0x300   : > { %4416 = vmatmul.mubr.bf16.gmra.mrb[20].mxu1 %v8794_v49  ;;  %v3597_v49 = vrot.slane %v3453_v44, 1 }
 0x301   : > { %4425 = vmatprep.mubr.bf16.mxu1 %v8801_v54  ;;  %4451 = vmatpush1.bf16.msra.mxu1 %v10317_v45  ;;  %v3456_v45 = vld [vmem:[#allocation2 + $0x48] sm:$0x1e] }
 0x302   : > { %4452 = vmatprep.subr.bf16.mxu1 %v10322_v50  ;;  %v3600_v50 = vrot.slane %v3456_v45, 1  ;;  %v8790_v53 = vcombine.low %v3595_v52, %v3597_v49 }
 0x304   : > { %v8797_v54 = vcombine.low %v3600_v50, %v3602_v51 }
 0x305   : > { %4453 = vmatpush1.bf16.msra.mxu1 %v10320_v59  ;;  %v3599_v59 = vrot.slane %v3455_v55, 1 }
 0x306   : > { %4454 = vmatprep.subr.bf16.mxu1 %v10325_v62  ;;  %v3606_v62 = vrot.slane %v3462_v58, 1 }
 0x307   : > { %v8796_v63 = vcombine.low %v3599_v59, %v3601_v60 }
 0x308   : > { %4426 = vmatmul.mubr.bf16.gmra.mrb[24].mxu1 %v8800_v6  ;;  %v8803_v0 = vcombine.low %v3604_v61, %v3606_v62  ;;  %v3603_v6 = vrot.slane %v3459_v2, 1 }
 0x309   : > { %4435 = vmatprep.mubr.bf16.mxu1 %v8807_v12  ;;  %4455 = vmatpush1.bf16.msra.mxu1 %v10323_v4  ;;  %v3464_v4 = vld [vmem:[#allocation2 + $0x88] sm:$0x1e] }
 0x30a   : > { %4456 = vmatprep.subr.bf16.mxu1 %v10328_v7  ;;  %v3605_v7 = vrot.slane %v3461_v3, 1  ;;  %v3608_v8 = vrot.slane %v3464_v4, 1 }
 0x30c   : > { %v8802_v11 = vcombine.low %v3603_v6, %v3605_v7  ;;  %v8809_v12 = vcombine.low %v3608_v8, %v3610_v10 }
 0x30d   : > { %4457 = vmatpush1.bf16.msra.mxu1 %v10326_v14  ;;  %v3465_v14 = vld [vmem:[#allocation2 + $0x90] sm:$0x1e] }
 0x30e   : > { %4458 = vmatprep.subr.bf16.mxu1 %v10331_v16  ;;  %v3609_v15 = vrot.slane %v3465_v14, 1 }
 0x310   : > { %4436 = vmatmul.mubr.bf16.gmra.mrb[28].mxu1 %v8806_v21  ;;  %v8808_v16 = vcombine.low %v3607_v26, %v3609_v15  ;;  %v10395_v21 = vld [vmem:[%s13058_s5 + $0x3c0] ss:$8 sps:$4 sm:$0xff]   ;;  %v10815_v26 = vld [vmem:[#allocation2 + $0x10] sm:$0x1f] }
 0x311   : > { %4459 = vmatpush1.bf16.msra.mxu1 %v10329_v19  ;;  %4478 = vmatprep.mubr.bf16.mxu1 %v8791_v27  ;;  %v10394_v19 = vld [vmem:[%s13058_s5 + $0x3b4] ss:$8 sps:$4 sm:$0xff]  }
 0x312   : > { %4460 = vmatprep.subr.bf16.mxu1 %v10334_v5  ;;  %6057 = vmatprep.subr.bf16.mxu0 %v10394_v19  ;;  %v10397_v5 = vld [vmem:[%s13058_s5 + $0x3c4] ss:$8 sps:$4 sm:$0xff]   ;;  %v10400_v27 = vld [vmem:[%s13058_s5 + $0x3d4] ss:$8 sps:$4 sm:$0xff]  }
 0x313   : > { %6058 = vmatpush1.bf16.msra.mxu0 %v10392_v20 }
 0x314   : > { %6059 = vmatprep.subr.bf16.mxu0 %v10397_v5 }
 0x315   : > { %4461 = vmatpush1.bf16.msra.mxu1 %v10332_v28  ;;  %v10398_v28 = vld [vmem:[%s13058_s5 + $0x3d0] ss:$8 sps:$4 sm:$0xff]  }
 0x316   : > { %4462 = vmatprep.subr.bf16.mxu1 %v10337_v29  ;;  %v10401_v29 = vld [vmem:[%s13058_s5 + $0x3e0] ss:$8 sps:$4 sm:$0xff]  }
 0x317   : > { %6060 = vmatpush1.bf16.msra.mxu0 %v10395_v21  ;;  %v4760_v21 = vld [vmem:[#allocation2 + $0x20] sm:$0x1f] }
 0x318   : > { %6061 = vmatprep.subr.bf16.mxu0 %v10400_v27 }
 0x319   : > { %4463 = vmatpush1.bf16.msra.mxu1 %v10335_v30  ;;  %v10403_v30 = vld [vmem:[%s13058_s5 + $0x3e4] ss:$8 sps:$4 sm:$0xff]  }
 0x31a   : > { %4464 = vmatprep.subr.bf16.mxu1 %v10340_v31  ;;  %v10406_v31 = vld [vmem:[%s13058_s5 + $0x3f4] ss:$8 sps:$4 sm:$0xff]  }
 0x31b   : > { %6062 = vmatpush1.bf16.msra.mxu0 %v10398_v28 }
 0x31c   : > { %6063 = vmatprep.subr.bf16.mxu0 %v10403_v30  ;;  %v4763_v30 = vld [vmem:[#allocation2 + $0x28] sm:$0x1f] }
 0x31d   : > { %4465 = vmatpush1.bf16.msra.mxu1 %v10338_v32  ;;  %v10404_v32 = vld [vmem:[%s13058_s5 + $0x3f0] ss:$8 sps:$4 sm:$0xff]  }
 0x31e   : > { %4466 = vmatprep.subr.bf16.mxu1 %v10343_v33  ;;  %v10410_v33 = vld [vmem:[%s13058_s5 + $0x404] ss:$8 sps:$4 sm:$0xff]  }
 0x31f   : > { %6064 = vmatpush1.bf16.msra.mxu0 %v10401_v29 }
 0x320   : > { %6065 = vmatprep.subr.bf16.mxu0 %v10406_v31 }
 0x321   : > { %4467 = vmatpush1.bf16.msra.mxu1 %v10341_v34  ;;  %v4535_v34 = vld [vmem:[%s13057_s4] sm:$0x3] }
 0x322   : > { %4468 = vmatprep.subr.bf16.mxu1 %v10346_v35  ;;  %v12221_v35 = vrot.slane %v4535_v34, %v11288_v24 }
 0x323   : > { %6066 = vmatpush1.bf16.msra.mxu0 %v10404_v32 }
 0x324   : > { %6108 = vmatprep.subr.bf16.mxu0 %v10410_v33 }
 0x325   : > { %4469 = vmatpush1.bf16.msra.mxu1 %v10344_v36  ;;  %v12224_v36 = vrot.slane %v4535_v34, %v11291_v9 }
 0x326   : > { %4470 = vmatprep.subr.bf16.mxu1 %v10349_v37 }
 0x329   : > { %4471 = vmatpush1.bf16.msra.mxu1 %v10347_v38 }
 0x32a   : > { %4472 = vmatprep.subr.bf16.mxu1 %v10352_v39 }
 0x32d   : > { %4473 = vmatpush1.bf16.msra.mxu1 %v10350_v40 }
 0x32e   : > { %4474 = vmatprep.subr.bf16.mxu1 %v10355_v41 }
 0x331   : > { %4475 = vmatpush1.bf16.msra.mxu1 %v10353_v42 }
 0x332   : > { %4476 = vmatprep.subr.bf16.mxu1 %v10358_v43 }
 0x335   : > { %4477 = vmatpush1.bf16.msra.mxu1 %v10356_v47 }
 0x338   : > { %4479 = vmatmul.mubr.bf16.vlgmr.msra.gmra.mrb[16].mxu1 %v8790_v53 }
 0x339   : > { %4488 = vmatprep.mubr.bf16.mxu1 %v8797_v54 }
 0x340   : > { %4489 = vmatmul.mubr.bf16.gmra.mrb[20].mxu1 %v8796_v63 }
 0x341   : > { %4498 = vmatprep.mubr.bf16.mxu1 %v8803_v0 }
 0x348   : > { %4499 = vmatmul.mubr.bf16.gmra.mrb[24].mxu1 %v8802_v11 }
 0x349   : > { %4508 = vmatprep.mubr.bf16.mxu1 %v8809_v12 }
 0x350   : > { %4509 = vmatmul.mubr.bf16.gmra.mrb[28].mxu1 %v8808_v16  ;;  %v4757_v16 = vld [vmem:[#allocation2 + $0x18] sm:$0x1f] }
 0x40b   : > { %v4480_v37 = vpop.f32.mrb[16].mxu1 }
 0x40c   : > { %v4547_v38 = vadd.f32 %v12221_v35, %v4480_v37  ;;  %v4482_v39 = vpop.f32.mrb[17].mxu1 }
 0x40d   : > { %v4548_v40 = vadd.f32 %v12224_v36, %v4482_v39  ;;  %v4484_v41 = vpop.f32.mrb[18].mxu1 }
 0x40e   : > { %v4563_v42 = vmax.f32 %v4547_v38, 0.0  ;;  %v4549_v43 = vadd.f32 %v12221_v35, %v4484_v41  ;;  %v4486_v44 = vpop.f32.mrb[19].mxu1 }
 0x40f   : > { %v4564_v45 = vmax.f32 %v4548_v40, 0.0  ;;  %v4550_v46 = vadd.f32 %v12224_v36, %v4486_v44 }
 0x410   : > { %v9493_v47 = vpack.c.bf16 %v4563_v42, %v4563_v42  ;;  %v4565_v48 = vmax.f32 %v4549_v43, 0.0 }
 0x411   : > { %v9494_v49 = vpack.c.bf16 %v4564_v45, %v4564_v45  ;;  %v4566_v50 = vmax.f32 %v4550_v46, 0.0 }
 0x412   : > { %v4628_v51 = vshrl.u32 %v9493_v47, 16  ;;  %v9495_v52 = vpack.c.bf16 %v4565_v48, %v4565_v48  ;;  %v4631_v53 = vshll.u32 %v9493_v47, 16 }
 0x413   : > { %v4635_v54 = vshrl.u32 %v9494_v49, 16  ;;  %v4638_v55 = vshll.u32 %v9494_v49, 16  ;;  %v9496_v56 = vpack.c.bf16 %v4566_v50, %v4566_v50  ;;  %v4490_v57 = vpop.f32.mrb[20].mxu1 }
 0x414   : > { %v4630_v58 = vrot.slane %v4628_v51, 7  ;;  %v4642_v59 = vshrl.u32 %v9495_v52, 16  ;;  %v4645_v60 = vshll.u32 %v9495_v52, 16  ;;  %v4551_v61 = vadd.f32 %v12221_v35, %v4490_v57  ;;  %v4492_v62 = vpop.f32.mrb[21].mxu1 }
 0x415   : > { %v4637_v63 = vrot.slane %v4635_v54, 7  ;;  %v4649_v0 = vshrl.u32 %v9496_v56, 16  ;;  %v4652_v2 = vshll.u32 %v9496_v56, 16  ;;  %v4552_v3 = vadd.f32 %v12224_v36, %v4492_v62  ;;  %v4494_v4 = vpop.f32.mrb[22].mxu1  ;;  %v4766_v56 = vld [vmem:[#allocation2 + $0x30] sm:$0x1f] }
 0x416   : > { %v4633_v25 = vor.u32 %v4631_v53, %v4630_v58  ;;  %v4644_v6 = vrot.slane %v4642_v59, 7  ;;  %v4567_v7 = vmax.f32 %v4551_v61, 0.0  ;;  %v4553_v8 = vadd.f32 %v12221_v35, %v4494_v4  ;;  %v4496_v10 = vpop.f32.mrb[23].mxu1  ;;  %v4769_v58 = vld [vmem:[#allocation2 + $0x38] sm:$0x1f] }
 0x417   : > { %v4640_v11 = vor.u32 %v4638_v55, %v4637_v63  ;;  %v4651_v12 = vrot.slane %v4649_v0, 7  ;;  %v4568_v13 = vmax.f32 %v4552_v3, 0.0  ;;  %v4554_v14 = vadd.f32 %v12224_v36, %v4496_v10  ;;  %v4772_v0 = vld [vmem:[#allocation2 + $0x40] sm:$0x1f] }
 0x418   : > { %v4755_v15 = vsel %vm11307_vm8, %v4633_v25, %v10815_v26  ;;  %v4647_v17 = vor.u32 %v4645_v60, %v4644_v6  ;;  %v9497_v18 = vpack.c.bf16 %v4567_v7, %v4567_v7  ;;  %v4569_v19 = vmax.f32 %v4553_v8, 0.0  ;;  %v4775_v6 = vld [vmem:[#allocation2 + $0x48] sm:$0x1f] }
 0x419   : > { %4756 = vst [vmem:[#allocation2 + $0x10] sm:$0x1f] %v4755_v15  ;;  %v4758_v20 = vsel %vm11307_vm8, %v4640_v11, %v4757_v16  ;;  %v4654_v5 = vor.u32 %v4652_v2, %v4651_v12  ;;  %v9498_v27 = vpack.c.bf16 %v4568_v13, %v4568_v13  ;;  %v4570_v28 = vmax.f32 %v4554_v14, 0.0  ;;  %v10408_v14 = vld [vmem:[%s13058_s5 + $0x400] ss:$8 sps:$4 sm:$0xff]  }
 0x41a   : > { %4759 = vst [vmem:[#allocation2 + $0x18] sm:$0x1f] %v4758_v20  ;;  %v4761_v29 = vsel %vm11307_vm8, %v4647_v17, %v4760_v21  ;;  %v4656_v31 = vshrl.u32 %v9497_v18, 16  ;;  %v4659_v32 = vshll.u32 %v9497_v18, 16  ;;  %v9499_v33 = vpack.c.bf16 %v4569_v19, %v4569_v19  ;;  %v10414_v19 = vld [vmem:[%s13058_s5 + $0x414] ss:$8 sps:$4 sm:$0xff]  }
 0x41b   : > { %4762 = vst [vmem:[#allocation2 + $0x20] sm:$0x1f] %v4761_v29  ;;  %v4764_v34 = vsel %vm11307_vm8, %v4654_v5, %v4763_v30  ;;  %v4663_v37 = vshrl.u32 %v9498_v27, 16  ;;  %v4666_v38 = vshll.u32 %v9498_v27, 16  ;;  %v9500_v39 = vpack.c.bf16 %v4570_v28, %v4570_v28  ;;  %v4500_v40 = vpop.f32.mrb[24].mxu1 }
 0x41c   : > { %4765 = vst [vmem:[#allocation2 + $0x28] sm:$0x1f] %v4764_v34  ;;  %v4658_v41 = vrot.slane %v4656_v31, 7  ;;  %v4670_v42 = vshrl.u32 %v9499_v33, 16  ;;  %v4673_v43 = vshll.u32 %v9499_v33, 16  ;;  %v4555_v44 = vadd.f32 %v12221_v35, %v4500_v40  ;;  %v4502_v45 = vpop.f32.mrb[25].mxu1 }
 0x41d   : > { %v4665_v46 = vrot.slane %v4663_v37, 7  ;;  %v4677_v47 = vshrl.u32 %v9500_v39, 16  ;;  %v4680_v48 = vshll.u32 %v9500_v39, 16  ;;  %v4556_v49 = vadd.f32 %v12224_v36, %v4502_v45  ;;  %v4504_v50 = vpop.f32.mrb[26].mxu1  ;;  %v4778_v39 = vld [vmem:[#allocation2 + $0x50] sm:$0x1f] }
 0x41e   : > { %v4661_v51 = vor.u32 %v4659_v32, %v4658_v41  ;;  %v4672_v52 = vrot.slane %v4670_v42, 7  ;;  %v4571_v53 = vmax.f32 %v4555_v44, 0.0  ;;  %v4557_v54 = vadd.f32 %v12221_v35, %v4504_v50  ;;  %v4506_v55 = vpop.f32.mrb[27].mxu1  ;;  %v4781_v45 = vld [vmem:[#allocation2 + $0x58] sm:$0x1f] }
 0x41f   : > { %v4668_v57 = vor.u32 %v4666_v38, %v4665_v46  ;;  %v4679_v59 = vrot.slane %v4677_v47, 7  ;;  %v4572_v60 = vmax.f32 %v4556_v49, 0.0  ;;  %v4558_v61 = vadd.f32 %v12224_v36, %v4506_v55  ;;  %v4784_v46 = vld [vmem:[#allocation2 + $0x60] sm:$0x1f] }
 0x420   : > { %v4767_v62 = vsel %vm11307_vm8, %v4661_v51, %v4766_v56  ;;  %v4675_v63 = vor.u32 %v4673_v43, %v4672_v52  ;;  %v9501_v2 = vpack.c.bf16 %v4571_v53, %v4571_v53  ;;  %v4573_v3 = vmax.f32 %v4557_v54, 0.0  ;;  %v4787_v52 = vld [vmem:[#allocation2 + $0x68] sm:$0x1f] }
 0x421   : > { %4768 = vst [vmem:[#allocation2 + $0x30] sm:$0x1f] %v4767_v62  ;;  %v4770_v4 = vsel %vm11307_vm8, %v4668_v57, %v4769_v58  ;;  %v4682_v25 = vor.u32 %v4680_v48, %v4679_v59  ;;  %v9502_v7 = vpack.c.bf16 %v4572_v60, %v4572_v60  ;;  %v4574_v8 = vmax.f32 %v4558_v61, 0.0  ;;  %v10418_v58 = vld [vmem:[%s13058_s5 + $0x424] ss:$8 sps:$4 sm:$0xff]  }
 0x422   : > { %4771 = vst [vmem:[#allocation2 + $0x38] sm:$0x1f] %v4770_v4  ;;  %v4773_v10 = vsel %vm11307_vm8, %v4675_v63, %v4772_v0  ;;  %v4684_v11 = vshrl.u32 %v9501_v2, 16  ;;  %v4687_v12 = vshll.u32 %v9501_v2, 16  ;;  %v9503_v13 = vpack.c.bf16 %v4573_v3, %v4573_v3  ;;  %v10411_v37 = vld [vmem:[#allocation2 + $0x10] ss:$16 sps:$4 sm:$0xff]  }
 0x423   : > { %4774 = vst [vmem:[#allocation2 + $0x40] sm:$0x1f] %v4773_v10  ;;  %v4776_v26 = vsel %vm11307_vm8, %v4682_v25, %v4775_v6  ;;  %v4691_v15 = vshrl.u32 %v9502_v7, 16  ;;  %v4694_v16 = vshll.u32 %v9502_v7, 16  ;;  %v9504_v17 = vpack.c.bf16 %v4574_v8, %v4574_v8  ;;  %v4510_v18 = vpop.f32.mrb[28].mxu1 }
 0x424   : > { %4777 = vst [vmem:[#allocation2 + $0x48] sm:$0x1f] %v4776_v26  ;;  %v4686_v20 = vrot.slane %v4684_v11, 7  ;;  %v4698_v21 = vshrl.u32 %v9503_v13, 16  ;;  %v4701_v5 = vshll.u32 %v9503_v13, 16  ;;  %v4559_v27 = vadd.f32 %v12221_v35, %v4510_v18  ;;  %v4512_v28 = vpop.f32.mrb[29].mxu1 }
 0x425   : > { %v10407_v29 = vld [vmem:[#allocation2 + $0x18] ss:$16 sps:$4 sm:$0xff]   ;;  %v4693_v30 = vrot.slane %v4691_v15, 7  ;;  %v4705_v31 = vshrl.u32 %v9504_v17, 16  ;;  %v4708_v32 = vshll.u32 %v9504_v17, 16  ;;  %v4560_v33 = vadd.f32 %v12224_v36, %v4512_v28  ;;  %v4514_v34 = vpop.f32.mrb[30].mxu1 }
 0x426   : > { %v4689_v38 = vor.u32 %v4687_v12, %v4686_v20  ;;  %v4700_v40 = vrot.slane %v4698_v21, 7  ;;  %v4575_v41 = vmax.f32 %v4559_v27, 0.0  ;;  %v4561_v42 = vadd.f32 %v12221_v35, %v4514_v34  ;;  %v4516_v43 = vpop.f32.mrb[31].mxu1  ;;  %6067 = vmatprep.mubr.bf16.mxu0 %v10407_v29  ;;  %v10412_v35 = vld [vmem:[%s13058_s5 + $0x410] ss:$8 sps:$4 sm:$0xff]  }
 0x427   : > { %v4696_v44 = vor.u32 %v4694_v16, %v4693_v30  ;;  %v4707_v47 = vrot.slane %v4705_v31, 7  ;;  %v4576_v48 = vmax.f32 %v4560_v33, 0.0  ;;  %v4562_v49 = vadd.f32 %v12224_v36, %v4516_v43  ;;  %6068 = vmatmul.mubr.bf16.vlgmr.msra.gmra.mrb[16].mxu0 %v10411_v37  ;;  %v10416_v62 = vld [vmem:[%s13058_s5 + $0x420] ss:$8 sps:$4 sm:$0xff]   ;;  %v10422_v7 = vld [vmem:[%s13058_s5 + $0x434] ss:$8 sps:$4 sm:$0xff]  }
 0x428   : > { %v4779_v50 = vsel %vm11307_vm8, %v4689_v38, %v4778_v39  ;;  %v4703_v51 = vor.u32 %v4701_v5, %v4700_v40  ;;  %v9505_v53 = vpack.c.bf16 %v4575_v41, %v4575_v41  ;;  %v4577_v54 = vmax.f32 %v4561_v42, 0.0  ;;  %6109 = vmatpush1.bf16.msra.mxu0 %v10408_v14  ;;  %v4790_v14 = vld [vmem:[#allocation2 + $0x70] sm:$0x1f]  ;;  %v4793_v17 = vld [vmem:[#allocation2 + $0x78] sm:$0x1f] }
 0x429   : > { %4780 = vst [vmem:[#allocation2 + $0x50] sm:$0x1f] %v4779_v50  ;;  %v4782_v55 = vsel %vm11307_vm8, %v4696_v44, %v4781_v45  ;;  %v4710_v56 = vor.u32 %v4708_v32, %v4707_v47  ;;  %v9506_v57 = vpack.c.bf16 %v4576_v48, %v4576_v48  ;;  %v4578_v36 = vmax.f32 %v4562_v49, 0.0  ;;  %6110 = vmatprep.subr.bf16.mxu0 %v10414_v19  ;;  %v5173_v20 = vld [vmem:[#allocation2 + $0x28] sm:$0x1f] }
 0x42a   : > { %4783 = vst [vmem:[#allocation2 + $0x58] sm:$0x1f] %v4782_v55  ;;  %v4785_v59 = vsel %vm11307_vm8, %v4703_v51, %v4784_v46  ;;  %v4712_v60 = vshrl.u32 %v9505_v53, 16  ;;  %v9507_v61 = vpack.c.bf16 %v4577_v54, %v4577_v54  ;;  %v4715_v25 = vshll.u32 %v9505_v53, 16  ;;  %v10419_v12 = vld [vmem:[#allocation2 + $0x30] ss:$16 sps:$4 sm:$0xff]  }
 0x42b   : > { %4786 = vst [vmem:[#allocation2 + $0x60] sm:$0x1f] %v4785_v59  ;;  %v4788_v63 = vsel %vm11307_vm8, %v4710_v56, %v4787_v52  ;;  %v4719_v0 = vshrl.u32 %v9506_v57, 16  ;;  %v9508_v2 = vpack.c.bf16 %v4578_v36, %v4578_v36  ;;  %v10415_v3 = vld [vmem:[#allocation2 + $0x38] ss:$16 sps:$4 sm:$0xff]   ;;  %v4722_v10 = vshll.u32 %v9506_v57, 16 }
 0x42c   : > { %4789 = vst [vmem:[#allocation2 + $0x68] sm:$0x1f] %v4788_v63  ;;  %v4714_v4 = vrot.slane %v4712_v60, 7  ;;  %v4726_v6 = vshrl.u32 %v9507_v61, 16  ;;  %6111 = vmatpush1.bf16.msra.mxu0 %v10412_v35  ;;  %6077 = vmatprep.mubr.bf16.mxu0 %v10415_v3  ;;  %v4729_v15 = vshll.u32 %v9507_v61, 16  ;;  %v5226_v37 = vshll.u32 %v5173_v20, 16 }
 0x42d   : > { %v4721_v8 = vrot.slane %v4719_v0, 7  ;;  %v4733_v11 = vshrl.u32 %v9508_v2, 16  ;;  %6112 = vmatprep.subr.bf16.mxu0 %v10418_v58  ;;  %v4736_v19 = vshll.u32 %v9508_v2, 16  ;;  %v4796_v27 = vld [vmem:[#allocation2 + $0x80] sm:$0x1f]  ;;  %v5224_v46 = vshrl.u32 %v5173_v20, 16 }
 0x42e   : > { %v4717_v13 = vor.u32 %v4715_v25, %v4714_v4  ;;  %v4728_v26 = vrot.slane %v4726_v6, 7  ;;  %v10420_v28 = vld [vmem:[%s13058_s5 + $0x430] ss:$8 sps:$4 sm:$0xff]   ;;  %v10426_v31 = vld [vmem:[%s13058_s5 + $0x444] ss:$8 sps:$4 sm:$0xff]   ;;  %v5228_v44 = vrot.slane %v5226_v37, 1 }
 0x42f   : > { %v4724_v16 = vor.u32 %v4722_v10, %v4721_v8  ;;  %v4735_v18 = vrot.slane %v4733_v11, 7  ;;  %6078 = vmatmul.mubr.bf16.gmra.mrb[20].mxu0 %v10419_v12  ;;  %v5171_v32 = vld [vmem:[#allocation2 + $0x18] sm:$0x1f]  ;;  %v4799_v34 = vld [vmem:[#allocation2 + $0x88] sm:$0x1f] }
 0x430   : > { %v4791_v21 = vsel %vm11307_vm8, %v4717_v13, %v4790_v14  ;;  %v4731_v5 = vor.u32 %v4729_v15, %v4728_v26  ;;  %6113 = vmatpush1.bf16.msra.mxu0 %v10416_v62  ;;  %v10424_v40 = vld [vmem:[%s13058_s5 + $0x440] ss:$8 sps:$4 sm:$0xff]   ;;  %v5212_v41 = vshll.u32 %v5171_v32, 16  ;;  %v10430_v43 = vld [vmem:[%s13058_s5 + $0x454] ss:$8 sps:$4 sm:$0xff]   ;;  %v5210_v48 = vshrl.u32 %v5171_v32, 16 }
 0x431   : > { %4792 = vst [vmem:[#allocation2 + $0x70] sm:$0x1f] %v4791_v21  ;;  %v4794_v29 = vsel %vm11307_vm8, %v4724_v16, %v4793_v17  ;;  %v4738_v30 = vor.u32 %v4736_v19, %v4735_v18  ;;  %6114 = vmatprep.subr.bf16.mxu0 %v10422_v7  ;;  %v10434_v47 = vld [vmem:[%s13058_s5 + $0x464] ss:$8 sps:$4 sm:$0xff]   ;;  %v5229_v49 = vor.u32 %v5228_v44, %v5224_v46  ;;  %v10432_v51 = vld [vmem:[%s13058_s5 + $0x460] ss:$8 sps:$4 sm:$0xff]  }
 0x432   : > { %4795 = vst [vmem:[#allocation2 + $0x78] sm:$0x1f] %v4794_v29  ;;  %v4797_v33 = vsel %vm11307_vm8, %v4731_v5, %v4796_v27  ;;  %v10427_v42 = vld [vmem:[#allocation2 + $0x50] ss:$16 sps:$4 sm:$0xff]   ;;  %v5214_v45 = vrot.slane %v5212_v41, 1 }
 0x433   : > { %4798 = vst [vmem:[#allocation2 + $0x80] sm:$0x1f] %v4797_v33  ;;  %v4800_v38 = vsel %vm11307_vm8, %v4738_v30, %v4799_v34  ;;  %v10423_v39 = vld [vmem:[#allocation2 + $0x58] ss:$16 sps:$4 sm:$0xff]   ;;  %v10438_v54 = vld [vmem:[%s13058_s5 + $0x474] ss:$8 sps:$4 sm:$0xff]  }
 0x434   : > { %4801 = vst [vmem:[#allocation2 + $0x88] sm:$0x1f] %v4800_v38  ;;  %6115 = vmatpush1.bf16.msra.mxu0 %v10420_v28  ;;  %6087 = vmatprep.mubr.bf16.mxu0 %v10423_v39  ;;  %v5215_v52 = vor.u32 %v5214_v45, %v5210_v48  ;;  %v10436_v55 = vld [vmem:[%s13058_s5 + $0x470] ss:$8 sps:$4 sm:$0xff]   ;;  %v10441_v56 = vld [vmem:[%s13058_s5 + $0x484] ss:$8 sps:$4 sm:$0xff]  }
 0x435   : > { %6116 = vmatprep.subr.bf16.mxu0 %v10426_v31  ;;  %v10439_v57 = vld [vmem:[%s13058_s5 + $0x480] ss:$8 sps:$4 sm:$0xff]   ;;  %v10444_v36 = vld [vmem:[%s13058_s5 + $0x494] ss:$8 sps:$4 sm:$0xff]   ;;  %v10442_v58 = vld [vmem:[%s13058_s5 + $0x490] ss:$8 sps:$4 sm:$0xff]  }
 0x436   : > { %v9021_v35 = vcombine.low %v5215_v52, %v5229_v49  ;;  %v10447_v59 = vld [vmem:[%s13058_s5 + $0x4a4] ss:$8 sps:$4 sm:$0xff]   ;;  %v10445_v60 = vld [vmem:[%s13058_s5 + $0x4a0] ss:$8 sps:$4 sm:$0xff]   ;;  %v10450_v61 = vld [vmem:[%s13058_s5 + $0x4b4] ss:$8 sps:$4 sm:$0xff]  }
 0x437   : > { %6088 = vmatmul.mubr.bf16.gmra.mrb[24].mxu0 %v10427_v42  ;;  %v10448_v62 = vld [vmem:[%s13058_s5 + $0x4b0] ss:$8 sps:$4 sm:$0xff]   ;;  %v10453_v63 = vld [vmem:[%s13058_s5 + $0x4c4] ss:$8 sps:$4 sm:$0xff]   ;;  %v10451_v0 = vld [vmem:[%s13058_s5 + $0x4c0] ss:$8 sps:$4 sm:$0xff]  }
 0x438   : > { %6117 = vmatpush1.bf16.msra.mxu0 %v10424_v40  ;;  %v10456_v2 = vld [vmem:[%s13058_s5 + $0x4d4] ss:$8 sps:$4 sm:$0xff]   ;;  %v5172_v3 = vld [vmem:[#allocation2 + $0x20] sm:$0x1f]  ;;  %v5177_v4 = vld [vmem:[#allocation2 + $0x48] sm:$0x1f] }
 0x439   : > { %6118 = vmatprep.subr.bf16.mxu0 %v10430_v43  ;;  %v10454_v25 = vld [vmem:[%s13058_s5 + $0x4d0] ss:$8 sps:$4 sm:$0xff]   ;;  %v10459_v7 = vld [vmem:[%s13058_s5 + $0x4e4] ss:$8 sps:$4 sm:$0xff]   ;;  %v5219_v8 = vshll.u32 %v5172_v3, 16  ;;  %v5254_v11 = vshll.u32 %v5177_v4, 16 }
 0x43a   : > { %v10435_v53 = vld [vmem:[#allocation2 + $0x70] ss:$16 sps:$4 sm:$0xff]   ;;  %v5175_v10 = vld [vmem:[#allocation2 + $0x38] sm:$0x1f]  ;;  %v5217_v19 = vshrl.u32 %v5172_v3, 16  ;;  %v5252_v27 = vshrl.u32 %v5177_v4, 16 }
 0x43b   : > { %v10431_v50 = vld [vmem:[#allocation2 + $0x78] ss:$16 sps:$4 sm:$0xff]   ;;  %v5170_v6 = vld [vmem:[#allocation2 + $0x10] sm:$0x1f]  ;;  %v5240_v14 = vshll.u32 %v5175_v10, 16  ;;  %v5221_v15 = vrot.slane %v5219_v8, 1 }
 0x43c   : > { %6119 = vmatpush1.bf16.msra.mxu0 %v10428_v1  ;;  %6097 = vmatprep.mubr.bf16.mxu0 %v10431_v50  ;;  %v5205_v12 = vshll.u32 %v5170_v6, 16  ;;  %v10457_v13 = vld [vmem:[%s13058_s5 + $0x4e0] ss:$8 sps:$4 sm:$0xff]   ;;  %v10462_v26 = vld [vmem:[%s13058_s5 + $0x4f4] ss:$8 sps:$4 sm:$0xff]   ;;  %v5256_v16 = vrot.slane %v5254_v11, 1 }
 0x43d   : > { %6120 = vmatprep.subr.bf16.mxu0 %v10434_v47  ;;  %v5176_v17 = vld [vmem:[#allocation2 + $0x40] sm:$0x1f]  ;;  %v5181_v20 = vld [vmem:[#allocation2 + $0x68] sm:$0x1f]  ;;  %v10460_v21 = vld [vmem:[%s13058_s5 + $0x4f0] ss:$8 sps:$4 sm:$0xff]   ;;  %v5222_v30 = vor.u32 %v5221_v15, %v5217_v19 }
 0x43e   : > { %v5207_v18 = vrot.slane %v5205_v12, 1  ;;  %v5242_v5 = vrot.slane %v5240_v14, 1  ;;  %v5174_v28 = vld [vmem:[#allocation2 + $0x30] sm:$0x1f]  ;;  %v5203_v29 = vshrl.u32 %v5170_v6, 16  ;;  %v5247_v32 = vshll.u32 %v5176_v17, 16 }
 0x43f   : > { %6098 = vmatmul.mubr.bf16.gmra.mrb[28].mxu0 %v10435_v53  ;;  %v10465_v31 = vld [vmem:[%s13058_s5 + $0x504] ss:$8 sps:$4 sm:$0xff]   ;;  %v5179_v33 = vld [vmem:[#allocation2 + $0x58] sm:$0x1f]  ;;  %v5238_v34 = vshrl.u32 %v5175_v10, 16  ;;  %v5257_v37 = vor.u32 %v5256_v16, %v5252_v27  ;;  %v5282_v38 = vshll.u32 %v5181_v20, 16 }
 0x440   : > { %6121 = vmatpush1.bf16.msra.mxu0 %v10432_v51  ;;  %6140 = vmatprep.mubr.bf16.mxu0 %v9021_v35  ;;  %v5208_v39 = vor.u32 %v5207_v18, %v5203_v29  ;;  %v5233_v40 = vshll.u32 %v5174_v28, 16  ;;  %v10463_v41 = vld [vmem:[%s13058_s5 + $0x500] ss:$8 sps:$4 sm:$0xff]   ;;  %v5268_v43 = vshll.u32 %v5179_v33, 16  ;;  %v10468_v1 = vld [vmem:[%s13058_s5 + $0x514] ss:$8 sps:$4 sm:$0xff]  }
 0x441   : > { %6122 = vmatprep.subr.bf16.mxu0 %v10438_v54  ;;  %v5243_v42 = vor.u32 %v5242_v5, %v5238_v34  ;;  %v5249_v45 = vrot.slane %v5247_v32, 1  ;;  %v5284_v47 = vrot.slane %v5282_v38, 1  ;;  %v5180_v48 = vld [vmem:[#allocation2 + $0x60] sm:$0x1f]  ;;  %v5245_v50 = vshrl.u32 %v5176_v17, 16 }
 0x442   : > { %v9020_v44 = vcombine.low %v5208_v39, %v5222_v30  ;;  %v5235_v49 = vrot.slane %v5233_v40, 1  ;;  %v5185_v51 = vld [vmem:[#allocation2 + $0x88] sm:$0x1f]  ;;  %v10466_v52 = vld [vmem:[%s13058_s5 + $0x510] ss:$8 sps:$4 sm:$0xff]   ;;  %v5270_v53 = vrot.slane %v5268_v43, 1 }
 0x443   : > { %v9027_v46 = vcombine.low %v5243_v42, %v5257_v37  ;;  %v5280_v54 = vshrl.u32 %v5181_v20, 16  ;;  %v5178_v35 = vld [vmem:[#allocation2 + $0x50] sm:$0x1f]  ;;  %v10477_v14 = vld [vmem:[%s13058_s5 + $0x544] ss:$8 sps:$4 sm:$0xff]   ;;  %v5308_v15 = vshrl.u32 %v5185_v51, 16 }
 0x444   : > { %6123 = vmatpush1.bf16.msra.mxu0 %v10436_v55  ;;  %v5231_v55 = vshrl.u32 %v5174_v28, 16  ;;  %v10472_v11 = vld [vmem:[%s13058_s5 + $0x530] ss:$8 sps:$4 sm:$0xff]   ;;  %v5259_v17 = vshrl.u32 %v5178_v35, 16  ;;  %v10475_v20 = vld [vmem:[%s13058_s5 + $0x540] ss:$8 sps:$4 sm:$0xff]  }
 0x445   : > { %6124 = vmatprep.subr.bf16.mxu0 %v10441_v56  ;;  %v5250_v56 = vor.u32 %v5249_v45, %v5245_v50  ;;  %v5182_v16 = vld [vmem:[#allocation2 + $0x70] sm:$0x1f]  ;;  %v5189_v38 = vld [vmem:[#allocation2 + $0x28] sm:$0x1e]  ;;  %v5187_v43 = vld [vmem:[#allocation2 + $0x18] sm:$0x1e] }
 0x446   : > { %v5289_v28 = vshll.u32 %v5182_v16, 16  ;;  %v10480_v30 = vld [vmem:[%s13058_s5 + $0x554] ss:$8 sps:$4 sm:$0xff]   ;;  %v10478_v39 = vld [vmem:[%s13058_s5 + $0x550] ss:$8 sps:$4 sm:$0xff]   ;;  %v5287_v40 = vshrl.u32 %v5182_v16, 16 }
 0x447   : > { %v10483_v42 = vld [vmem:[%s13058_s5 + $0x564] ss:$8 sps:$4 sm:$0xff]   ;;  %v10481_v45 = vld [vmem:[%s13058_s5 + $0x560] ss:$8 sps:$4 sm:$0xff]   ;;  %v10484_v50 = vld [vmem:[%s13058_s5 + $0x570] ss:$8 sps:$4 sm:$0xff]  }
 0x448   : > { %6125 = vmatpush1.bf16.msra.mxu0 %v10439_v57  ;;  %v10471_v57 = vld [vmem:[%s13058_s5 + $0x524] ss:$8 sps:$4 sm:$0xff]   ;;  %v5291_v34 = vrot.slane %v5289_v28, 1  ;;  %v10517_v28 = vld [vmem:[%s13058_s5 + $0x20] ss:$8 sps:$4 sm:$0xff]  }
 0x449   : > { %6126 = vmatprep.subr.bf16.mxu0 %v10444_v36  ;;  %v5275_v36 = vshll.u32 %v5180_v48, 16  ;;  %v5197_v16 = vld [vmem:[#allocation2 + $0x68] sm:$0x1e] }
 0x44b   : > { %v5277_v6 = vrot.slane %v5275_v36, 1  ;;  %v10501_v36 = vld [vmem:[%s13058_s5 + $0x5c4] ss:$8 sps:$4 sm:$0xff]  }
 0x44c   : > { %6127 = vmatpush1.bf16.msra.mxu0 %v10442_v58  ;;  %v5183_v58 = vld [vmem:[#allocation2 + $0x78] sm:$0x1f] }
 0x44d   : > { %6128 = vmatprep.subr.bf16.mxu0 %v10447_v59  ;;  %v5266_v59 = vshrl.u32 %v5179_v33, 16  ;;  %v5296_v3 = vshll.u32 %v5183_v58, 16 }
 0x450   : > { %6129 = vmatpush1.bf16.msra.mxu0 %v10445_v60  ;;  %v5285_v60 = vor.u32 %v5284_v47, %v5280_v54  ;;  %v10490_v54 = vld [vmem:[%s13058_s5 + $0x590] ss:$8 sps:$4 sm:$0xff]  }
 0x451   : > { %6130 = vmatprep.subr.bf16.mxu0 %v10450_v61  ;;  %v5310_v61 = vshll.u32 %v5185_v51, 16  ;;  %v10489_v51 = vld [vmem:[%s13058_s5 + $0x584] ss:$8 sps:$4 sm:$0xff]  }
 0x453   : > { %v5312_v10 = vrot.slane %v5310_v61, 1  ;;  %v10507_v61 = vld [vmem:[%s13058_s5 + $0x5e4] ss:$8 sps:$4 sm:$0xff]  }
 0x454   : > { %6131 = vmatpush1.bf16.msra.mxu0 %v10448_v62  ;;  %v5236_v62 = vor.u32 %v5235_v49, %v5231_v55  ;;  %v10493_v55 = vld [vmem:[%s13058_s5 + $0x5a0] ss:$8 sps:$4 sm:$0xff]  }
 0x455   : > { %6132 = vmatprep.subr.bf16.mxu0 %v10453_v63  ;;  %v5261_v63 = vshll.u32 %v5178_v35, 16  ;;  %v5313_v5 = vor.u32 %v5312_v10, %v5308_v15  ;;  %v10495_v35 = vld [vmem:[%s13058_s5 + $0x5a4] ss:$8 sps:$4 sm:$0xff]  }
 0x456   : > { %v9026_v4 = vcombine.low %v5236_v62, %v5250_v56  ;;  %v10498_v56 = vld [vmem:[%s13058_s5 + $0x5b4] ss:$8 sps:$4 sm:$0xff]   ;;  %v10505_v62 = vld [vmem:[%s13058_s5 + $0x5e0] ss:$8 sps:$4 sm:$0xff]  }
 0x457   : > { %v5263_v12 = vrot.slane %v5261_v63, 1  ;;  %v10510_v63 = vld [vmem:[%s13058_s5 + $0x5f4] ss:$8 sps:$4 sm:$0xff]   ;;  %v5192_v15 = vld [vmem:[#allocation2 + $0x40] sm:$0x1e] }
 0x458   : > { %6133 = vmatpush1.bf16.msra.mxu0 %v10451_v0  ;;  %v10469_v0 = vld [vmem:[%s13058_s5 + $0x520] ss:$8 sps:$4 sm:$0xff]  }
 0x459   : > { %6134 = vmatprep.subr.bf16.mxu0 %v10456_v2  ;;  %v5271_v2 = vor.u32 %v5270_v53, %v5266_v59  ;;  %v5264_v27 = vor.u32 %v5263_v12, %v5259_v17  ;;  %v10492_v53 = vld [vmem:[%s13058_s5 + $0x594] ss:$8 sps:$4 sm:$0xff]   ;;  %v10514_v17 = vld [vmem:[%s13058_s5 + $0x10] ss:$8 sps:$4 sm:$0xff]  }
 0x45a   : > { %v10504_v59 = vld [vmem:[%s13058_s5 + $0x5d4] ss:$8 sps:$4 sm:$0xff]  }
 0x45b   : > { %v9033_v8 = vcombine.low %v5271_v2, %v5285_v60  ;;  %v10502_v60 = vld [vmem:[%s13058_s5 + $0x5d0] ss:$8 sps:$4 sm:$0xff]   ;;  %v5193_v2 = vld [vmem:[#allocation2 + $0x48] sm:$0x1e] }
 0x45c   : > { %6135 = vmatpush1.bf16.msra.mxu0 %v10454_v25  ;;  %v10474_v25 = vld [vmem:[%s13058_s5 + $0x534] ss:$8 sps:$4 sm:$0xff]  }
 0x45d   : > { %6136 = vmatprep.subr.bf16.mxu0 %v10459_v7  ;;  %v5184_v7 = vld [vmem:[#allocation2 + $0x80] sm:$0x1f] }
 0x45e   : > { %v5303_v19 = vshll.u32 %v5184_v7, 16  ;;  %v5301_v37 = vshrl.u32 %v5184_v7, 16  ;;  %v5191_v7 = vld [vmem:[#allocation2 + $0x38] sm:$0x1e] }
 0x45f   : > { %v5335_v12 = vrot.slane %v5191_v7, 1  ;;  %v10554_v7 = vld [vmem:[%s13058_s5 + $0xe0] ss:$8 sps:$4 sm:$0xff]  }
 0x460   : > { %6137 = vmatpush1.bf16.msra.mxu0 %v10457_v13  ;;  %v5273_v13 = vshrl.u32 %v5180_v48, 16  ;;  %v5305_v32 = vrot.slane %v5303_v19, 1  ;;  %v10486_v48 = vld [vmem:[%s13058_s5 + $0x574] ss:$8 sps:$4 sm:$0xff]   ;;  %v5336_v19 = vrot.slane %v5192_v15, 1 }
 0x461   : > { %6138 = vmatprep.subr.bf16.mxu0 %v10462_v26  ;;  %v5298_v26 = vrot.slane %v5296_v3, 1  ;;  %v10508_v3 = vld [vmem:[%s13058_s5 + $0x5f0] ss:$8 sps:$4 sm:$0xff]  }
 0x462   : > { %v5278_v18 = vor.u32 %v5277_v6, %v5273_v13  ;;  %v10513_v6 = vld [vmem:[%s13058_s5 + $0x4] ss:$8 sps:$4 sm:$0xff]   ;;  %v10565_v15 = vld [vmem:[%s13058_s5 + $0x110] ss:$8 sps:$4 sm:$0xff]  }
 0x464   : > { %6139 = vmatpush1.bf16.msra.mxu0 %v10460_v21  ;;  %v5294_v21 = vshrl.u32 %v5183_v58, 16  ;;  %v10499_v58 = vld [vmem:[%s13058_s5 + $0x5c0] ss:$8 sps:$4 sm:$0xff]  }
 0x465   : > { %6181 = vmatprep.subr.bf16.mxu0 %v10465_v31  ;;  %v9032_v31 = vcombine.low %v5264_v27, %v5278_v18  ;;  %v5190_v18 = vld [vmem:[#allocation2 + $0x30] sm:$0x1e] }
 0x466   : > { %v5299_v29 = vor.u32 %v5298_v26, %v5294_v21  ;;  %v5195_v21 = vld [vmem:[#allocation2 + $0x58] sm:$0x1e]  ;;  %v5334_v27 = vrot.slane %v5190_v18, 1  ;;  %v10568_v18 = vld [vmem:[#allocation2 + $0x20] ss:$16 sps:$4 sm:$0xff]  }
 0x467   : > { %6141 = vmatmul.mubr.bf16.vlgmr.msra.gmra.mrb[16].mxu0 %v9020_v44  ;;  %v5333_v44 = vrot.slane %v5189_v38, 1  ;;  %v5194_v38 = vld [vmem:[#allocation2 + $0x50] sm:$0x1e] }
 0x468   : > { %6150 = vmatprep.mubr.bf16.mxu0 %v9027_v46  ;;  %6182 = vmatpush1.bf16.msra.mxu0 %v10463_v41  ;;  %v9039_v33 = vcombine.low %v5299_v29, %v5313_v5  ;;  %v5306_v41 = vor.u32 %v5305_v32, %v5301_v37  ;;  %v5331_v46 = vrot.slane %v5187_v43, 1  ;;  %v5341_v5 = vrot.slane %v5197_v16, 1  ;;  %v10520_v37 = vld [vmem:[%s13058_s5 + $0x30] ss:$8 sps:$4 sm:$0xff]   ;;  %v10571_v16 = vld [vmem:[%s13058_s5 + $0x124] ss:$8 sps:$4 sm:$0xff]  }
 0x469   : > { %6183 = vmatprep.subr.bf16.mxu0 %v10468_v1  ;;  %v5292_v1 = vor.u32 %v5291_v34, %v5287_v40  ;;  %v5339_v29 = vrot.slane %v5195_v21, 1  ;;  %v5201_v34 = vld [vmem:[#allocation2 + $0x88] sm:$0x1e]  ;;  %v5338_v43 = vrot.slane %v5194_v38, 1 }
 0x46a   : > { %v9023_v49 = vcombine.low %v5331_v46, %v5333_v44  ;;  %v10525_v40 = vld [vmem:[%s13058_s5 + $0x44] ss:$8 sps:$4 sm:$0xff]   ;;  %v10523_v44 = vld [vmem:[%s13058_s5 + $0x40] ss:$8 sps:$4 sm:$0xff]   ;;  %v10528_v46 = vld [vmem:[%s13058_s5 + $0x54] ss:$8 sps:$4 sm:$0xff]  }
 0x46b   : > { %v9038_v47 = vcombine.low %v5292_v1, %v5306_v41  ;;  %v9035_v32 = vcombine.low %v5339_v29, %v5341_v5  ;;  %v5199_v41 = vld [vmem:[#allocation2 + $0x78] sm:$0x1e]  ;;  %v4819_v21 = vld [vmem:[#allocation2 + $0x8] sm:$0x1f] }
 0x46c   : > { %6184 = vmatpush1.bf16.msra.mxu0 %v10466_v52  ;;  %v10487_v52 = vld [vmem:[%s13058_s5 + $0x580] ss:$8 sps:$4 sm:$0xff]   ;;  %v5343_v1 = vrot.slane %v5199_v41, 1  ;;  %v4821_v5 = vld [vmem:[#allocation2 + $0x18] sm:$0x1f]  ;;  %v4860_v29 = vshll.u32 %v4819_v21, 16 }
 0x46d   : > { %6185 = vmatprep.subr.bf16.mxu0 %v10471_v57  ;;  %v10496_v57 = vld [vmem:[%s13058_s5 + $0x5b0] ss:$8 sps:$4 sm:$0xff]   ;;  %v4872_v41 = vshrl.u32 %v4821_v5, 16 }
 0x46e   : > { %v4862_v38 = vrot.slane %v4860_v29, 1 }
 0x46f   : > { %6151 = vmatmul.mubr.bf16.gmra.mrb[20].mxu0 %v9026_v4  ;;  %v5186_v4 = vld [vmem:[#allocation2 + $0x10] sm:$0x1e] }
 0x470   : > { %6160 = vmatprep.mubr.bf16.mxu0 %v9033_v8  ;;  %6186 = vmatpush1.bf16.msra.mxu0 %v10469_v0  ;;  %v5188_v0 = vld [vmem:[#allocation2 + $0x20] sm:$0x1e]  ;;  %v5337_v8 = vrot.slane %v5193_v2, 1  ;;  %v5330_v10 = vrot.slane %v5186_v4, 1  ;;  %v10553_v4 = vld [vmem:[%s13058_s5 + $0xd4] ss:$8 sps:$4 sm:$0xff]  }
 0x471   : > { %6187 = vmatprep.subr.bf16.mxu0 %v10474_v25  ;;  %v5332_v25 = vrot.slane %v5188_v0, 1  ;;  %v10545_v0 = vld [vmem:[%s13058_s5 + $0xb0] ss:$8 sps:$4 sm:$0xff]   ;;  %v10550_v2 = vld [vmem:[%s13058_s5 + $0xc4] ss:$8 sps:$4 sm:$0xff]  }
 0x472   : > { %v9029_v26 = vcombine.low %v5335_v12, %v5337_v8  ;;  %v10559_v8 = vld [vmem:[%s13058_s5 + $0xf4] ss:$8 sps:$4 sm:$0xff]   ;;  %v10561_v12 = vld [vmem:[%s13058_s5 + $0x100] ss:$8 sps:$4 sm:$0xff]  }
 0x473   : > { %v9022_v13 = vcombine.low %v5330_v10, %v5332_v25  ;;  %v10551_v25 = vld [vmem:[%s13058_s5 + $0xd0] ss:$8 sps:$4 sm:$0xff]  }
 0x474   : > { %6188 = vmatpush1.bf16.msra.mxu0 %v10472_v11  ;;  %v10511_v11 = vld [vmem:[%s13058_s5] ss:$8 sps:$4 sm:$0xff]   ;;  %v10557_v10 = vld [vmem:[%s13058_s5 + $0xf0] ss:$8 sps:$4 sm:$0xff]  }
 0x475   : > { %6189 = vmatprep.subr.bf16.mxu0 %v10477_v14  ;;  %v10516_v14 = vld [vmem:[%s13058_s5 + $0x14] ss:$8 sps:$4 sm:$0xff]  }
 0x477   : > { %6161 = vmatmul.mubr.bf16.gmra.mrb[24].mxu0 %v9032_v31  ;;  %v10522_v31 = vld [vmem:[%s13058_s5 + $0x34] ss:$8 sps:$4 sm:$0xff]  }
 0x478   : > { %6170 = vmatprep.mubr.bf16.mxu0 %v9039_v33  ;;  %6190 = vmatpush1.bf16.msra.mxu0 %v10475_v20  ;;  %v10519_v20 = vld [vmem:[%s13058_s5 + $0x24] ss:$8 sps:$4 sm:$0xff]  }
 0x479   : > { %6191 = vmatprep.subr.bf16.mxu0 %v10480_v30  ;;  %v9028_v30 = vcombine.low %v5334_v27, %v5336_v19  ;;  %v5196_v33 = vld [vmem:[#allocation2 + $0x60] sm:$0x1e]  ;;  %v10575_v19 = vld [vmem:[%s13058_s5 + $0x134] ss:$8 sps:$4 sm:$0xff]   ;;  %v10573_v27 = vld [vmem:[%s13058_s5 + $0x130] ss:$8 sps:$4 sm:$0xff]  }
 0x47c   : > { %6192 = vmatpush1.bf16.msra.mxu0 %v10478_v39  ;;  %v5340_v39 = vrot.slane %v5196_v33, 1  ;;  %v10583_v33 = vld [vmem:[%s13058_s5 + $0x154] ss:$8 sps:$4 sm:$0xff]  }
 0x47d   : > { %6193 = vmatprep.subr.bf16.mxu0 %v10483_v42  ;;  %v5345_v42 = vrot.slane %v5201_v34, 1  ;;  %v10580_v34 = vld [vmem:[#allocation2 + $0x68] ss:$16 sps:$4 sm:$0xff]  }
 0x47f   : > { %6171 = vmatmul.mubr.bf16.gmra.mrb[28].mxu0 %v9038_v47  ;;  %v9041_v47 = vcombine.low %v5343_v1, %v5345_v42  ;;  %v10587_v42 = vld [vmem:[%s13058_s5 + $0x164] ss:$8 sps:$4 sm:$0xff]   ;;  %v10585_v1 = vld [vmem:[%s13058_s5 + $0x160] ss:$8 sps:$4 sm:$0xff]  }
 0x480   : > { %6194 = vmatpush1.bf16.msra.mxu0 %v10481_v45  ;;  %6213 = vmatprep.mubr.bf16.mxu0 %v9023_v49  ;;  %v9034_v45 = vcombine.low %v5338_v43, %v5340_v39  ;;  %v10526_v49 = vld [vmem:[%s13058_s5 + $0x50] ss:$8 sps:$4 sm:$0xff]  }
 0x481   : > { %6195 = vmatprep.subr.bf16.mxu0 %v10486_v48  ;;  %v5200_v48 = vld [vmem:[#allocation2 + $0x80] sm:$0x1e] }
 0x484   : > { %6196 = vmatpush1.bf16.msra.mxu0 %v10484_v50  ;;  %v5198_v50 = vld [vmem:[#allocation2 + $0x70] sm:$0x1e] }
 0x485   : > { %6197 = vmatprep.subr.bf16.mxu0 %v10489_v51  ;;  %v5344_v51 = vrot.slane %v5200_v48, 1  ;;  %v10588_v48 = vld [vmem:[%s13058_s5 + $0x170] ss:$8 sps:$4 sm:$0xff]  }
 0x488   : > { %6198 = vmatpush1.bf16.msra.mxu0 %v10487_v52  ;;  %v10531_v52 = vld [vmem:[%s13058_s5 + $0x64] ss:$8 sps:$4 sm:$0xff]  }
 0x489   : > { %6199 = vmatprep.subr.bf16.mxu0 %v10492_v53  ;;  %v5342_v53 = vrot.slane %v5198_v50, 1  ;;  %v10591_v50 = vld [vmem:[%s13058_s5 + $0x180] ss:$8 sps:$4 sm:$0xff]  }
 0x48c   : > { %6200 = vmatpush1.bf16.msra.mxu0 %v10490_v54  ;;  %v10529_v54 = vld [vmem:[%s13058_s5 + $0x60] ss:$8 sps:$4 sm:$0xff]  }
 0x48d   : > { %6201 = vmatprep.subr.bf16.mxu0 %v10495_v35  ;;  %v9040_v35 = vcombine.low %v5342_v53, %v5344_v51  ;;  %v10596_v51 = vld [vmem:[%s13058_s5 + $0x194] ss:$8 sps:$4 sm:$0xff]   ;;  %v10599_v53 = vld [vmem:[%s13058_s5 + $0x1a4] ss:$8 sps:$4 sm:$0xff]  }
 0x490   : > { %6202 = vmatpush1.bf16.msra.mxu0 %v10493_v55  ;;  %v10535_v55 = vld [vmem:[%s13058_s5 + $0x74] ss:$8 sps:$4 sm:$0xff]  }
 0x491   : > { %6203 = vmatprep.subr.bf16.mxu0 %v10498_v56  ;;  %v10532_v56 = vld [vmem:[#allocation2 + $0x8] ss:$16 sps:$4 sm:$0xff]  }
 0x494   : > { %6204 = vmatpush1.bf16.msra.mxu0 %v10496_v57  ;;  %v10533_v57 = vld [vmem:[%s13058_s5 + $0x70] ss:$8 sps:$4 sm:$0xff]  }
 0x495   : > { %6205 = vmatprep.subr.bf16.mxu0 %v10501_v36  ;;  %v10538_v36 = vld [vmem:[%s13058_s5 + $0x84] ss:$8 sps:$4 sm:$0xff]  }
 0x498   : > { %6206 = vmatpush1.bf16.msra.mxu0 %v10499_v58  ;;  %v10536_v58 = vld [vmem:[%s13058_s5 + $0x80] ss:$8 sps:$4 sm:$0xff]  }
 0x499   : > { %6207 = vmatprep.subr.bf16.mxu0 %v10504_v59  ;;  %v10541_v59 = vld [vmem:[%s13058_s5 + $0x94] ss:$8 sps:$4 sm:$0xff]  }
 0x49c   : > { %6208 = vmatpush1.bf16.msra.mxu0 %v10502_v60  ;;  %v10539_v60 = vld [vmem:[%s13058_s5 + $0x90] ss:$8 sps:$4 sm:$0xff]  }
 0x49d   : > { %6209 = vmatprep.subr.bf16.mxu0 %v10507_v61  ;;  %v10544_v61 = vld [vmem:[%s13058_s5 + $0xa4] ss:$8 sps:$4 sm:$0xff]  }
 0x4a0   : > { %6210 = vmatpush1.bf16.msra.mxu0 %v10505_v62  ;;  %v10542_v62 = vld [vmem:[%s13058_s5 + $0xa0] ss:$8 sps:$4 sm:$0xff]  }
 0x4a1   : > { %6211 = vmatprep.subr.bf16.mxu0 %v10510_v63  ;;  %v10547_v63 = vld [vmem:[%s13058_s5 + $0xb4] ss:$8 sps:$4 sm:$0xff]  }
 0x4a4   : > { %6212 = vmatpush1.bf16.msra.mxu0 %v10508_v3  ;;  %v10548_v3 = vld [vmem:[%s13058_s5 + $0xc0] ss:$8 sps:$4 sm:$0xff]  }
 0x4a5   : > { %6782 = vmatprep.subr.bf16.mxu0 %v10513_v6  ;;  %v10556_v6 = vld [vmem:[%s13058_s5 + $0xe4] ss:$8 sps:$4 sm:$0xff]  }
 0x4a7   : > { %6214 = vmatmul.mubr.bf16.vlgmr.msra.gmra.mrb[16].mxu0 %v9022_v13  ;;  %v10560_v13 = vld [vmem:[#allocation2] ss:$16 sps:$4 sm:$0xff]  }
 0x4a8   : > { %6223 = vmatprep.mubr.bf16.mxu0 %v9029_v26  ;;  %6783 = vmatpush1.bf16.msra.mxu0 %v10511_v11  ;;  %v10563_v11 = vld [vmem:[%s13058_s5 + $0x104] ss:$8 sps:$4 sm:$0xff]   ;;  %v10564_v26 = vld [vmem:[#allocation2 + $0x28] ss:$16 sps:$4 sm:$0xff]  }
 0x4a9   : > { %6784 = vmatprep.subr.bf16.mxu0 %v10516_v14  ;;  %v10567_v14 = vld [vmem:[%s13058_s5 + $0x114] ss:$8 sps:$4 sm:$0xff]  }
 0x4ac   : > { %6785 = vmatpush1.bf16.msra.mxu0 %v10514_v17  ;;  %v10569_v17 = vld [vmem:[%s13058_s5 + $0x120] ss:$8 sps:$4 sm:$0xff]  }
 0x4ad   : > { %6786 = vmatprep.subr.bf16.mxu0 %v10519_v20  ;;  %v10572_v20 = vld [vmem:[#allocation2 + $0x48] ss:$16 sps:$4 sm:$0xff]  }
 0x4af   : > { %6224 = vmatmul.mubr.bf16.gmra.mrb[20].mxu0 %v9028_v30  ;;  %v4874_v30 = vshll.u32 %v4821_v5, 16  ;;  %v4827_v5 = vld [vmem:[#allocation2 + $0x48] sm:$0x1f] }
 0x4b0   : > { %6233 = vmatprep.mubr.bf16.mxu0 %v9035_v32  ;;  %6787 = vmatpush1.bf16.msra.mxu0 %v10517_v28  ;;  %v10579_v28 = vld [vmem:[%s13058_s5 + $0x144] ss:$8 sps:$4 sm:$0xff]   ;;  %v10576_v32 = vld [vmem:[#allocation2 + $0x40] ss:$16 sps:$4 sm:$0xff]  }
 0x4b1   : > { %6788 = vmatprep.subr.bf16.mxu0 %v10522_v31  ;;  %v10577_v31 = vld [vmem:[%s13058_s5 + $0x140] ss:$8 sps:$4 sm:$0xff]   ;;  %v4876_v39 = vrot.slane %v4874_v30, 1 }
 0x4b4   : > { %6789 = vmatpush1.bf16.msra.mxu0 %v10520_v37  ;;  %v4858_v37 = vshrl.u32 %v4819_v21, 16 }
 0x4b5   : > { %6790 = vmatprep.subr.bf16.mxu0 %v10525_v40  ;;  %v10581_v40 = vld [vmem:[%s13058_s5 + $0x150] ss:$8 sps:$4 sm:$0xff]  }
 0x4b6   : > { %v4863_v43 = vor.u32 %v4862_v38, %v4858_v37  ;;  %v10620_v37 = vld [vmem:[%s13058_s5 + $0x214] ss:$8 sps:$4 sm:$0xff]  }
 0x4b7   : > { %6234 = vmatmul.mubr.bf16.gmra.mrb[24].mxu0 %v9034_v45  ;;  %v10584_v45 = vld [vmem:[#allocation2 + $0x60] ss:$16 sps:$4 sm:$0xff]  }
 0x4b8   : > { %6243 = vmatprep.mubr.bf16.mxu0 %v9041_v47  ;;  %6791 = vmatpush1.bf16.msra.mxu0 %v10523_v44  ;;  %v4877_v44 = vor.u32 %v4876_v39, %v4872_v41  ;;  %v4828_v41 = vld [vmem:[#allocation2 + $0x50] sm:$0x1f] }
 0x4b9   : > { %6792 = vmatprep.subr.bf16.mxu0 %v10528_v46  ;;  %v10590_v46 = vld [vmem:[%s13058_s5 + $0x174] ss:$8 sps:$4 sm:$0xff]  }
 0x4ba   : > { %v9141_v47 = vcombine.low %v4863_v43, %v4877_v44  ;;  %v4833_v44 = vld [vmem:[#allocation2 + $0x78] sm:$0x1f] }
 0x4bc   : > { %6793 = vmatpush1.bf16.msra.mxu0 %v10526_v49  ;;  %v10593_v49 = vld [vmem:[%s13058_s5 + $0x184] ss:$8 sps:$4 sm:$0xff]  }
 0x4bd   : > { %6794 = vmatprep.subr.bf16.mxu0 %v10531_v52  ;;  %v10594_v52 = vld [vmem:[%s13058_s5 + $0x190] ss:$8 sps:$4 sm:$0xff]  }
 0x4bf   : > { %6244 = vmatmul.mubr.bf16.gmra.mrb[28].mxu0 %v9040_v35  ;;  %v10602_v35 = vld [vmem:[%s13058_s5 + $0x1b4] ss:$8 sps:$4 sm:$0xff]  }
 0x4c0   : > { %6795 = vmatpush1.bf16.msra.mxu0 %v10529_v54  ;;  %6814 = vmatprep.mubr.bf16.mxu0 %v10532_v56  ;;  %v10597_v54 = vld [vmem:[%s13058_s5 + $0x1a0] ss:$8 sps:$4 sm:$0xff]   ;;  %v10605_v56 = vld [vmem:[%s13058_s5 + $0x1c4] ss:$8 sps:$4 sm:$0xff]  }
 0x4c1   : > { %6796 = vmatprep.subr.bf16.mxu0 %v10535_v55  ;;  %v10600_v55 = vld [vmem:[%s13058_s5 + $0x1b0] ss:$8 sps:$4 sm:$0xff]  }
 0x4c4   : > { %6797 = vmatpush1.bf16.msra.mxu0 %v10533_v57  ;;  %v10603_v57 = vld [vmem:[%s13058_s5 + $0x1c0] ss:$8 sps:$4 sm:$0xff]  }
 0x4c5   : > { %6798 = vmatprep.subr.bf16.mxu0 %v10538_v36  ;;  %v10608_v36 = vld [vmem:[%s13058_s5 + $0x1d4] ss:$8 sps:$4 sm:$0xff]  }
 0x4c8   : > { %6799 = vmatpush1.bf16.msra.mxu0 %v10536_v58  ;;  %v4818_v58 = vld [vmem:[#allocation2] sm:$0x1f] }
 0x4c9   : > { %6800 = vmatprep.subr.bf16.mxu0 %v10541_v59  ;;  %v4820_v59 = vld [vmem:[#allocation2 + $0x10] sm:$0x1f] }
 0x4cc   : > { %6801 = vmatpush1.bf16.msra.mxu0 %v10539_v60  ;;  %v4825_v60 = vld [vmem:[#allocation2 + $0x38] sm:$0x1f] }
 0x4cd   : > { %6802 = vmatprep.subr.bf16.mxu0 %v10544_v61  ;;  %v10606_v61 = vld [vmem:[%s13058_s5 + $0x1d0] ss:$8 sps:$4 sm:$0xff]  }
 0x4d0   : > { %6803 = vmatpush1.bf16.msra.mxu0 %v10542_v62  ;;  %v10611_v62 = vld [vmem:[%s13058_s5 + $0x1e4] ss:$8 sps:$4 sm:$0xff]  }
 0x4d1   : > { %6804 = vmatprep.subr.bf16.mxu0 %v10547_v63  ;;  %v4853_v63 = vshll.u32 %v4818_v58, 16 }
 0x4d4   : > { %6805 = vmatpush1.bf16.msra.mxu0 %v10545_v0  ;;  %v4867_v0 = vshll.u32 %v4820_v59, 16 }
 0x4d5   : > { %6806 = vmatprep.subr.bf16.mxu0 %v10550_v2  ;;  %v4823_v2 = vld [vmem:[#allocation2 + $0x28] sm:$0x1f] }
 0x4d8   : > { %6807 = vmatpush1.bf16.msra.mxu0 %v10548_v3  ;;  %v4902_v3 = vshll.u32 %v4825_v60, 16 }
 0x4d9   : > { %6808 = vmatprep.subr.bf16.mxu0 %v10553_v4  ;;  %v10609_v4 = vld [vmem:[%s13058_s5 + $0x1e0] ss:$8 sps:$4 sm:$0xff]  }
 0x4dc   : > { %6809 = vmatpush1.bf16.msra.mxu0 %v10551_v25  ;;  %v4888_v25 = vshll.u32 %v4823_v2, 16 }
 0x4dd   : > { %6810 = vmatprep.subr.bf16.mxu0 %v10556_v6  ;;  %v10614_v6 = vld [vmem:[%s13058_s5 + $0x1f4] ss:$8 sps:$4 sm:$0xff]  }
 0x4e0   : > { %6811 = vmatpush1.bf16.msra.mxu0 %v10554_v7  ;;  %v4851_v7 = vshrl.u32 %v4818_v58, 16 }
 0x4e1   : > { %6812 = vmatprep.subr.bf16.mxu0 %v10559_v8  ;;  %v4855_v8 = vrot.slane %v4853_v63, 1 }
 0x4e4   : > { %6813 = vmatpush1.bf16.msra.mxu0 %v10557_v10  ;;  %v4869_v10 = vrot.slane %v4867_v0, 1  ;;  %v4832_v0 = vld [vmem:[#allocation2 + $0x70] sm:$0x1f] }
 0x4e5   : > { %6855 = vmatprep.subr.bf16.mxu0 %v10563_v11  ;;  %v4904_v11 = vrot.slane %v4902_v3, 1  ;;  %v4921_v3 = vshrl.u32 %v4828_v41, 16 }
 0x4e7   : > { %6815 = vmatmul.mubr.bf16.vlgmr.msra.gmra.mrb[16].mxu0 %v10560_v13  ;;  %v4865_v13 = vshrl.u32 %v4820_v59, 16 }
 0x4e8   : > { %6824 = vmatprep.mubr.bf16.mxu0 %v10564_v26  ;;  %6856 = vmatpush1.bf16.msra.mxu0 %v10561_v12  ;;  %v4824_v12 = vld [vmem:[#allocation2 + $0x30] sm:$0x1f] }
 0x4e9   : > { %6857 = vmatprep.subr.bf16.mxu0 %v10567_v14  ;;  %v4829_v14 = vld [vmem:[#allocation2 + $0x58] sm:$0x1f]  ;;  %v4895_v21 = vshll.u32 %v4824_v12, 16  ;;  %v4893_v43 = vshrl.u32 %v4824_v12, 16  ;;  %v4951_v12 = vshll.u32 %v4832_v0, 16 }
 0x4ea   : > { %v10612_v26 = vld [vmem:[%s13058_s5 + $0x1f0] ss:$8 sps:$4 sm:$0xff]   ;;  %v4930_v29 = vshll.u32 %v4829_v14, 16 }
 0x4eb   : > { %v4897_v38 = vrot.slane %v4895_v21, 1 }
 0x4ec   : > { %6858 = vmatpush1.bf16.msra.mxu0 %v10565_v15  ;;  %v4890_v15 = vrot.slane %v4888_v25, 1 }
 0x4ed   : > { %6859 = vmatprep.subr.bf16.mxu0 %v10571_v16  ;;  %v4900_v16 = vshrl.u32 %v4825_v60, 16  ;;  %v10626_v60 = vld [vmem:[%s13058_s5 + $0x234] ss:$8 sps:$4 sm:$0xff]  }
 0x4ef   : > { %6825 = vmatmul.mubr.bf16.gmra.mrb[20].mxu0 %v10568_v18  ;;  %v4856_v18 = vor.u32 %v4855_v8, %v4851_v7  ;;  %v4830_v7 = vld [vmem:[#allocation2 + $0x60] sm:$0x1f] }
 0x4f0   : > { %6834 = vmatprep.mubr.bf16.mxu0 %v10572_v20  ;;  %6860 = vmatpush1.bf16.msra.mxu0 %v10569_v17  ;;  %v4822_v17 = vld [vmem:[#allocation2 + $0x20] sm:$0x1f] }
 0x4f1   : > { %6861 = vmatprep.subr.bf16.mxu0 %v10575_v19  ;;  %v4870_v19 = vor.u32 %v4869_v10, %v4865_v13  ;;  %v10617_v20 = vld [vmem:[%s13058_s5 + $0x204] ss:$8 sps:$4 sm:$0xff]   ;;  %v4881_v30 = vshll.u32 %v4822_v17, 16 }
 0x4f4   : > { %6862 = vmatpush1.bf16.msra.mxu0 %v10573_v27  ;;  %v4886_v27 = vshrl.u32 %v4823_v2, 16 }
 0x4f5   : > { %6863 = vmatprep.subr.bf16.mxu0 %v10579_v28  ;;  %v4905_v28 = vor.u32 %v4904_v11, %v4900_v16  ;;  %v10629_v11 = vld [vmem:[%s13058_s5 + $0x244] ss:$8 sps:$4 sm:$0xff]   ;;  %v10627_v16 = vld [vmem:[%s13058_s5 + $0x240] ss:$8 sps:$4 sm:$0xff]  }
 0x4f7   : > { %6835 = vmatmul.mubr.bf16.gmra.mrb[24].mxu0 %v10576_v32  ;;  %v4891_v32 = vor.u32 %v4890_v15, %v4886_v27  ;;  %v4937_v15 = vshll.u32 %v4830_v7, 16  ;;  %v4949_v27 = vshrl.u32 %v4832_v0, 16 }
 0x4f8   : > { %6844 = vmatprep.mubr.bf16.mxu0 %v10580_v34  ;;  %6864 = vmatpush1.bf16.msra.mxu0 %v10577_v31  ;;  %v10615_v31 = vld [vmem:[%s13058_s5 + $0x200] ss:$8 sps:$4 sm:$0xff]   ;;  %v9140_v34 = vcombine.low %v4856_v18, %v4870_v19  ;;  %v10632_v19 = vld [vmem:[%s13058_s5 + $0x254] ss:$8 sps:$4 sm:$0xff]  }
 0x4f9   : > { %6865 = vmatprep.subr.bf16.mxu0 %v10583_v33  ;;  %v4916_v33 = vshll.u32 %v4827_v5, 16  ;;  %v9147_v39 = vcombine.low %v4891_v32, %v4905_v28  ;;  %v4835_v28 = vld [vmem:[#allocation2 + $0x8] sm:$0x1e] }
 0x4fc   : > { %6866 = vmatpush1.bf16.msra.mxu0 %v10581_v40  ;;  %v4932_v40 = vrot.slane %v4930_v29, 1  ;;  %v4837_v29 = vld [vmem:[#allocation2 + $0x18] sm:$0x1e] }
 0x4fd   : > { %6867 = vmatprep.subr.bf16.mxu0 %v10587_v42  ;;  %v4883_v42 = vrot.slane %v4881_v30, 1  ;;  %v10630_v30 = vld [vmem:[%s13058_s5 + $0x250] ss:$8 sps:$4 sm:$0xff]  }
 0x4ff   : > { %6845 = vmatmul.mubr.bf16.gmra.mrb[28].mxu0 %v10584_v45  ;;  %v4918_v45 = vrot.slane %v4916_v33, 1  ;;  %v10635_v33 = vld [vmem:[%s13058_s5 + $0x264] ss:$8 sps:$4 sm:$0xff]  }
 0x500   : > { %6868 = vmatpush1.bf16.msra.mxu0 %v10585_v1  ;;  %6887 = vmatprep.mubr.bf16.mxu0 %v9141_v47  ;;  %v10618_v1 = vld [vmem:[%s13058_s5 + $0x210] ss:$8 sps:$4 sm:$0xff]   ;;  %v4826_v47 = vld [vmem:[#allocation2 + $0x40] sm:$0x1f] }
 0x501   : > { %6869 = vmatprep.subr.bf16.mxu0 %v10590_v46  ;;  %v4928_v46 = vshrl.u32 %v4829_v14, 16  ;;  %v4907_v8 = vshrl.u32 %v4826_v47, 16 }
 0x504   : > { %6870 = vmatpush1.bf16.msra.mxu0 %v10588_v48  ;;  %v4879_v48 = vshrl.u32 %v4822_v17, 16 }
 0x505   : > { %6871 = vmatprep.subr.bf16.mxu0 %v10593_v49  ;;  %v4898_v49 = vor.u32 %v4897_v38, %v4893_v43  ;;  %v10636_v43 = vld [vmem:[%s13058_s5 + $0x270] ss:$8 sps:$4 sm:$0xff]  }
 0x508   : > { %6872 = vmatpush1.bf16.msra.mxu0 %v10591_v50  ;;  %v10623_v50 = vld [vmem:[%s13058_s5 + $0x224] ss:$8 sps:$4 sm:$0xff]  }
 0x509   : > { %6873 = vmatprep.subr.bf16.mxu0 %v10596_v51  ;;  %v4923_v51 = vshll.u32 %v4828_v41, 16  ;;  %v10638_v41 = vld [vmem:[%s13058_s5 + $0x274] ss:$8 sps:$4 sm:$0xff]  }
 0x50c   : > { %6874 = vmatpush1.bf16.msra.mxu0 %v10594_v52  ;;  %v4831_v52 = vld [vmem:[#allocation2 + $0x68] sm:$0x1f] }
 0x50d   : > { %6875 = vmatprep.subr.bf16.mxu0 %v10599_v53  ;;  %v4914_v53 = vshrl.u32 %v4827_v5, 16  ;;  %v4944_v58 = vshll.u32 %v4831_v52, 16  ;;  %v4942_v13 = vshrl.u32 %v4831_v52, 16  ;;  %v4939_v5 = vrot.slane %v4937_v15, 1  ;;  %v10651_v52 = vld [vmem:[%s13058_s5 + $0x2c0] ss:$8 sps:$4 sm:$0xff]  }
 0x50f   : > { %v4946_v25 = vrot.slane %v4944_v58, 1  ;;  %v4841_v58 = vld [vmem:[#allocation2 + $0x38] sm:$0x1e] }
 0x510   : > { %6876 = vmatpush1.bf16.msra.mxu0 %v10597_v54  ;;  %v4933_v54 = vor.u32 %v4932_v40, %v4928_v46  ;;  %v10642_v46 = vld [vmem:[%s13058_s5 + $0x290] ss:$8 sps:$4 sm:$0xff]   ;;  %v4985_v0 = vrot.slane %v4841_v58, 1  ;;  %v10700_v58 = vld [vmem:[%s13058_s5 + $0x6c0] ss:$8 sps:$4 sm:$0xff]  }
 0x511   : > { %6877 = vmatprep.subr.bf16.mxu0 %v10602_v35  ;;  %v4958_v35 = vshll.u32 %v4833_v44, 16  ;;  %v4947_v17 = vor.u32 %v4946_v25, %v4942_v13  ;;  %v10668_v25 = vld [vmem:[%s13058_s5 + $0x614] ss:$8 sps:$4 sm:$0xff]   ;;  %v10671_v13 = vld [vmem:[%s13058_s5 + $0x624] ss:$8 sps:$4 sm:$0xff]  }
 0x513   : > { %v4960_v63 = vrot.slane %v4958_v35, 1  ;;  %v10659_v35 = vld [vmem:[%s13058_s5 + $0x2e4] ss:$8 sps:$4 sm:$0xff]  }
 0x514   : > { %6878 = vmatpush1.bf16.msra.mxu0 %v10600_v55  ;;  %v4884_v55 = vor.u32 %v4883_v42, %v4879_v48  ;;  %v10645_v48 = vld [vmem:[%s13058_s5 + $0x2a0] ss:$8 sps:$4 sm:$0xff]  }
 0x515   : > { %6879 = vmatprep.subr.bf16.mxu0 %v10605_v56  ;;  %v4909_v56 = vshll.u32 %v4826_v47, 16  ;;  %v10647_v47 = vld [vmem:[%s13058_s5 + $0x2a4] ss:$8 sps:$4 sm:$0xff]  }
 0x516   : > { %v9146_v59 = vcombine.low %v4884_v55, %v4898_v49  ;;  %v10650_v49 = vld [vmem:[%s13058_s5 + $0x2b4] ss:$8 sps:$4 sm:$0xff]   ;;  %v10657_v55 = vld [vmem:[%s13058_s5 + $0x2e0] ss:$8 sps:$4 sm:$0xff]  }
 0x517   : > { %v4911_v2 = vrot.slane %v4909_v56, 1  ;;  %v10662_v56 = vld [vmem:[%s13058_s5 + $0x2f4] ss:$8 sps:$4 sm:$0xff]  }
 0x518   : > { %6880 = vmatpush1.bf16.msra.mxu0 %v10603_v57  ;;  %v10621_v57 = vld [vmem:[%s13058_s5 + $0x220] ss:$8 sps:$4 sm:$0xff]  }
 0x519   : > { %6881 = vmatprep.subr.bf16.mxu0 %v10608_v36  ;;  %v4919_v36 = vor.u32 %v4918_v45, %v4914_v53  ;;  %v10644_v45 = vld [vmem:[%s13058_s5 + $0x294] ss:$8 sps:$4 sm:$0xff]  }
 0x51a   : > { %v10656_v53 = vld [vmem:[%s13058_s5 + $0x2d4] ss:$8 sps:$4 sm:$0xff]  }
 0x51c   : > { %6882 = vmatpush1.bf16.msra.mxu0 %v10606_v61  ;;  %v4925_v61 = vrot.slane %v4923_v51, 1  ;;  %v10653_v51 = vld [vmem:[%s13058_s5 + $0x2c4] ss:$8 sps:$4 sm:$0xff]  }
 0x51d   : > { %6883 = vmatprep.subr.bf16.mxu0 %v10611_v62  ;;  %v9153_v62 = vcombine.low %v4919_v36, %v4933_v54  ;;  %v10654_v54 = vld [vmem:[%s13058_s5 + $0x2d0] ss:$8 sps:$4 sm:$0xff]  }
 0x51e   : > { %v4926_v10 = vor.u32 %v4925_v61, %v4921_v3  ;;  %v4836_v36 = vld [vmem:[#allocation2 + $0x10] sm:$0x1e] }
 0x51f   : > { %v4980_v61 = vrot.slane %v4836_v36, 1  ;;  %v10702_v36 = vld [vmem:[%s13058_s5 + $0x6c4] ss:$8 sps:$4 sm:$0xff]  }
 0x520   : > { %6884 = vmatpush1.bf16.msra.mxu0 %v10609_v4  ;;  %v10624_v4 = vld [vmem:[%s13058_s5 + $0x230] ss:$8 sps:$4 sm:$0xff]  }
 0x521   : > { %6885 = vmatprep.subr.bf16.mxu0 %v10614_v6  ;;  %v4956_v6 = vshrl.u32 %v4833_v44, 16  ;;  %v10641_v44 = vld [vmem:[%s13058_s5 + $0x284] ss:$8 sps:$4 sm:$0xff]  }
 0x523   : > { %v4961_v14 = vor.u32 %v4960_v63, %v4956_v6  ;;  %v4839_v63 = vld [vmem:[#allocation2 + $0x28] sm:$0x1e] }
 0x524   : > { %6886 = vmatpush1.bf16.msra.mxu0 %v10612_v26  ;;  %v4912_v26 = vor.u32 %v4911_v2, %v4907_v8  ;;  %v10663_v2 = vld [vmem:[%s13058_s5 + $0x600] ss:$8 sps:$4 sm:$0xff]   ;;  %v4983_v3 = vrot.slane %v4839_v63, 1  ;;  %v4845_v8 = vld [vmem:[#allocation2 + $0x58] sm:$0x1e] }
 0x525   : > { %6928 = vmatprep.subr.bf16.mxu0 %v10617_v20  ;;  %v4953_v20 = vrot.slane %v4951_v12, 1  ;;  %v9159_v21 = vcombine.low %v4947_v17, %v4961_v14  ;;  %v4843_v14 = vld [vmem:[#allocation2 + $0x48] sm:$0x1e]  ;;  %v10711_v63 = vld [vmem:[%s13058_s5 + $0x6f4] ss:$8 sps:$4 sm:$0xff]  }
 0x526   : > { %v9152_v18 = vcombine.low %v4912_v26, %v4926_v10  ;;  %v9149_v6 = vcombine.low %v4983_v3, %v4985_v0  ;;  %v10666_v10 = vld [vmem:[%s13058_s5 + $0x610] ss:$8 sps:$4 sm:$0xff]   ;;  %v4989_v26 = vrot.slane %v4845_v8, 1  ;;  %v4987_v17 = vrot.slane %v4843_v14, 1  ;;  %v10713_v3 = vld [vmem:[%s13058_s5 + $0x700] ss:$8 sps:$4 sm:$0xff]  }
 0x527   : > { %6888 = vmatmul.mubr.bf16.vlgmr.msra.gmra.mrb[16].mxu0 %v9140_v34  ;;  %v4954_v32 = vor.u32 %v4953_v20, %v4949_v27  ;;  %v4979_v34 = vrot.slane %v4835_v28, 1  ;;  %v10672_v27 = vld [vmem:[%s13058_s5 + $0x630] ss:$8 sps:$4 sm:$0xff]   ;;  %v4842_v28 = vld [vmem:[#allocation2 + $0x40] sm:$0x1e] }
 0x528   : > { %6897 = vmatprep.mubr.bf16.mxu0 %v9147_v39  ;;  %6929 = vmatpush1.bf16.msra.mxu0 %v10615_v31  ;;  %v4935_v31 = vshrl.u32 %v4830_v7, 16  ;;  %v10633_v39 = vld [vmem:[%s13058_s5 + $0x260] ss:$8 sps:$4 sm:$0xff]   ;;  %v4840_v7 = vld [vmem:[#allocation2 + $0x30] sm:$0x1e]  ;;  %v9155_v20 = vcombine.low %v4987_v17, %v4989_v26 }
 0x529   : > { %6930 = vmatprep.subr.bf16.mxu0 %v10620_v37  ;;  %v4981_v37 = vrot.slane %v4837_v29, 1  ;;  %v4984_v12 = vrot.slane %v4840_v7, 1  ;;  %v10709_v0 = vld [vmem:[%s13058_s5 + $0x6f0] ss:$8 sps:$4 sm:$0xff]   ;;  %v10723_v8 = vld [vmem:[%s13058_s5 + $0x724] ss:$8 sps:$4 sm:$0xff]  }
 0x52a   : > { %v4940_v38 = vor.u32 %v4939_v5, %v4935_v31  ;;  %v4849_v5 = vld [vmem:[#allocation2 + $0x78] sm:$0x1e]  ;;  %v4847_v31 = vld [vmem:[#allocation2 + $0x68] sm:$0x1e] }
 0x52b   : > { %v9143_v42 = vcombine.low %v4979_v34, %v4981_v37  ;;  %v10675_v34 = vld [vmem:[%s13058_s5 + $0x640] ss:$8 sps:$4 sm:$0xff]   ;;  %v4991_v37 = vrot.slane %v4847_v31, 1  ;;  %v10717_v7 = vld [vmem:[%s13058_s5 + $0x710] ss:$8 sps:$4 sm:$0xff]  }
 0x52c   : > { %6931 = vmatpush1.bf16.msra.mxu0 %v10618_v1  ;;  %v9158_v40 = vcombine.low %v4940_v38, %v4954_v32  ;;  %v10639_v1 = vld [vmem:[%s13058_s5 + $0x280] ss:$8 sps:$4 sm:$0xff]   ;;  %v4993_v32 = vrot.slane %v4849_v5, 1  ;;  %v7020_v14 = vld [vmem:[#allocation2 + $0x38] sm:$0x1f] }
 0x52d   : > { %6932 = vmatprep.subr.bf16.mxu0 %v10623_v50  ;;  %v10648_v50 = vld [vmem:[%s13058_s5 + $0x2b0] ss:$8 sps:$4 sm:$0xff]   ;;  %v7073_v17 = vshll.u32 %v7020_v14, 16  ;;  %v10739_v31 = vld [vmem:[%s13058_s5 + $0x764] ss:$8 sps:$4 sm:$0xff]  }
 0x52e   : > { %v10725_v26 = vld [vmem:[%s13058_s5 + $0x730] ss:$8 sps:$4 sm:$0xff]  }
 0x52f   : > { %6898 = vmatmul.mubr.bf16.gmra.mrb[20].mxu0 %v9146_v59  ;;  %v10660_v59 = vld [vmem:[%s13058_s5 + $0x2f0] ss:$8 sps:$4 sm:$0xff]  }
 0x530   : > { %6907 = vmatprep.mubr.bf16.mxu0 %v9153_v62  ;;  %6933 = vmatpush1.bf16.msra.mxu0 %v10621_v57  ;;  %v4834_v57 = vld [vmem:[#allocation2] sm:$0x1e]  ;;  %v10732_v5 = vld [vmem:[#allocation2 + $0x88] ss:$16 sps:$4 sm:$0xff]  }
 0x531   : > { %6934 = vmatprep.subr.bf16.mxu0 %v10626_v60  ;;  %v4978_v60 = vrot.slane %v4834_v57, 1  ;;  %v10665_v62 = vld [vmem:[%s13058_s5 + $0x604] ss:$8 sps:$4 sm:$0xff]   ;;  %v10697_v57 = vld [vmem:[%s13058_s5 + $0x6b0] ss:$8 sps:$4 sm:$0xff]  }
 0x534   : > { %6935 = vmatpush1.bf16.msra.mxu0 %v10624_v4  ;;  %v9142_v4 = vcombine.low %v4978_v60, %v4980_v61  ;;  %v10703_v60 = vld [vmem:[%s13058_s5 + $0x6d0] ss:$8 sps:$4 sm:$0xff]   ;;  %v10708_v61 = vld [vmem:[%s13058_s5 + $0x6e4] ss:$8 sps:$4 sm:$0xff]  }
 0x535   : > { %6936 = vmatprep.subr.bf16.mxu0 %v10629_v11  ;;  %v4838_v11 = vld [vmem:[#allocation2 + $0x20] sm:$0x1e] }
 0x536   : > { %v4982_v15 = vrot.slane %v4838_v11, 1  ;;  %v10720_v11 = vld [vmem:[#allocation2 + $0x40] ss:$16 sps:$4 sm:$0xff]  }
 0x537   : > { %6908 = vmatmul.mubr.bf16.gmra.mrb[24].mxu0 %v9152_v18 }
 0x538   : > { %6917 = vmatprep.mubr.bf16.mxu0 %v9159_v21  ;;  %6937 = vmatpush1.bf16.msra.mxu0 %v10627_v16  ;;  %v10669_v16 = vld [vmem:[%s13058_s5 + $0x620] ss:$8 sps:$4 sm:$0xff]   ;;  %v9148_v18 = vcombine.low %v4982_v15, %v4984_v12  ;;  %v4844_v21 = vld [vmem:[#allocation2 + $0x50] sm:$0x1e]  ;;  %v10731_v15 = vld [vmem:[%s13058_s5 + $0x744] ss:$8 sps:$4 sm:$0xff]  }
 0x539   : > { %6938 = vmatprep.subr.bf16.mxu0 %v10632_v19  ;;  %v10674_v19 = vld [vmem:[%s13058_s5 + $0x634] ss:$8 sps:$4 sm:$0xff]   ;;  %v4988_v29 = vrot.slane %v4844_v21, 1 }
 0x53a   : > { %v10727_v12 = vld [vmem:[%s13058_s5 + $0x734] ss:$8 sps:$4 sm:$0xff]  }
 0x53b   : > { %v10735_v21 = vld [vmem:[%s13058_s5 + $0x754] ss:$8 sps:$4 sm:$0xff]  }
 0x53c   : > { %6939 = vmatpush1.bf16.msra.mxu0 %v10630_v30  ;;  %v10677_v30 = vld [vmem:[%s13058_s5 + $0x644] ss:$8 sps:$4 sm:$0xff]  }
 0x53d   : > { %6940 = vmatprep.subr.bf16.mxu0 %v10635_v33  ;;  %v4986_v33 = vrot.slane %v4842_v28, 1  ;;  %v10733_v28 = vld [vmem:[%s13058_s5 + $0x750] ss:$8 sps:$4 sm:$0xff]  }
 0x53f   : > { %6918 = vmatmul.mubr.bf16.gmra.mrb[28].mxu0 %v9158_v40  ;;  %v9154_v38 = vcombine.low %v4986_v33, %v4988_v29  ;;  %v9161_v40 = vcombine.low %v4991_v37, %v4993_v32 }
 0x540   : > { %6941 = vmatpush1.bf16.msra.mxu0 %v10633_v39  ;;  %6960 = vmatprep.mubr.bf16.mxu0 %v9143_v42  ;;  %v10680_v39 = vld [vmem:[%s13058_s5 + $0x654] ss:$8 sps:$4 sm:$0xff]   ;;  %v10678_v42 = vld [vmem:[%s13058_s5 + $0x650] ss:$8 sps:$4 sm:$0xff]  }
 0x541   : > { %6942 = vmatprep.subr.bf16.mxu0 %v10638_v41  ;;  %v4848_v41 = vld [vmem:[#allocation2 + $0x70] sm:$0x1e] }
 0x544   : > { %6943 = vmatpush1.bf16.msra.mxu0 %v10636_v43  ;;  %v4846_v43 = vld [vmem:[#allocation2 + $0x60] sm:$0x1e] }
 0x545   : > { %6944 = vmatprep.subr.bf16.mxu0 %v10641_v44  ;;  %v4992_v44 = vrot.slane %v4848_v41, 1  ;;  %v10740_v41 = vld [vmem:[%s13058_s5 + $0x770] ss:$8 sps:$4 sm:$0xff]  }
 0x548   : > { %6945 = vmatpush1.bf16.msra.mxu0 %v10639_v1  ;;  %v10683_v1 = vld [vmem:[%s13058_s5 + $0x664] ss:$8 sps:$4 sm:$0xff]  }
 0x549   : > { %6946 = vmatprep.subr.bf16.mxu0 %v10644_v45  ;;  %v4990_v45 = vrot.slane %v4846_v43, 1  ;;  %v10743_v43 = vld [vmem:[%s13058_s5 + $0x780] ss:$8 sps:$4 sm:$0xff]  }
 0x54c   : > { %6947 = vmatpush1.bf16.msra.mxu0 %v10642_v46  ;;  %v10681_v46 = vld [vmem:[%s13058_s5 + $0x660] ss:$8 sps:$4 sm:$0xff]  }
 0x54d   : > { %6948 = vmatprep.subr.bf16.mxu0 %v10647_v47  ;;  %v9160_v47 = vcombine.low %v4990_v45, %v4992_v44  ;;  %v10748_v44 = vld [vmem:[%s13058_s5 + $0x794] ss:$8 sps:$4 sm:$0xff]   ;;  %v10751_v45 = vld [vmem:[%s13058_s5 + $0x7a4] ss:$8 sps:$4 sm:$0xff]  }
 0x550   : > { %6949 = vmatpush1.bf16.msra.mxu0 %v10645_v48  ;;  %v10687_v48 = vld [vmem:[%s13058_s5 + $0x674] ss:$8 sps:$4 sm:$0xff]  }
 0x551   : > { %6950 = vmatprep.subr.bf16.mxu0 %v10650_v49  ;;  %v10684_v49 = vld [vmem:[#allocation2 + $0x28] ss:$16 sps:$4 sm:$0xff]  }
 0x554   : > { %6951 = vmatpush1.bf16.msra.mxu0 %v10648_v50  ;;  %v10685_v50 = vld [vmem:[%s13058_s5 + $0x670] ss:$8 sps:$4 sm:$0xff]  }
 0x555   : > { %6952 = vmatprep.subr.bf16.mxu0 %v10653_v51  ;;  %v10690_v51 = vld [vmem:[%s13058_s5 + $0x684] ss:$8 sps:$4 sm:$0xff]  }
 0x558   : > { %6953 = vmatpush1.bf16.msra.mxu0 %v10651_v52  ;;  %v10688_v52 = vld [vmem:[%s13058_s5 + $0x680] ss:$8 sps:$4 sm:$0xff]  }
 0x559   : > { %6954 = vmatprep.subr.bf16.mxu0 %v10656_v53  ;;  %v10693_v53 = vld [vmem:[%s13058_s5 + $0x694] ss:$8 sps:$4 sm:$0xff]  }
 0x55c   : > { %6955 = vmatpush1.bf16.msra.mxu0 %v10654_v54  ;;  %v10691_v54 = vld [vmem:[%s13058_s5 + $0x690] ss:$8 sps:$4 sm:$0xff]  }
 0x55d   : > { %6956 = vmatprep.subr.bf16.mxu0 %v10659_v35  ;;  %v10696_v35 = vld [vmem:[%s13058_s5 + $0x6a4] ss:$8 sps:$4 sm:$0xff]  }
 0x560   : > { %6957 = vmatpush1.bf16.msra.mxu0 %v10657_v55  ;;  %v10694_v55 = vld [vmem:[%s13058_s5 + $0x6a0] ss:$8 sps:$4 sm:$0xff]  }
 0x561   : > { %6958 = vmatprep.subr.bf16.mxu0 %v10662_v56  ;;  %v10699_v56 = vld [vmem:[%s13058_s5 + $0x6b4] ss:$8 sps:$4 sm:$0xff]  }
 0x564   : > { %6959 = vmatpush1.bf16.msra.mxu0 %v10660_v59  ;;  %v10705_v59 = vld [vmem:[%s13058_s5 + $0x6d4] ss:$8 sps:$4 sm:$0xff]  }
 0x565   : > { %7882 = vmatprep.subr.bf16.mxu0 %v10665_v62  ;;  %v10706_v62 = vld [vmem:[%s13058_s5 + $0x6e0] ss:$8 sps:$4 sm:$0xff]  }
 0x567   : > { %6961 = vmatmul.mubr.bf16.vlgmr.msra.gmra.mrb[16].mxu0 %v9142_v4  ;;  %v10712_v4 = vld [vmem:[#allocation2 + $0x20] ss:$16 sps:$4 sm:$0xff]  }
 0x568   : > { %6970 = vmatprep.mubr.bf16.mxu0 %v9149_v6  ;;  %7883 = vmatpush1.bf16.msra.mxu0 %v10663_v2  ;;  %v10715_v2 = vld [vmem:[%s13058_s5 + $0x704] ss:$8 sps:$4 sm:$0xff]   ;;  %v10716_v6 = vld [vmem:[#allocation2 + $0x48] ss:$16 sps:$4 sm:$0xff]  }
 0x569   : > { %7884 = vmatprep.subr.bf16.mxu0 %v10668_v25  ;;  %v10719_v25 = vld [vmem:[%s13058_s5 + $0x714] ss:$8 sps:$4 sm:$0xff]  }
 0x56c   : > { %7885 = vmatpush1.bf16.msra.mxu0 %v10666_v10  ;;  %v10721_v10 = vld [vmem:[%s13058_s5 + $0x720] ss:$8 sps:$4 sm:$0xff]  }
 0x56d   : > { %7886 = vmatprep.subr.bf16.mxu0 %v10671_v13  ;;  %v10724_v13 = vld [vmem:[#allocation2 + $0x68] ss:$16 sps:$4 sm:$0xff]  }
 0x56f   : > { %6971 = vmatmul.mubr.bf16.gmra.mrb[20].mxu0 %v9148_v18  ;;  %v10729_v18 = vld [vmem:[%s13058_s5 + $0x740] ss:$8 sps:$4 sm:$0xff]  }
 0x570   : > { %6980 = vmatprep.mubr.bf16.mxu0 %v9155_v20  ;;  %7887 = vmatpush1.bf16.msra.mxu0 %v10669_v16  ;;  %v7018_v16 = vld [vmem:[#allocation2 + $0x28] sm:$0x1f]  ;;  %v10728_v20 = vld [vmem:[#allocation2 + $0x60] ss:$16 sps:$4 sm:$0xff]  }
 0x571   : > { %7888 = vmatprep.subr.bf16.mxu0 %v10674_v19  ;;  %v7059_v19 = vshll.u32 %v7018_v16, 16  ;;  %v7057_v32 = vshrl.u32 %v7018_v16, 16 }
 0x573   : > { %v7061_v29 = vrot.slane %v7059_v19, 1  ;;  %v10767_v19 = vld [vmem:[%s13058_s5 + $0x800] ss:$8 sps:$4 sm:$0xff]  }
 0x574   : > { %7889 = vmatpush1.bf16.msra.mxu0 %v10672_v27  ;;  %v7075_v27 = vrot.slane %v7073_v17, 1 }
 0x575   : > { %7890 = vmatprep.subr.bf16.mxu0 %v10677_v30  ;;  %v7071_v30 = vshrl.u32 %v7020_v14, 16  ;;  %v7062_v37 = vor.u32 %v7061_v29, %v7057_v32  ;;  %v7026_v14 = vld [vmem:[#allocation2 + $0x68] sm:$0x1f] }
 0x577   : > { %6981 = vmatmul.mubr.bf16.gmra.mrb[24].mxu0 %v9154_v38  ;;  %v7076_v33 = vor.u32 %v7075_v27, %v7071_v30  ;;  %v10736_v38 = vld [vmem:[#allocation2 + $0x80] ss:$16 sps:$4 sm:$0xff]   ;;  %v10772_v27 = vld [vmem:[%s13058_s5 + $0x814] ss:$8 sps:$4 sm:$0xff]  }
 0x578   : > { %6990 = vmatprep.mubr.bf16.mxu0 %v9161_v40  ;;  %7891 = vmatpush1.bf16.msra.mxu0 %v10675_v34  ;;  %v10737_v34 = vld [vmem:[%s13058_s5 + $0x760] ss:$8 sps:$4 sm:$0xff]  }
 0x579   : > { %7892 = vmatprep.subr.bf16.mxu0 %v10680_v39  ;;  %v10742_v39 = vld [vmem:[%s13058_s5 + $0x774] ss:$8 sps:$4 sm:$0xff]   ;;  %v9357_v40 = vcombine.low %v7062_v37, %v7076_v33 }
 0x57a   : > { %v7032_v37 = vld [vmem:[#allocation2 + $0x98] sm:$0x1f] }
 0x57c   : > { %7893 = vmatpush1.bf16.msra.mxu0 %v10678_v42  ;;  %v10745_v42 = vld [vmem:[%s13058_s5 + $0x784] ss:$8 sps:$4 sm:$0xff]  }
 0x57d   : > { %7894 = vmatprep.subr.bf16.mxu0 %v10683_v1  ;;  %v10746_v1 = vld [vmem:[%s13058_s5 + $0x790] ss:$8 sps:$4 sm:$0xff]  }
 0x57f   : > { %6991 = vmatmul.mubr.bf16.gmra.mrb[28].mxu0 %v9160_v47  ;;  %v10754_v47 = vld [vmem:[%s13058_s5 + $0x7b4] ss:$8 sps:$4 sm:$0xff]  }
 0x580   : > { %7895 = vmatpush1.bf16.msra.mxu0 %v10681_v46  ;;  %7914 = vmatprep.mubr.bf16.mxu0 %v10684_v49  ;;  %v10749_v46 = vld [vmem:[%s13058_s5 + $0x7a0] ss:$8 sps:$4 sm:$0xff]   ;;  %v10757_v49 = vld [vmem:[%s13058_s5 + $0x7c4] ss:$8 sps:$4 sm:$0xff]  }
 0x581   : > { %7896 = vmatprep.subr.bf16.mxu0 %v10687_v48  ;;  %v10752_v48 = vld [vmem:[%s13058_s5 + $0x7b0] ss:$8 sps:$4 sm:$0xff]  }
 0x584   : > { %7897 = vmatpush1.bf16.msra.mxu0 %v10685_v50  ;;  %v10755_v50 = vld [vmem:[%s13058_s5 + $0x7c0] ss:$8 sps:$4 sm:$0xff]  }
 0x585   : > { %7898 = vmatprep.subr.bf16.mxu0 %v10690_v51  ;;  %v10760_v51 = vld [vmem:[%s13058_s5 + $0x7d4] ss:$8 sps:$4 sm:$0xff]  }
 0x588   : > { %7899 = vmatpush1.bf16.msra.mxu0 %v10688_v52  ;;  %v7019_v52 = vld [vmem:[#allocation2 + $0x30] sm:$0x1f] }
 0x589   : > { %7900 = vmatprep.subr.bf16.mxu0 %v10693_v53  ;;  %v7024_v53 = vld [vmem:[#allocation2 + $0x58] sm:$0x1f] }
 0x58c   : > { %7901 = vmatpush1.bf16.msra.mxu0 %v10691_v54  ;;  %v10758_v54 = vld [vmem:[%s13058_s5 + $0x7d0] ss:$8 sps:$4 sm:$0xff]  }
 0x58d   : > { %7902 = vmatprep.subr.bf16.mxu0 %v10696_v35  ;;  %v7017_v35 = vld [vmem:[#allocation2 + $0x20] sm:$0x1f] }
 0x590   : > { %7903 = vmatpush1.bf16.msra.mxu0 %v10694_v55  ;;  %v10763_v55 = vld [vmem:[%s13058_s5 + $0x7e4] ss:$8 sps:$4 sm:$0xff]  }
 0x591   : > { %7904 = vmatprep.subr.bf16.mxu0 %v10699_v56  ;;  %v7066_v56 = vshll.u32 %v7019_v52, 16 }
 0x594   : > { %7905 = vmatpush1.bf16.msra.mxu0 %v10697_v57  ;;  %v7022_v57 = vld [vmem:[#allocation2 + $0x48] sm:$0x1f] }
 0x595   : > { %7906 = vmatprep.subr.bf16.mxu0 %v10702_v36  ;;  %v7101_v36 = vshll.u32 %v7024_v53, 16 }
 0x598   : > { %7907 = vmatpush1.bf16.msra.mxu0 %v10700_v58  ;;  %v7052_v58 = vshll.u32 %v7017_v35, 16 }
 0x599   : > { %7908 = vmatprep.subr.bf16.mxu0 %v10705_v59  ;;  %v10761_v59 = vld [vmem:[%s13058_s5 + $0x7e0] ss:$8 sps:$4 sm:$0xff]  }
 0x59c   : > { %7909 = vmatpush1.bf16.msra.mxu0 %v10703_v60  ;;  %v7087_v60 = vshll.u32 %v7022_v57, 16 }
 0x59d   : > { %7910 = vmatprep.subr.bf16.mxu0 %v10708_v61  ;;  %v10766_v61 = vld [vmem:[%s13058_s5 + $0x7f4] ss:$8 sps:$4 sm:$0xff]  }
 0x5a0   : > { %7911 = vmatpush1.bf16.msra.mxu0 %v10706_v62  ;;  %v7068_v62 = vrot.slane %v7066_v56, 1 }
 0x5a1   : > { %7912 = vmatprep.subr.bf16.mxu0 %v10711_v63  ;;  %v7103_v63 = vrot.slane %v7101_v36, 1  ;;  %v7155_v36 = vshrl.u32 %v7032_v37, 16 }
 0x5a4   : > { %7913 = vmatpush1.bf16.msra.mxu0 %v10709_v0  ;;  %v7023_v0 = vld [vmem:[#allocation2 + $0x50] sm:$0x1f] }
 0x5a5   : > { %7955 = vmatprep.subr.bf16.mxu0 %v10715_v2  ;;  %v7054_v2 = vrot.slane %v7052_v58, 1  ;;  %v7092_v33 = vshrl.u32 %v7023_v0, 16 }
 0x5a7   : > { %7915 = vmatmul.mubr.bf16.vlgmr.msra.gmra.mrb[16].mxu0 %v10712_v4  ;;  %v7028_v4 = vld [vmem:[#allocation2 + $0x78] sm:$0x1f] }
 0x5a8   : > { %7924 = vmatprep.mubr.bf16.mxu0 %v10716_v6  ;;  %7956 = vmatpush1.bf16.msra.mxu0 %v10713_v3  ;;  %v7064_v3 = vshrl.u32 %v7019_v52, 16  ;;  %v7089_v6 = vrot.slane %v7087_v60, 1  ;;  %v7129_v16 = vshll.u32 %v7028_v4, 16 }
 0x5a9   : > { %7957 = vmatprep.subr.bf16.mxu0 %v10719_v25  ;;  %v10764_v25 = vld [vmem:[%s13058_s5 + $0x7f0] ss:$8 sps:$4 sm:$0xff]  }
 0x5aa   : > { %v7131_v30 = vrot.slane %v7129_v16, 1 }
 0x5ac   : > { %7958 = vmatpush1.bf16.msra.mxu0 %v10717_v7  ;;  %v7099_v7 = vshrl.u32 %v7024_v53, 16 }
 0x5ad   : > { %7959 = vmatprep.subr.bf16.mxu0 %v10723_v8  ;;  %v7021_v8 = vld [vmem:[#allocation2 + $0x40] sm:$0x1f] }
 0x5af   : > { %7925 = vmatmul.mubr.bf16.gmra.mrb[20].mxu0 %v10720_v11  ;;  %v7069_v11 = vor.u32 %v7068_v62, %v7064_v3  ;;  %v10776_v62 = vld [vmem:[%s13058_s5 + $0x830] ss:$8 sps:$4 sm:$0xff]   ;;  %v10781_v3 = vld [vmem:[%s13058_s5 + $0x844] ss:$8 sps:$4 sm:$0xff]  }
 0x5b0   : > { %7934 = vmatprep.mubr.bf16.mxu0 %v10724_v13  ;;  %7960 = vmatpush1.bf16.msra.mxu0 %v10721_v10  ;;  %v7050_v10 = vshrl.u32 %v7017_v35, 16  ;;  %v7094_v13 = vshll.u32 %v7023_v0, 16 }
 0x5b1   : > { %7961 = vmatprep.subr.bf16.mxu0 %v10727_v12  ;;  %v10769_v12 = vld [vmem:[%s13058_s5 + $0x804] ss:$8 sps:$4 sm:$0xff]  }
 0x5b2   : > { %v7055_v17 = vor.u32 %v7054_v2, %v7050_v10  ;;  %v10779_v10 = vld [vmem:[%s13058_s5 + $0x840] ss:$8 sps:$4 sm:$0xff]  }
 0x5b4   : > { %7962 = vmatpush1.bf16.msra.mxu0 %v10725_v26  ;;  %v7085_v26 = vshrl.u32 %v7022_v57, 16 }
 0x5b5   : > { %7963 = vmatprep.subr.bf16.mxu0 %v10731_v15  ;;  %v7104_v15 = vor.u32 %v7103_v63, %v7099_v7 }
 0x5b7   : > { %7935 = vmatmul.mubr.bf16.gmra.mrb[24].mxu0 %v10728_v20  ;;  %v7090_v20 = vor.u32 %v7089_v6, %v7085_v26 }
 0x5b8   : > { %7944 = vmatprep.mubr.bf16.mxu0 %v10732_v5  ;;  %7964 = vmatpush1.bf16.msra.mxu0 %v10729_v18  ;;  %v7080_v18 = vshll.u32 %v7021_v8, 16  ;;  %v9356_v5 = vcombine.low %v7055_v17, %v7069_v11  ;;  %v7036_v17 = vld [vmem:[#allocation2 + $0x38] sm:$0x1e] }
 0x5b9   : > { %7965 = vmatprep.subr.bf16.mxu0 %v10735_v21  ;;  %v7115_v21 = vshll.u32 %v7026_v14, 16  ;;  %v9363_v29 = vcombine.low %v7090_v20, %v7104_v15 }
 0x5ba   : > { %v7082_v32 = vrot.slane %v7080_v18, 1  ;;  %v10782_v18 = vld [vmem:[%s13058_s5 + $0x850] ss:$8 sps:$4 sm:$0xff]  }
 0x5bc   : > { %7966 = vmatpush1.bf16.msra.mxu0 %v10733_v28  ;;  %v7096_v28 = vrot.slane %v7094_v13, 1 }
 0x5bd   : > { %7967 = vmatprep.subr.bf16.mxu0 %v10739_v31  ;;  %v7027_v31 = vld [vmem:[#allocation2 + $0x70] sm:$0x1f] }
 0x5bf   : > { %7945 = vmatmul.mubr.bf16.gmra.mrb[28].mxu0 %v10736_v38  ;;  %v10770_v38 = vld [vmem:[%s13058_s5 + $0x810] ss:$8 sps:$4 sm:$0xff]  }
 0x5c0   : > { %7968 = vmatpush1.bf16.msra.mxu0 %v10737_v34  ;;  %7987 = vmatprep.mubr.bf16.mxu0 %v9357_v40  ;;  %v7030_v34 = vld [vmem:[#allocation2 + $0x88] sm:$0x1f]  ;;  %v7127_v40 = vshrl.u32 %v7028_v4, 16 }
 0x5c1   : > { %7969 = vmatprep.subr.bf16.mxu0 %v10742_v39  ;;  %v7117_v39 = vrot.slane %v7115_v21, 1  ;;  %v7141_v63 = vshrl.u32 %v7030_v34, 16  ;;  %v10787_v21 = vld [vmem:[%s13058_s5 + $0x864] ss:$8 sps:$4 sm:$0xff]  }
 0x5c4   : > { %7970 = vmatpush1.bf16.msra.mxu0 %v10740_v41  ;;  %v7025_v41 = vld [vmem:[#allocation2 + $0x60] sm:$0x1f] }
 0x5c5   : > { %7971 = vmatprep.subr.bf16.mxu0 %v10745_v42  ;;  %v7078_v42 = vshrl.u32 %v7021_v8, 16  ;;  %v7106_v0 = vshrl.u32 %v7025_v41, 16 }
 0x5c8   : > { %7972 = vmatpush1.bf16.msra.mxu0 %v10743_v43  ;;  %v7097_v43 = vor.u32 %v7096_v28, %v7092_v33  ;;  %v10785_v28 = vld [vmem:[%s13058_s5 + $0x860] ss:$8 sps:$4 sm:$0xff]   ;;  %v10788_v33 = vld [vmem:[%s13058_s5 + $0x870] ss:$8 sps:$4 sm:$0xff]  }
 0x5c9   : > { %7973 = vmatprep.subr.bf16.mxu0 %v10748_v44  ;;  %v10775_v44 = vld [vmem:[%s13058_s5 + $0x824] ss:$8 sps:$4 sm:$0xff]  }
 0x5cc   : > { %7974 = vmatpush1.bf16.msra.mxu0 %v10746_v1  ;;  %v7122_v1 = vshll.u32 %v7027_v31, 16 }
 0x5cd   : > { %7975 = vmatprep.subr.bf16.mxu0 %v10751_v45  ;;  %v7113_v45 = vshrl.u32 %v7026_v14, 16 }
 0x5ce   : > { %v7124_v35 = vrot.slane %v7122_v1, 1  ;;  %v10803_v1 = vld [vmem:[%s13058_s5 + $0x8c0] ss:$8 sps:$4 sm:$0xff]  }
 0x5cf   : > { %v7118_v52 = vor.u32 %v7117_v39, %v7113_v45  ;;  %v10794_v39 = vld [vmem:[%s13058_s5 + $0x890] ss:$8 sps:$4 sm:$0xff]   ;;  %v10808_v45 = vld [vmem:[%s13058_s5 + $0x8d4] ss:$8 sps:$4 sm:$0xff]  }
 0x5d0   : > { %7976 = vmatpush1.bf16.msra.mxu0 %v10749_v46  ;;  %v7132_v46 = vor.u32 %v7131_v30, %v7127_v40  ;;  %v10799_v40 = vld [vmem:[%s13058_s5 + $0x8a4] ss:$8 sps:$4 sm:$0xff]  }
 0x5d1   : > { %7977 = vmatprep.subr.bf16.mxu0 %v10754_v47  ;;  %v7143_v47 = vshll.u32 %v7030_v34, 16  ;;  %v10793_v34 = vld [vmem:[%s13058_s5 + $0x884] ss:$8 sps:$4 sm:$0xff]  }
 0x5d2   : > { %v9369_v56 = vcombine.low %v7118_v52, %v7132_v46  ;;  %v10806_v46 = vld [vmem:[%s13058_s5 + $0x8d0] ss:$8 sps:$4 sm:$0xff]  }
 0x5d3   : > { %v7145_v57 = vrot.slane %v7143_v47, 1  ;;  %v10811_v47 = vld [vmem:[%s13058_s5 + $0x8e4] ss:$8 sps:$4 sm:$0xff]   ;;  %v10812_v52 = vld [vmem:[%s13058_s5 + $0x8f0] ss:$8 sps:$4 sm:$0xff]  }
 0x5d4   : > { %7978 = vmatpush1.bf16.msra.mxu0 %v10752_v48  ;;  %v7157_v48 = vshll.u32 %v7032_v37, 16  ;;  %v10791_v37 = vld [vmem:[%s13058_s5 + $0x880] ss:$8 sps:$4 sm:$0xff]  }
 0x5d5   : > { %7979 = vmatprep.subr.bf16.mxu0 %v10757_v49  ;;  %v7083_v49 = vor.u32 %v7082_v32, %v7078_v42  ;;  %v7146_v6 = vor.u32 %v7145_v57, %v7141_v63  ;;  %v10802_v42 = vld [vmem:[%s13058_s5 + $0x8b4] ss:$8 sps:$4 sm:$0xff]   ;;  %v7042_v63 = vld [vmem:[#allocation2 + $0x68] sm:$0x1e] }
 0x5d6   : > { %v7159_v58 = vrot.slane %v7157_v48, 1  ;;  %v10809_v48 = vld [vmem:[%s13058_s5 + $0x8e0] ss:$8 sps:$4 sm:$0xff]  }
 0x5d7   : > { %v9362_v53 = vcombine.low %v7083_v49, %v7097_v43  ;;  %v10800_v43 = vld [vmem:[%s13058_s5 + $0x8b0] ss:$8 sps:$4 sm:$0xff]   ;;  %v10814_v49 = vld [vmem:[%s13058_s5 + $0x8f4] ss:$8 sps:$4 sm:$0xff]  }
 0x5d8   : > { %7980 = vmatpush1.bf16.msra.mxu0 %v10755_v50  ;;  %v7108_v50 = vshll.u32 %v7025_v41, 16  ;;  %v7160_v7 = vor.u32 %v7159_v58, %v7155_v36  ;;  %v10797_v41 = vld [vmem:[%s13058_s5 + $0x8a0] ss:$8 sps:$4 sm:$0xff]  }
 0x5d9   : > { %7981 = vmatprep.subr.bf16.mxu0 %v10760_v51  ;;  %v10773_v51 = vld [vmem:[%s13058_s5 + $0x820] ss:$8 sps:$4 sm:$0xff]  }
 0x5da   : > { %v7110_v60 = vrot.slane %v7108_v50, 1  ;;  %v9375_v15 = vcombine.low %v7146_v6, %v7160_v7  ;;  %v7035_v50 = vld [vmem:[#allocation2 + $0x30] sm:$0x1e]  ;;  %v7046_v7 = vld [vmem:[#allocation2 + $0x88] sm:$0x1e] }
 0x5db   : > { %v7043_v6 = vld [vmem:[#allocation2 + $0x70] sm:$0x1e] }
 0x5dc   : > { %7982 = vmatpush1.bf16.msra.mxu0 %v10758_v54  ;;  %v10778_v54 = vld [vmem:[%s13058_s5 + $0x834] ss:$8 sps:$4 sm:$0xff]   ;;  %v7111_v8 = vor.u32 %v7110_v60, %v7106_v0 }
 0x5dd   : > { %7983 = vmatprep.subr.bf16.mxu0 %v10763_v55  ;;  %v7029_v55 = vld [vmem:[#allocation2 + $0x80] sm:$0x1f]  ;;  %v7044_v60 = vld [vmem:[#allocation2 + $0x78] sm:$0x1e] }
 0x5de   : > { %v7136_v4 = vshll.u32 %v7029_v55, 16  ;;  %v7134_v16 = vshrl.u32 %v7029_v55, 16  ;;  %v7188_v0 = vrot.slane %v7044_v60, 1 }
 0x5e0   : > { %7984 = vmatpush1.bf16.msra.mxu0 %v10761_v59  ;;  %v7031_v59 = vld [vmem:[#allocation2 + $0x90] sm:$0x1f]  ;;  %v7138_v13 = vrot.slane %v7136_v4, 1 }
 0x5e1   : > { %7985 = vmatprep.subr.bf16.mxu0 %v10766_v61  ;;  %v7120_v61 = vshrl.u32 %v7027_v31, 16  ;;  %v7148_v14 = vshrl.u32 %v7031_v59, 16  ;;  %v10790_v31 = vld [vmem:[%s13058_s5 + $0x874] ss:$8 sps:$4 sm:$0xff]  }
 0x5e3   : > { %v7125_v2 = vor.u32 %v7124_v35, %v7120_v61  ;;  %v7038_v35 = vld [vmem:[#allocation2 + $0x48] sm:$0x1e]  ;;  %v7037_v61 = vld [vmem:[#allocation2 + $0x40] sm:$0x1e] }
 0x5e4   : > { %7986 = vmatpush1.bf16.msra.mxu0 %v10764_v25  ;;  %v7150_v25 = vshll.u32 %v7031_v59, 16  ;;  %v7182_v57 = vrot.slane %v7038_v35, 1  ;;  %v7039_v59 = vld [vmem:[#allocation2 + $0x50] sm:$0x1e] }
 0x5e5   : > { %8028 = vmatprep.subr.bf16.mxu0 %v10769_v12  ;;  %v9368_v11 = vcombine.low %v7111_v8, %v7125_v2  ;;  %v10784_v12 = vld [vmem:[%s13058_s5 + $0x854] ss:$8 sps:$4 sm:$0xff]   ;;  %v7181_v2 = vrot.slane %v7037_v61, 1 }
 0x5e6   : > { %v7152_v26 = vrot.slane %v7150_v25, 1  ;;  %v7048_v8 = vld [vmem:[#allocation2 + $0x98] sm:$0x1e] }
 0x5e7   : > { %7988 = vmatmul.mubr.bf16.vlgmr.msra.gmra.mrb[16].mxu0 %v9356_v5  ;;  %v7034_v5 = vld [vmem:[#allocation2 + $0x28] sm:$0x1e] }
 0x5e8   : > { %7997 = vmatprep.mubr.bf16.mxu0 %v9363_v29  ;;  %8029 = vmatpush1.bf16.msra.mxu0 %v10767_v19  ;;  %v7139_v19 = vor.u32 %v7138_v13, %v7134_v16  ;;  %v7153_v20 = vor.u32 %v7152_v26, %v7148_v14  ;;  %v7178_v29 = vrot.slane %v7034_v5, 1  ;;  %v7192_v13 = vrot.slane %v7048_v8, 1  ;;  %v7045_v16 = vld [vmem:[#allocation2 + $0x80] sm:$0x1e] }
 0x5e9   : > { %8030 = vmatprep.subr.bf16.mxu0 %v10772_v27  ;;  %v7180_v27 = vrot.slane %v7036_v17, 1  ;;  %v7047_v17 = vld [vmem:[#allocation2 + $0x90] sm:$0x1e] }
 0x5ea   : > { %v9374_v30 = vcombine.low %v7139_v19, %v7153_v20  ;;  %v7191_v19 = vrot.slane %v7047_v17, 1 }
 0x5eb   : > { %v9359_v32 = vcombine.low %v7178_v29, %v7180_v27 }
 0x5ec   : > { %8031 = vmatpush1.bf16.msra.mxu0 %v10770_v38  ;;  %v10796_v38 = vld [vmem:[%s13058_s5 + $0x894] ss:$8 sps:$4 sm:$0xff]  }
 0x5ed   : > { %8032 = vmatprep.subr.bf16.mxu0 %v10775_v44  ;;  %v10805_v44 = vld [vmem:[%s13058_s5 + $0x8c4] ss:$8 sps:$4 sm:$0xff]  }
 0x5ef   : > { %7998 = vmatmul.mubr.bf16.gmra.mrb[20].mxu0 %v9362_v53  ;;  %v7033_v53 = vld [vmem:[#allocation2 + $0x20] sm:$0x1e] }
 0x5f0   : > { %8007 = vmatprep.mubr.bf16.mxu0 %v9369_v56  ;;  %8033 = vmatpush1.bf16.msra.mxu0 %v10773_v51  ;;  %v7040_v51 = vld [vmem:[#allocation2 + $0x58] sm:$0x1e]  ;;  %v7177_v56 = vrot.slane %v7033_v53, 1 }
 0x5f1   : > { %8034 = vmatprep.subr.bf16.mxu0 %v10778_v54  ;;  %v7179_v54 = vrot.slane %v7035_v50, 1  ;;  %v7184_v55 = vrot.slane %v7040_v51, 1 }
 0x5f3   : > { %v9358_v36 = vcombine.low %v7177_v56, %v7179_v54  ;;  %v9365_v58 = vcombine.low %v7182_v57, %v7184_v55 }
 0x5f4   : > { %8035 = vmatpush1.bf16.msra.mxu0 %v10776_v62  ;;  %v7183_v62 = vrot.slane %v7039_v59, 1 }
 0x5f5   : > { %8036 = vmatprep.subr.bf16.mxu0 %v10781_v3  ;;  %v7186_v3 = vrot.slane %v7042_v63, 1 }
 0x5f6   : > { %v9364_v4 = vcombine.low %v7181_v2, %v7183_v62 }
 0x5f7   : > { %8008 = vmatmul.mubr.bf16.gmra.mrb[24].mxu0 %v9368_v11  ;;  %v9371_v25 = vcombine.low %v7186_v3, %v7188_v0  ;;  %v7187_v11 = vrot.slane %v7043_v6, 1 }
 0x5f8   : > { %8017 = vmatprep.mubr.bf16.mxu0 %v9375_v15  ;;  %8037 = vmatpush1.bf16.msra.mxu0 %v10779_v10  ;;  %v7041_v10 = vld [vmem:[#allocation2 + $0x60] sm:$0x1e] }
 0x5f9   : > { %8038 = vmatprep.subr.bf16.mxu0 %v10784_v12  ;;  %v7190_v12 = vrot.slane %v7046_v7, 1  ;;  %v7185_v14 = vrot.slane %v7041_v10, 1 }
 0x5fb   : > { %v9370_v26 = vcombine.low %v7185_v14, %v7187_v11  ;;  %v9377_v15 = vcombine.low %v7190_v12, %v7192_v13 }
 0x5fc   : > { %8039 = vmatpush1.bf16.msra.mxu0 %v10782_v18  ;;  %v7189_v18 = vrot.slane %v7045_v16, 1 }
 0x5fd   : > { %8040 = vmatprep.subr.bf16.mxu0 %v10787_v21  ;;  %v8117_v21 = vld [vmem:[%s13059_s6] sm:$0x3] }
 0x5fe   : > { %v9376_v20 = vcombine.low %v7189_v18, %v7191_v19  ;;  %v8122_v5 = vrot.slane %v8117_v21, %v11288_v24  ;;  %v8126_v27 = vrot.slane %v8117_v21, %v11291_v9 }
 0x5ff   : > { %8018 = vmatmul.mubr.bf16.gmra.mrb[28].mxu0 %v9374_v30 }
 0x600   : > { %8041 = vmatpush1.bf16.msra.mxu0 %v10785_v28  ;;  %8060 = vmatprep.mubr.bf16.mxu0 %v9359_v32 }
 0x601   : > { %8042 = vmatprep.subr.bf16.mxu0 %v10790_v31 }
 0x604   : > { %8043 = vmatpush1.bf16.msra.mxu0 %v10788_v33 }
 0x605   : > { %8044 = vmatprep.subr.bf16.mxu0 %v10793_v34 }
 0x608   : > { %8045 = vmatpush1.bf16.msra.mxu0 %v10791_v37 }
 0x609   : > { %8046 = vmatprep.subr.bf16.mxu0 %v10796_v38 }
 0x60c   : > { %8047 = vmatpush1.bf16.msra.mxu0 %v10794_v39 }
 0x60d   : > { %8048 = vmatprep.subr.bf16.mxu0 %v10799_v40 }
 0x610   : > { %8049 = vmatpush1.bf16.msra.mxu0 %v10797_v41 }
 0x611   : > { %8050 = vmatprep.subr.bf16.mxu0 %v10802_v42 }
 0x614   : > { %8051 = vmatpush1.bf16.msra.mxu0 %v10800_v43 }
 0x615   : > { %8052 = vmatprep.subr.bf16.mxu0 %v10805_v44 }
 0x618   : > { %8053 = vmatpush1.bf16.msra.mxu0 %v10803_v1 }
 0x619   : > { %8054 = vmatprep.subr.bf16.mxu0 %v10808_v45 }
 0x61c   : > { %8055 = vmatpush1.bf16.msra.mxu0 %v10806_v46 }
 0x61d   : > { %8056 = vmatprep.subr.bf16.mxu0 %v10811_v47 }
 0x620   : > { %8057 = vmatpush1.bf16.msra.mxu0 %v10809_v48 }
 0x621   : > { %8058 = vmatprep.subr.bf16.mxu0 %v10814_v49 }
 0x624   : > { %8059 = vmatpush1.bf16.msra.mxu0 %v10812_v52 }
 0x627   : > { %8061 = vmatmul.mubr.bf16.vlgmr.msra.gmra.mrb[16].mxu0 %v9358_v36 }
 0x628   : > { %8070 = vmatprep.mubr.bf16.mxu0 %v9365_v58 }
 0x62f   : > { %8071 = vmatmul.mubr.bf16.gmra.mrb[20].mxu0 %v9364_v4 }
 0x630   : > { %8080 = vmatprep.mubr.bf16.mxu0 %v9371_v25 }
 0x637   : > { %8081 = vmatmul.mubr.bf16.gmra.mrb[24].mxu0 %v9370_v26 }
 0x638   : > { %8090 = vmatprep.mubr.bf16.mxu0 %v9377_v15 }
 0x63f   : > { %8091 = vmatmul.mubr.bf16.gmra.mrb[28].mxu0 %v9376_v20 }
 0x6fa   : > { %v8062_v28 = vpop.f32.mrb[16].mxu0 }
 0x6fb   : > { %v8129_v29 = vadd.f32 %v8122_v5, %v8062_v28  ;;  %v8064_v30 = vpop.f32.mrb[17].mxu0 }
 0x6fc   : > { %v8130_v31 = vadd.f32 %v8126_v27, %v8064_v30  ;;  %v8066_v32 = vpop.f32.mrb[18].mxu0 }
 0x6fd   : > { %v8131_v33 = vadd.f32 %v8122_v5, %v8066_v32  ;;  %v8068_v34 = vpop.f32.mrb[19].mxu0  ;;  %v8145_v38 = vmax.f32 %v8129_v29, 0.0 }
 0x6fe   : > { %v8132_v37 = vadd.f32 %v8126_v27, %v8068_v34  ;;  %v8146_v40 = vmax.f32 %v8130_v31, 0.0 }
 0x6ff   : > { %v8147_v39 = vmax.f32 %v8131_v33, 0.0 }
 0x700   : > { %v8148_v41 = vmax.f32 %v8132_v37, 0.0 }
 0x701   : > { %v8161_v42 = vadd.f32 %v8147_v39, %v8145_v38  ;;  %v10825_v38 = vmov 1966171168  }
 0x702   : > { %v8174_v43 = vadd.f32 %v8148_v41, %v8146_v40  ;;  %v8072_v44 = vpop.f32.mrb[20].mxu0  ;;  %v8194_v39 = vunpack.c.l.s4 %v10825_v38 }
 0x703   : > { %v8133_v1 = vadd.f32 %v8122_v5, %v8072_v44  ;;  %v8074_v45 = vpop.f32.mrb[21].mxu0 }
 0x704   : > { %v8134_v24 = vadd.f32 %v8126_v27, %v8074_v45  ;;  %v8076_v46 = vpop.f32.mrb[22].mxu0 }
 0x705   : > { %v8149_v9 = vmax.f32 %v8133_v1, 0.0  ;;  %v8135_v47 = vadd.f32 %v8122_v5, %v8076_v46  ;;  %v8078_v48 = vpop.f32.mrb[23].mxu0 }
 0x706   : > { %v8150_v49 = vmax.f32 %v8134_v24, 0.0  ;;  %v8136_v50 = vadd.f32 %v8126_v27, %v8078_v48 }
 0x707   : > { %v8162_v51 = vadd.f32 %v8161_v42, %v8149_v9  ;;  %v8151_v52 = vmax.f32 %v8135_v47, 0.0 }
 0x708   : > { %v8175_v53 = vadd.f32 %v8174_v43, %v8150_v49  ;;  %v8152_v54 = vmax.f32 %v8136_v50, 0.0 }
 0x709   : > { %v8163_v35 = vadd.f32 %v8162_v51, %v8151_v52 }
 0x70a   : > { %v8176_v55 = vadd.f32 %v8175_v53, %v8152_v54  ;;  %v8082_v56 = vpop.f32.mrb[24].mxu0 }
 0x70b   : > { %v8137_v57 = vadd.f32 %v8122_v5, %v8082_v56  ;;  %v8084_v36 = vpop.f32.mrb[25].mxu0 }
 0x70c   : > { %v8138_v58 = vadd.f32 %v8126_v27, %v8084_v36  ;;  %v8086_v59 = vpop.f32.mrb[26].mxu0 }
 0x70d   : > { %v8153_v60 = vmax.f32 %v8137_v57, 0.0  ;;  %v8139_v61 = vadd.f32 %v8122_v5, %v8086_v59  ;;  %v8088_v62 = vpop.f32.mrb[27].mxu0 }
 0x70e   : > { %v8154_v63 = vmax.f32 %v8138_v58, 0.0  ;;  %v8140_v0 = vadd.f32 %v8126_v27, %v8088_v62 }
 0x70f   : > { %v8164_v2 = vadd.f32 %v8163_v35, %v8153_v60  ;;  %v8155_v3 = vmax.f32 %v8139_v61, 0.0 }
 0x710   : > { %v8177_v4 = vadd.f32 %v8176_v55, %v8154_v63  ;;  %v8156_v25 = vmax.f32 %v8140_v0, 0.0 }
 0x711   : > { %v8165_v6 = vadd.f32 %v8164_v2, %v8155_v3 }
 0x712   : > { %v8178_v7 = vadd.f32 %v8177_v4, %v8156_v25  ;;  %v8092_v8 = vpop.f32.mrb[28].mxu0 }
 0x713   : > { %v8141_v10 = vadd.f32 %v8122_v5, %v8092_v8  ;;  %v8094_v11 = vpop.f32.mrb[29].mxu0 }
 0x714   : > { %v8142_v12 = vadd.f32 %v8126_v27, %v8094_v11  ;;  %v8096_v13 = vpop.f32.mrb[30].mxu0 }
 0x715   : > { %v8157_v14 = vmax.f32 %v8141_v10, 0.0  ;;  %v8143_v26 = vadd.f32 %v8122_v5, %v8096_v13  ;;  %v8098_v15 = vpop.f32.mrb[31].mxu0 }
 0x716   : > { %v8158_v16 = vmax.f32 %v8142_v12, 0.0  ;;  %v8144_v17 = vadd.f32 %v8126_v27, %v8098_v15  ;;  %v8195_v27 = vunpack.c.0.s8 %v8194_v39 }
 0x717   : > { %v8166_v18 = vadd.f32 %v8165_v6, %v8157_v14  ;;  %v8159_v19 = vmax.f32 %v8143_v26, 0.0 }
 0x718   : > { %v8179_v20 = vadd.f32 %v8178_v7, %v8158_v16  ;;  %v8160_v21 = vmax.f32 %v8144_v17, 0.0  ;;  %v8198_v24 = vsub.s32 %v8195_v27, %v11282_v23 }
 0x719   : > { %v8167_v28 = vadd.f32 %v8166_v18, %v8159_v19 }
 0x71a   : > { %v8180_v29 = vadd.f32 %v8179_v20, %v8160_v21 }
 0x71b   : > { %v8168_v30 = vrot.slane %v8167_v28, 4 }
 0x71c   : > { %v8181_v31 = vrot.slane %v8180_v29, 4 }
 0x71d   : > { %v8169_v32 = vadd.f32 %v8168_v30, %v8167_v28 }
 0x71e   : > { %v8182_v33 = vadd.f32 %v8181_v31, %v8180_v29 }
 0x71f   : > { %v8170_v34 = vrot.slane %v8169_v32, 2 }
 0x720   : > { %v8183_v37 = vrot.slane %v8182_v33, 2 }
 0x721   : > { %v8171_v40 = vadd.f32 %v8170_v34, %v8169_v32 }
 0x722   : > { %v8184_v5 = vadd.f32 %v8183_v37, %v8182_v33 }
 0x723   : > { %v8172_v41 = vrot.slane %v8171_v40, 1 }
 0x724   : > { %v8185_v42 = vrot.slane %v8184_v5, 1 }
 0x725   : > { %v8173_v43 = vadd.f32 %v8172_v41, %v8171_v40 }
 0x726   : > { %v8186_v44 = vadd.f32 %v8185_v42, %v8184_v5 }
 0x727   : > { %v8188_v1 = vmul.f32 0.015625, %v8173_v43 }
 0x728   : > { %v8189_v45 = vmul.f32 0.015625, %v8186_v44 }
 0x72a   : > { %v8192_v46 = vcombine.low %v8188_v1, %v8189_v45 }
 0x72c   : > { %v8199_v9 = vrot.slane %v8192_v46, %v8198_v24 }
 0x72e   : > { %v8206_v47 = vrot.slane %v8199_v9, %v8198_v24 }
 0x730   : > { %8212 = vst.msk [vmem:[%s276_s18] sm:$0x3] %vm8210_vm9, %v8206_v47 }
 0x731 PF: > { %s17_s24 = sadd.s32 1, %s10822_s24  }
 0x732   : > { %p14_p4 = scmp.ge.s32.totalorder %s17_s24, 4  }
 0x734   :  { %16 = sbr.rel (!%p14_p4) target bundleno = 1 (0x1), region = 85 }

</bundles_post_ra>
